<compile_context>
chip_gen: v7x
topology: tpu7x:2x2x1
jax: 0.10.0
libtpu: 0.0.40
codegen_flags: <defaults>
</compile_context>

<pallas_src>
import functools

import jax
import jax.numpy as jnp
from jax.experimental import pallas as pl
from jax.experimental.pallas import tpu as pltpu

MXU_DTYPE = jnp.bfloat16  # matmul operand dtype; accumulation is float32


# ------------------------------ fused kernel -------------------------------


def _lenet5_kernel(x_ref, w1_ref, b1_ref, w2_ref, b2_ref,
                   wf1_ref, bf1_ref, wf2_ref, bf2_ref, wf3_ref, bf3_ref,
                   out_ref, r_ref, s_ref, *, k1, k2, lq, lh2, c2in):
    """One grid step = one sample; everything stays in VMEM/vregs.

    x_ref  : (1, 4, PHL) f32   phase-split input, x_ref[0, p, m] = x[4*m + p]
    w1_ref : (C1, k1)      bf16  conv1 weight (C_in = 1)
    b1_ref : (C1, 1)       f32
    w2_ref : (C2, c2in*k2) bf16  conv2 weight, columns ordered (tap i, in-ch)
    b2_ref : (C2, 1)       f32
    wf1_ref: (C2, lh2, F1) bf16  fc1 weight reshaped to the (ch, pos) flatten
    wf2_ref: (F1, F2) bf16 ; wf3_ref: (F2, NC) bf16 ; bf*: (1, F) f32
    out_ref: (1, 1, NC)    f32
    r_ref  : (k1+3, lq)        f32  conv1 im2col rows: r_ref[q, s] = x[4*s + q]
    s_ref  : (c2in*(k2+1), lh2) f32 conv2 im2col rows (group g = pool1[:, 2t+g])
    """
    f32 = jnp.float32

    x_n = x_ref[0]                                    # (4, PHL) f32

    # -- conv1 im2col: row q holds x[4*s + q], s in [0, lq).  (contiguous slices)
    for q in range(k1 + 3):
        p, m = q % 4, q // 4
        r_ref[pl.ds(q, 1), :] = x_n[p:p + 1, m:m + lq]

    w1 = w1_ref[...]
    b1 = b1_ref[...]
    # conv1 (linear part) at output positions 4s+r, r = 0..3 — lane-dense tiles.
    c1 = [jnp.dot(w1, r_ref[pl.ds(r, k1), :].astype(MXU_DTYPE),
                  preferred_element_type=f32) for r in range(4)]
    # MaxPool1d(2,2) fused with bias + ReLU:
    #   pool_e[:, s] = pool1[:, 2s],  pool_o[:, s] = pool1[:, 2s+1]
    pool_e = jnp.maximum(jnp.maximum(c1[0], c1[1]) + b1, 0.0)   # (C1, lq)
    pool_o = jnp.maximum(jnp.maximum(c1[2], c1[3]) + b1, 0.0)   # (C1, lq)

    # -- conv2 im2col: row group g (c2in rows each) holds pool1[:, 2t + g].
    for g in range(k2 + 1):
        src = pool_e if g % 2 == 0 else pool_o
        off = g // 2
        s_ref[pl.ds(g * c2in, c2in), :] = src[:, off:off + lh2]

    w2 = w2_ref[...]
    b2 = b2_ref[...]
    c2_e = jnp.dot(w2, s_ref[pl.ds(0, c2in * k2), :].astype(MXU_DTYPE),
                   preferred_element_type=f32)                  # conv2[:, 2t]
    c2_o = jnp.dot(w2, s_ref[pl.ds(c2in, c2in * k2), :].astype(MXU_DTYPE),
                   preferred_element_type=f32)                  # conv2[:, 2t+1]
    pooled2 = jnp.maximum(jnp.maximum(c2_e, c2_o) + b2, 0.0)    # (C2, lh2)

    # -- fc1: flatten order is (channel, position), matching torch .view.
    acc = bf1_ref[...]                                          # (1, F1) f32
    for c in range(pooled2.shape[0]):
        acc = acc + jnp.dot(pooled2[c:c + 1, :].astype(MXU_DTYPE), wf1_ref[c],
                            preferred_element_type=f32)
    h1 = jnp.maximum(acc, 0.0)                                  # (1, F1)

    h2 = jnp.maximum(
        jnp.dot(h1.astype(MXU_DTYPE), wf2_ref[...],
                preferred_element_type=f32) + bf2_ref[...], 0.0)    # (1, F2)
    logits = jnp.dot(h2.astype(MXU_DTYPE), wf3_ref[...],
                     preferred_element_type=f32) + bf3_ref[...]     # (1, NC)
    out_ref[0] = logits


# ------------------------------ host wrapper -------------------------------


def lenet5_forward(x, params):
    """x: (N, 1, L) float32; params in PyTorch layout (see __main__)."""
    (w1, b1, w2, b2, wf1, bf1, wf2, bf2, wf3, bf3) = params
    n, cin, length = x.shape
    c1, cin_w, k1 = w1.shape
    c2, c2in, k2 = w2.shape
    assert cin == 1 and cin_w == 1 and c2in == c1
    lout1 = length - k1 + 1
    assert lout1 % 4 == 0, "conv1 output length must be divisible by 4"
    lq = lout1 // 4
    lout2 = lout1 // 2 - k2 + 1
    assert lout2 % 2 == 0
    lh2 = lout2 // 2
    f1_in, f1 = wf1.shape
    assert f1_in == c2 * lh2, (f1_in, c2 * lh2)
    f2 = wf2.shape[1]
    nc = wf3.shape[1]

    # Phase-split the input (tiny XLA prep): x_ph[n, p, m] = x[n, 0, 4m + p].
    pad = (-length) % 4
    phl = (length + pad) // 4
    x2 = x.reshape(n, length).astype(jnp.float32)
    x_ph = jnp.pad(x2, ((0, 0), (0, pad))).reshape(n, phl, 4).transpose(0, 2, 1)

    # Weight repacking (one-time, tiny): bf16 matmul operands, f32 biases.
    w1m = w1.reshape(c1, k1).astype(MXU_DTYPE)
    b1c = b1.reshape(c1, 1).astype(jnp.float32)
    w2m = jnp.transpose(w2, (0, 2, 1)).reshape(c2, c2in * k2).astype(MXU_DTYPE)
    b2c = b2.reshape(c2, 1).astype(jnp.float32)
    wf1r = wf1.reshape(c2, lh2, f1).astype(MXU_DTYPE)
    bf1r = bf1.reshape(1, f1).astype(jnp.float32)
    wf2c = wf2.astype(MXU_DTYPE)
    bf2r = bf2.reshape(1, f2).astype(jnp.float32)
    wf3c = wf3.astype(MXU_DTYPE)
    bf3r = bf3.reshape(1, nc).astype(jnp.float32)

    kernel = functools.partial(_lenet5_kernel, k1=k1, k2=k2, lq=lq, lh2=lh2,
                               c2in=c2in)

    def full(shape):
        ndim = len(shape)
        return pl.BlockSpec(shape, lambda i: (0,) * ndim)

    out3 = pl.pallas_call(
        kernel,
        out_shape=jax.ShapeDtypeStruct((n, 1, nc), jnp.float32),
        grid_spec=pltpu.PrefetchScalarGridSpec(
            num_scalar_prefetch=0,
            grid=(n,),
            in_specs=[
                pl.BlockSpec((1, 4, phl), lambda i: (i, 0, 0)),
                full((c1, k1)), full((c1, 1)),
                full((c2, c2in * k2)), full((c2, 1)),
                full((c2, lh2, f1)), full((1, f1)),
                full((f1, f2)), full((1, f2)),
                full((f2, nc)), full((1, nc)),
            ],
            out_specs=pl.BlockSpec((1, 1, nc), lambda i: (i, 0, 0)),
            scratch_shapes=[
                pltpu.VMEM((k1 + 3, lq), jnp.float32),            # conv1 patches
                pltpu.VMEM((c2in * (k2 + 1), lh2), jnp.float32),  # conv2 patches
            ],
        ),
        compiler_params=pltpu.CompilerParams(
            dimension_semantics=("parallel",)),  # batch across the 2 TCs on v7x
    )(x_ph, w1m, b1c, w2m, b2c, wf1r, bf1r, wf2c, bf2r, wf3c, bf3r)
    return out3.reshape(n, nc)


# ------------------------- plain-JAX reference check ------------------------


def _reference_forward(x, params):
    """Independent reference (im2col + strided-slice pooling) using the same
    bf16-operand / f32-accumulate matmuls as the kernel."""
    (w1, b1, w2, b2, wf1, bf1, wf2, bf2, wf3, bf3) = params
    f32 = jnp.float32

    def conv1d(x_ncl, w, b):
        n, cin, L = x_ncl.shape
        cout, _, k = w.shape
        lout = L - k + 1
        cols = jnp.stack([x_ncl[:, :, i:i + lout] for i in range(k)], axis=-1)
        cols = cols.transpose(0, 2, 1, 3).reshape(n * lout, cin * k)
        wm = w.reshape(cout, cin * k).T
        out = jnp.dot(cols.astype(MXU_DTYPE), wm.astype(MXU_DTYPE),
                      preferred_element_type=f32) + b.reshape(1, cout)
        return out.reshape(n, lout, cout).transpose(0, 2, 1)

    def pool(x_ncl):
        return jnp.maximum(x_ncl[:, :, 0::2], x_ncl[:, :, 1::2])

    out = pool(jnp.maximum(conv1d(x.astype(f32), w1, b1), 0.0))
    out = pool(jnp.maximum(conv1d(out, w2, b2), 0.0))
    flat = out.reshape(out.shape[0], -1)
    h1 = jnp.maximum(jnp.dot(flat.astype(MXU_DTYPE), wf1.astype(MXU_DTYPE),
                             preferred_element_type=f32) + bf1, 0.0)
    h2 = jnp.maximum(jnp.dot(h1.astype(MXU_DTYPE), wf2.astype(MXU_DTYPE),
                             preferred_element_type=f32) + bf2, 0.0)
    return jnp.dot(h2.astype(MXU_DTYPE), wf3.astype(MXU_DTYPE),
                   preferred_element_type=f32) + bf3


# --------------------------------- driver ----------------------------------


if __name__ == "__main__":
    num_classes = 10
    batch = 2
    seq_len = 981  # required so the flattened feature dim is 3696 (fc1 input)

    key = jax.random.PRNGKey(0)
    ks = jax.random.split(key, 11)

    x = jax.random.normal(ks[0], (batch, 1, seq_len), jnp.float32)

    # Deterministic synthetic parameters (PyTorch Conv1d/Linear shapes; Linear
    # weights stored directly as (in_features, out_features)).
    w1 = 0.05 * jax.random.normal(ks[1], (6, 1, 50), jnp.float32)
    b1 = 0.05 * jax.random.normal(ks[2], (6,), jnp.float32)
    w2 = 0.05 * jax.random.normal(ks[3], (16, 6, 5), jnp.float32)
    b2 = 0.05 * jax.random.normal(ks[4], (16,), jnp.float32)
    wf1 = 0.02 * jax.random.normal(ks[5], (3696, 120), jnp.float32)
    bf1 = 0.02 * jax.random.normal(ks[6], (120,), jnp.float32)
    wf2 = 0.05 * jax.random.normal(ks[7], (120, 84), jnp.float32)
    bf2 = 0.05 * jax.random.normal(ks[8], (84,), jnp.float32)
    wf3 = 0.05 * jax.random.normal(ks[9], (84, num_classes), jnp.float32)
    bf3 = 0.05 * jax.random.normal(ks[10], (num_classes,), jnp.float32)

    params = (w1, b1, w2, b2, wf1, bf1, wf2, bf2, wf3, bf3)

    fwd = jax.jit(lenet5_forward)
    out = fwd(x, params)
    jax.block_until_ready(out)

    assert out.shape == (batch, num_classes), out.shape
    assert out.dtype == jnp.float32

    # Correctness check against an independent plain-JAX reference.
    ref = jax.jit(_reference_forward)(x, params)
    jax.block_until_ready(ref)
    max_err = float(jnp.max(jnp.abs(out - ref)))
    assert max_err < 3e-3, f"kernel/reference mismatch: {max_err}"

    print("KERNEL_OK")
</pallas_src>

<mosaic_0001>
module attributes {stable_mosaic.version = 11 : i64} {
  func.func @_lenet5_kernel(%arg0: i32, %arg1: memref<1x4x246xf32, #tpu.memory_space<vmem>>, %arg2: memref<6x50xbf16, #tpu.memory_space<vmem>>, %arg3: memref<6x1xf32, #tpu.memory_space<vmem>>, %arg4: memref<16x30xbf16, #tpu.memory_space<vmem>>, %arg5: memref<16x1xf32, #tpu.memory_space<vmem>>, %arg6: memref<16x231x120xbf16, #tpu.memory_space<vmem>>, %arg7: memref<1x120xf32, #tpu.memory_space<vmem>>, %arg8: memref<120x84xbf16, #tpu.memory_space<vmem>>, %arg9: memref<1x84xf32, #tpu.memory_space<vmem>>, %arg10: memref<84x10xbf16, #tpu.memory_space<vmem>>, %arg11: memref<1x10xf32, #tpu.memory_space<vmem>>, %arg12: memref<1x1x10xf32, #tpu.memory_space<vmem>>, %arg13: memref<53x233xf32, #tpu.memory_space<vmem>>, %arg14: memref<36x231xf32, #tpu.memory_space<vmem>>) attributes {dimension_semantics = [#tpu.dimension_semantics<parallel>], iteration_bounds = array<i64: 2>, scalar_prefetch = 0 : i64, scratch_operands = 2 : i64, tpu.core_type = #tpu.core_type<tc>, window_params = [{transform_indices = @transform_0, window_bounds = array<i64: 1, 4, 246>}, {pipeline_mode = #tpu.pipeline_mode<synchronous>, transform_indices = @transform_1, window_bounds = array<i64: 6, 50>}, {pipeline_mode = #tpu.pipeline_mode<synchronous>, transform_indices = @transform_2, window_bounds = array<i64: 6, 1>}, {pipeline_mode = #tpu.pipeline_mode<synchronous>, transform_indices = @transform_3, window_bounds = array<i64: 16, 30>}, {pipeline_mode = #tpu.pipeline_mode<synchronous>, transform_indices = @transform_4, window_bounds = array<i64: 16, 1>}, {pipeline_mode = #tpu.pipeline_mode<synchronous>, transform_indices = @transform_5, window_bounds = array<i64: 16, 231, 120>}, {pipeline_mode = #tpu.pipeline_mode<synchronous>, transform_indices = @transform_6, window_bounds = array<i64: 1, 120>}, {pipeline_mode = #tpu.pipeline_mode<synchronous>, transform_indices = @transform_7, window_bounds = array<i64: 120, 84>}, {pipeline_mode = #tpu.pipeline_mode<synchronous>, transform_indices = @transform_8, window_bounds = array<i64: 1, 84>}, {pipeline_mode = #tpu.pipeline_mode<synchronous>, transform_indices = @transform_9, window_bounds = array<i64: 84, 10>}, {pipeline_mode = #tpu.pipeline_mode<synchronous>, transform_indices = @transform_10, window_bounds = array<i64: 1, 10>}, {transform_indices = @transform_11, window_bounds = array<i64: 1, 1, 10>}]} {
    %c0 = arith.constant 0 : index
    %c0_0 = arith.constant 0 : index
    %c0_1 = arith.constant 0 : index
    %0 = vector.load %arg1[%c0, %c0_0, %c0_1] : memref<1x4x246xf32, #tpu.memory_space<vmem>>, vector<1x4x246xf32>
    %1 = vector.shape_cast %0 : vector<1x4x246xf32> to vector<4x246xf32>
    %2 = vector.extract_strided_slice %1 {offsets = [0, 0], sizes = [1, 233], strides = [1, 1]} : vector<4x246xf32> to vector<1x233xf32>
    %c0_2 = arith.constant 0 : index
    %c0_3 = arith.constant 0 : index
    %3 = vector.load %arg13[%c0_2, %c0_3] : memref<53x233xf32, #tpu.memory_space<vmem>>, vector<1x233xf32>
    tpu.vector_store %arg13[%c0_2, %c0_3], %2 {strides = array<i32>} : memref<53x233xf32, #tpu.memory_space<vmem>>, vector<1x233xf32>,
    %4 = vector.extract_strided_slice %1 {offsets = [1, 0], sizes = [1, 233], strides = [1, 1]} : vector<4x246xf32> to vector<1x233xf32>
    %c1 = arith.constant 1 : index
    %c0_4 = arith.constant 0 : index
    %5 = vector.load %arg13[%c1, %c0_4] : memref<53x233xf32, #tpu.memory_space<vmem>>, vector<1x233xf32>
    tpu.vector_store %arg13[%c1, %c0_4], %4 {strides = array<i32>} : memref<53x233xf32, #tpu.memory_space<vmem>>, vector<1x233xf32>,
    %6 = vector.extract_strided_slice %1 {offsets = [2, 0], sizes = [1, 233], strides = [1, 1]} : vector<4x246xf32> to vector<1x233xf32>
    %c2 = arith.constant 2 : index
    %c0_5 = arith.constant 0 : index
    %7 = vector.load %arg13[%c2, %c0_5] : memref<53x233xf32, #tpu.memory_space<vmem>>, vector<1x233xf32>
    tpu.vector_store %arg13[%c2, %c0_5], %6 {strides = array<i32>} : memref<53x233xf32, #tpu.memory_space<vmem>>, vector<1x233xf32>,
    %8 = vector.extract_strided_slice %1 {offsets = [3, 0], sizes = [1, 233], strides = [1, 1]} : vector<4x246xf32> to vector<1x233xf32>
    %c3 = arith.constant 3 : index
    %c0_6 = arith.constant 0 : index
    %9 = vector.load %arg13[%c3, %c0_6] : memref<53x233xf32, #tpu.memory_space<vmem>>, vector<1x233xf32>
    tpu.vector_store %arg13[%c3, %c0_6], %8 {strides = array<i32>} : memref<53x233xf32, #tpu.memory_space<vmem>>, vector<1x233xf32>,
    %10 = vector.extract_strided_slice %1 {offsets = [0, 1], sizes = [1, 233], strides = [1, 1]} : vector<4x246xf32> to vector<1x233xf32>
    %c4 = arith.constant 4 : index
    %c0_7 = arith.constant 0 : index
    %11 = vector.load %arg13[%c4, %c0_7] : memref<53x233xf32, #tpu.memory_space<vmem>>, vector<1x233xf32>
    tpu.vector_store %arg13[%c4, %c0_7], %10 {strides = array<i32>} : memref<53x233xf32, #tpu.memory_space<vmem>>, vector<1x233xf32>,
    %12 = vector.extract_strided_slice %1 {offsets = [1, 1], sizes = [1, 233], strides = [1, 1]} : vector<4x246xf32> to vector<1x233xf32>
    %c5 = arith.constant 5 : index
    %c0_8 = arith.constant 0 : index
    %13 = vector.load %arg13[%c5, %c0_8] : memref<53x233xf32, #tpu.memory_space<vmem>>, vector<1x233xf32>
    tpu.vector_store %arg13[%c5, %c0_8], %12 {strides = array<i32>} : memref<53x233xf32, #tpu.memory_space<vmem>>, vector<1x233xf32>,
    %14 = vector.extract_strided_slice %1 {offsets = [2, 1], sizes = [1, 233], strides = [1, 1]} : vector<4x246xf32> to vector<1x233xf32>
    %c6 = arith.constant 6 : index
    %c0_9 = arith.constant 0 : index
    %15 = vector.load %arg13[%c6, %c0_9] : memref<53x233xf32, #tpu.memory_space<vmem>>, vector<1x233xf32>
    tpu.vector_store %arg13[%c6, %c0_9], %14 {strides = array<i32>} : memref<53x233xf32, #tpu.memory_space<vmem>>, vector<1x233xf32>,
    %16 = vector.extract_strided_slice %1 {offsets = [3, 1], sizes = [1, 233], strides = [1, 1]} : vector<4x246xf32> to vector<1x233xf32>
    %c7 = arith.constant 7 : index
    %c0_10 = arith.constant 0 : index
    %17 = vector.load %arg13[%c7, %c0_10] : memref<53x233xf32, #tpu.memory_space<vmem>>, vector<1x233xf32>
    tpu.vector_store %arg13[%c7, %c0_10], %16 {strides = array<i32>} : memref<53x233xf32, #tpu.memory_space<vmem>>, vector<1x233xf32>,
    %18 = vector.extract_strided_slice %1 {offsets = [0, 2], sizes = [1, 233], strides = [1, 1]} : vector<4x246xf32> to vector<1x233xf32>
    %c8 = arith.constant 8 : index
    %c0_11 = arith.constant 0 : index
    %19 = vector.load %arg13[%c8, %c0_11] : memref<53x233xf32, #tpu.memory_space<vmem>>, vector<1x233xf32>
    tpu.vector_store %arg13[%c8, %c0_11], %18 {strides = array<i32>} : memref<53x233xf32, #tpu.memory_space<vmem>>, vector<1x233xf32>,
    %20 = vector.extract_strided_slice %1 {offsets = [1, 2], sizes = [1, 233], strides = [1, 1]} : vector<4x246xf32> to vector<1x233xf32>
    %c9 = arith.constant 9 : index
    %c0_12 = arith.constant 0 : index
    %21 = vector.load %arg13[%c9, %c0_12] : memref<53x233xf32, #tpu.memory_space<vmem>>, vector<1x233xf32>
    tpu.vector_store %arg13[%c9, %c0_12], %20 {strides = array<i32>} : memref<53x233xf32, #tpu.memory_space<vmem>>, vector<1x233xf32>,
    %22 = vector.extract_strided_slice %1 {offsets = [2, 2], sizes = [1, 233], strides = [1, 1]} : vector<4x246xf32> to vector<1x233xf32>
    %c10 = arith.constant 10 : index
    %c0_13 = arith.constant 0 : index
    %23 = vector.load %arg13[%c10, %c0_13] : memref<53x233xf32, #tpu.memory_space<vmem>>, vector<1x233xf32>
    tpu.vector_store %arg13[%c10, %c0_13], %22 {strides = array<i32>} : memref<53x233xf32, #tpu.memory_space<vmem>>, vector<1x233xf32>,
    %24 = vector.extract_strided_slice %1 {offsets = [3, 2], sizes = [1, 233], strides = [1, 1]} : vector<4x246xf32> to vector<1x233xf32>
    %c11 = arith.constant 11 : index
    %c0_14 = arith.constant 0 : index
    %25 = vector.load %arg13[%c11, %c0_14] : memref<53x233xf32, #tpu.memory_space<vmem>>, vector<1x233xf32>
    tpu.vector_store %arg13[%c11, %c0_14], %24 {strides = array<i32>} : memref<53x233xf32, #tpu.memory_space<vmem>>, vector<1x233xf32>,
    %26 = vector.extract_strided_slice %1 {offsets = [0, 3], sizes = [1, 233], strides = [1, 1]} : vector<4x246xf32> to vector<1x233xf32>
    %c12 = arith.constant 12 : index
    %c0_15 = arith.constant 0 : index
    %27 = vector.load %arg13[%c12, %c0_15] : memref<53x233xf32, #tpu.memory_space<vmem>>, vector<1x233xf32>
    tpu.vector_store %arg13[%c12, %c0_15], %26 {strides = array<i32>} : memref<53x233xf32, #tpu.memory_space<vmem>>, vector<1x233xf32>,
    %28 = vector.extract_strided_slice %1 {offsets = [1, 3], sizes = [1, 233], strides = [1, 1]} : vector<4x246xf32> to vector<1x233xf32>
    %c13 = arith.constant 13 : index
    %c0_16 = arith.constant 0 : index
    %29 = vector.load %arg13[%c13, %c0_16] : memref<53x233xf32, #tpu.memory_space<vmem>>, vector<1x233xf32>
    tpu.vector_store %arg13[%c13, %c0_16], %28 {strides = array<i32>} : memref<53x233xf32, #tpu.memory_space<vmem>>, vector<1x233xf32>,
    %30 = vector.extract_strided_slice %1 {offsets = [2, 3], sizes = [1, 233], strides = [1, 1]} : vector<4x246xf32> to vector<1x233xf32>
    %c14 = arith.constant 14 : index
    %c0_17 = arith.constant 0 : index
    %31 = vector.load %arg13[%c14, %c0_17] : memref<53x233xf32, #tpu.memory_space<vmem>>, vector<1x233xf32>
    tpu.vector_store %arg13[%c14, %c0_17], %30 {strides = array<i32>} : memref<53x233xf32, #tpu.memory_space<vmem>>, vector<1x233xf32>,
    %32 = vector.extract_strided_slice %1 {offsets = [3, 3], sizes = [1, 233], strides = [1, 1]} : vector<4x246xf32> to vector<1x233xf32>
    %c15 = arith.constant 15 : index
    %c0_18 = arith.constant 0 : index
    %33 = vector.load %arg13[%c15, %c0_18] : memref<53x233xf32, #tpu.memory_space<vmem>>, vector<1x233xf32>
    tpu.vector_store %arg13[%c15, %c0_18], %32 {strides = array<i32>} : memref<53x233xf32, #tpu.memory_space<vmem>>, vector<1x233xf32>,
    %34 = vector.extract_strided_slice %1 {offsets = [0, 4], sizes = [1, 233], strides = [1, 1]} : vector<4x246xf32> to vector<1x233xf32>
    %c16 = arith.constant 16 : index
    %c0_19 = arith.constant 0 : index
    %35 = vector.load %arg13[%c16, %c0_19] : memref<53x233xf32, #tpu.memory_space<vmem>>, vector<1x233xf32>
    tpu.vector_store %arg13[%c16, %c0_19], %34 {strides = array<i32>} : memref<53x233xf32, #tpu.memory_space<vmem>>, vector<1x233xf32>,
    %36 = vector.extract_strided_slice %1 {offsets = [1, 4], sizes = [1, 233], strides = [1, 1]} : vector<4x246xf32> to vector<1x233xf32>
    %c17 = arith.constant 17 : index
    %c0_20 = arith.constant 0 : index
    %37 = vector.load %arg13[%c17, %c0_20] : memref<53x233xf32, #tpu.memory_space<vmem>>, vector<1x233xf32>
    tpu.vector_store %arg13[%c17, %c0_20], %36 {strides = array<i32>} : memref<53x233xf32, #tpu.memory_space<vmem>>, vector<1x233xf32>,
    %38 = vector.extract_strided_slice %1 {offsets = [2, 4], sizes = [1, 233], strides = [1, 1]} : vector<4x246xf32> to vector<1x233xf32>
    %c18 = arith.constant 18 : index
    %c0_21 = arith.constant 0 : index
    %39 = vector.load %arg13[%c18, %c0_21] : memref<53x233xf32, #tpu.memory_space<vmem>>, vector<1x233xf32>
    tpu.vector_store %arg13[%c18, %c0_21], %38 {strides = array<i32>} : memref<53x233xf32, #tpu.memory_space<vmem>>, vector<1x233xf32>,
    %40 = vector.extract_strided_slice %1 {offsets = [3, 4], sizes = [1, 233], strides = [1, 1]} : vector<4x246xf32> to vector<1x233xf32>
    %c19 = arith.constant 19 : index
    %c0_22 = arith.constant 0 : index
    %41 = vector.load %arg13[%c19, %c0_22] : memref<53x233xf32, #tpu.memory_space<vmem>>, vector<1x233xf32>
    tpu.vector_store %arg13[%c19, %c0_22], %40 {strides = array<i32>} : memref<53x233xf32, #tpu.memory_space<vmem>>, vector<1x233xf32>,
    %42 = vector.extract_strided_slice %1 {offsets = [0, 5], sizes = [1, 233], strides = [1, 1]} : vector<4x246xf32> to vector<1x233xf32>
    %c20 = arith.constant 20 : index
    %c0_23 = arith.constant 0 : index
    %43 = vector.load %arg13[%c20, %c0_23] : memref<53x233xf32, #tpu.memory_space<vmem>>, vector<1x233xf32>
    tpu.vector_store %arg13[%c20, %c0_23], %42 {strides = array<i32>} : memref<53x233xf32, #tpu.memory_space<vmem>>, vector<1x233xf32>,
    %44 = vector.extract_strided_slice %1 {offsets = [1, 5], sizes = [1, 233], strides = [1, 1]} : vector<4x246xf32> to vector<1x233xf32>
    %c21 = arith.constant 21 : index
    %c0_24 = arith.constant 0 : index
    %45 = vector.load %arg13[%c21, %c0_24] : memref<53x233xf32, #tpu.memory_space<vmem>>, vector<1x233xf32>
    tpu.vector_store %arg13[%c21, %c0_24], %44 {strides = array<i32>} : memref<53x233xf32, #tpu.memory_space<vmem>>, vector<1x233xf32>,
    %46 = vector.extract_strided_slice %1 {offsets = [2, 5], sizes = [1, 233], strides = [1, 1]} : vector<4x246xf32> to vector<1x233xf32>
    %c22 = arith.constant 22 : index
    %c0_25 = arith.constant 0 : index
    %47 = vector.load %arg13[%c22, %c0_25] : memref<53x233xf32, #tpu.memory_space<vmem>>, vector<1x233xf32>
    tpu.vector_store %arg13[%c22, %c0_25], %46 {strides = array<i32>} : memref<53x233xf32, #tpu.memory_space<vmem>>, vector<1x233xf32>,
    %48 = vector.extract_strided_slice %1 {offsets = [3, 5], sizes = [1, 233], strides = [1, 1]} : vector<4x246xf32> to vector<1x233xf32>
    %c23 = arith.constant 23 : index
    %c0_26 = arith.constant 0 : index
    %49 = vector.load %arg13[%c23, %c0_26] : memref<53x233xf32, #tpu.memory_space<vmem>>, vector<1x233xf32>
    tpu.vector_store %arg13[%c23, %c0_26], %48 {strides = array<i32>} : memref<53x233xf32, #tpu.memory_space<vmem>>, vector<1x233xf32>,
    %50 = vector.extract_strided_slice %1 {offsets = [0, 6], sizes = [1, 233], strides = [1, 1]} : vector<4x246xf32> to vector<1x233xf32>
    %c24 = arith.constant 24 : index
    %c0_27 = arith.constant 0 : index
    %51 = vector.load %arg13[%c24, %c0_27] : memref<53x233xf32, #tpu.memory_space<vmem>>, vector<1x233xf32>
    tpu.vector_store %arg13[%c24, %c0_27], %50 {strides = array<i32>} : memref<53x233xf32, #tpu.memory_space<vmem>>, vector<1x233xf32>,
    %52 = vector.extract_strided_slice %1 {offsets = [1, 6], sizes = [1, 233], strides = [1, 1]} : vector<4x246xf32> to vector<1x233xf32>
    %c25 = arith.constant 25 : index
    %c0_28 = arith.constant 0 : index
    %53 = vector.load %arg13[%c25, %c0_28] : memref<53x233xf32, #tpu.memory_space<vmem>>, vector<1x233xf32>
    tpu.vector_store %arg13[%c25, %c0_28], %52 {strides = array<i32>} : memref<53x233xf32, #tpu.memory_space<vmem>>, vector<1x233xf32>,
    %54 = vector.extract_strided_slice %1 {offsets = [2, 6], sizes = [1, 233], strides = [1, 1]} : vector<4x246xf32> to vector<1x233xf32>
    %c26 = arith.constant 26 : index
    %c0_29 = arith.constant 0 : index
    %55 = vector.load %arg13[%c26, %c0_29] : memref<53x233xf32, #tpu.memory_space<vmem>>, vector<1x233xf32>
    tpu.vector_store %arg13[%c26, %c0_29], %54 {strides = array<i32>} : memref<53x233xf32, #tpu.memory_space<vmem>>, vector<1x233xf32>,
    %56 = vector.extract_strided_slice %1 {offsets = [3, 6], sizes = [1, 233], strides = [1, 1]} : vector<4x246xf32> to vector<1x233xf32>
    %c27 = arith.constant 27 : index
    %c0_30 = arith.constant 0 : index
    %57 = vector.load %arg13[%c27, %c0_30] : memref<53x233xf32, #tpu.memory_space<vmem>>, vector<1x233xf32>
    tpu.vector_store %arg13[%c27, %c0_30], %56 {strides = array<i32>} : memref<53x233xf32, #tpu.memory_space<vmem>>, vector<1x233xf32>,
    %58 = vector.extract_strided_slice %1 {offsets = [0, 7], sizes = [1, 233], strides = [1, 1]} : vector<4x246xf32> to vector<1x233xf32>
    %c28 = arith.constant 28 : index
    %c0_31 = arith.constant 0 : index
    %59 = vector.load %arg13[%c28, %c0_31] : memref<53x233xf32, #tpu.memory_space<vmem>>, vector<1x233xf32>
    tpu.vector_store %arg13[%c28, %c0_31], %58 {strides = array<i32>} : memref<53x233xf32, #tpu.memory_space<vmem>>, vector<1x233xf32>,
    %60 = vector.extract_strided_slice %1 {offsets = [1, 7], sizes = [1, 233], strides = [1, 1]} : vector<4x246xf32> to vector<1x233xf32>
    %c29 = arith.constant 29 : index
    %c0_32 = arith.constant 0 : index
    %61 = vector.load %arg13[%c29, %c0_32] : memref<53x233xf32, #tpu.memory_space<vmem>>, vector<1x233xf32>
    tpu.vector_store %arg13[%c29, %c0_32], %60 {strides = array<i32>} : memref<53x233xf32, #tpu.memory_space<vmem>>, vector<1x233xf32>,
    %62 = vector.extract_strided_slice %1 {offsets = [2, 7], sizes = [1, 233], strides = [1, 1]} : vector<4x246xf32> to vector<1x233xf32>
    %c30 = arith.constant 30 : index
    %c0_33 = arith.constant 0 : index
    %63 = vector.load %arg13[%c30, %c0_33] : memref<53x233xf32, #tpu.memory_space<vmem>>, vector<1x233xf32>
    tpu.vector_store %arg13[%c30, %c0_33], %62 {strides = array<i32>} : memref<53x233xf32, #tpu.memory_space<vmem>>, vector<1x233xf32>,
    %64 = vector.extract_strided_slice %1 {offsets = [3, 7], sizes = [1, 233], strides = [1, 1]} : vector<4x246xf32> to vector<1x233xf32>
    %c31 = arith.constant 31 : index
    %c0_34 = arith.constant 0 : index
    %65 = vector.load %arg13[%c31, %c0_34] : memref<53x233xf32, #tpu.memory_space<vmem>>, vector<1x233xf32>
    tpu.vector_store %arg13[%c31, %c0_34], %64 {strides = array<i32>} : memref<53x233xf32, #tpu.memory_space<vmem>>, vector<1x233xf32>,
    %66 = vector.extract_strided_slice %1 {offsets = [0, 8], sizes = [1, 233], strides = [1, 1]} : vector<4x246xf32> to vector<1x233xf32>
    %c32 = arith.constant 32 : index
    %c0_35 = arith.constant 0 : index
    %67 = vector.load %arg13[%c32, %c0_35] : memref<53x233xf32, #tpu.memory_space<vmem>>, vector<1x233xf32>
    tpu.vector_store %arg13[%c32, %c0_35], %66 {strides = array<i32>} : memref<53x233xf32, #tpu.memory_space<vmem>>, vector<1x233xf32>,
    %68 = vector.extract_strided_slice %1 {offsets = [1, 8], sizes = [1, 233], strides = [1, 1]} : vector<4x246xf32> to vector<1x233xf32>
    %c33 = arith.constant 33 : index
    %c0_36 = arith.constant 0 : index
    %69 = vector.load %arg13[%c33, %c0_36] : memref<53x233xf32, #tpu.memory_space<vmem>>, vector<1x233xf32>
    tpu.vector_store %arg13[%c33, %c0_36], %68 {strides = array<i32>} : memref<53x233xf32, #tpu.memory_space<vmem>>, vector<1x233xf32>,
    %70 = vector.extract_strided_slice %1 {offsets = [2, 8], sizes = [1, 233], strides = [1, 1]} : vector<4x246xf32> to vector<1x233xf32>
    %c34 = arith.constant 34 : index
    %c0_37 = arith.constant 0 : index
    %71 = vector.load %arg13[%c34, %c0_37] : memref<53x233xf32, #tpu.memory_space<vmem>>, vector<1x233xf32>
    tpu.vector_store %arg13[%c34, %c0_37], %70 {strides = array<i32>} : memref<53x233xf32, #tpu.memory_space<vmem>>, vector<1x233xf32>,
    %72 = vector.extract_strided_slice %1 {offsets = [3, 8], sizes = [1, 233], strides = [1, 1]} : vector<4x246xf32> to vector<1x233xf32>
    %c35 = arith.constant 35 : index
    %c0_38 = arith.constant 0 : index
    %73 = vector.load %arg13[%c35, %c0_38] : memref<53x233xf32, #tpu.memory_space<vmem>>, vector<1x233xf32>
    tpu.vector_store %arg13[%c35, %c0_38], %72 {strides = array<i32>} : memref<53x233xf32, #tpu.memory_space<vmem>>, vector<1x233xf32>,
    %74 = vector.extract_strided_slice %1 {offsets = [0, 9], sizes = [1, 233], strides = [1, 1]} : vector<4x246xf32> to vector<1x233xf32>
    %c36 = arith.constant 36 : index
    %c0_39 = arith.constant 0 : index
    %75 = vector.load %arg13[%c36, %c0_39] : memref<53x233xf32, #tpu.memory_space<vmem>>, vector<1x233xf32>
    tpu.vector_store %arg13[%c36, %c0_39], %74 {strides = array<i32>} : memref<53x233xf32, #tpu.memory_space<vmem>>, vector<1x233xf32>,
    %76 = vector.extract_strided_slice %1 {offsets = [1, 9], sizes = [1, 233], strides = [1, 1]} : vector<4x246xf32> to vector<1x233xf32>
    %c37 = arith.constant 37 : index
    %c0_40 = arith.constant 0 : index
    %77 = vector.load %arg13[%c37, %c0_40] : memref<53x233xf32, #tpu.memory_space<vmem>>, vector<1x233xf32>
    tpu.vector_store %arg13[%c37, %c0_40], %76 {strides = array<i32>} : memref<53x233xf32, #tpu.memory_space<vmem>>, vector<1x233xf32>,
    %78 = vector.extract_strided_slice %1 {offsets = [2, 9], sizes = [1, 233], strides = [1, 1]} : vector<4x246xf32> to vector<1x233xf32>
    %c38 = arith.constant 38 : index
    %c0_41 = arith.constant 0 : index
    %79 = vector.load %arg13[%c38, %c0_41] : memref<53x233xf32, #tpu.memory_space<vmem>>, vector<1x233xf32>
    tpu.vector_store %arg13[%c38, %c0_41], %78 {strides = array<i32>} : memref<53x233xf32, #tpu.memory_space<vmem>>, vector<1x233xf32>,
    %80 = vector.extract_strided_slice %1 {offsets = [3, 9], sizes = [1, 233], strides = [1, 1]} : vector<4x246xf32> to vector<1x233xf32>
    %c39 = arith.constant 39 : index
    %c0_42 = arith.constant 0 : index
    %81 = vector.load %arg13[%c39, %c0_42] : memref<53x233xf32, #tpu.memory_space<vmem>>, vector<1x233xf32>
    tpu.vector_store %arg13[%c39, %c0_42], %80 {strides = array<i32>} : memref<53x233xf32, #tpu.memory_space<vmem>>, vector<1x233xf32>,
    %82 = vector.extract_strided_slice %1 {offsets = [0, 10], sizes = [1, 233], strides = [1, 1]} : vector<4x246xf32> to vector<1x233xf32>
    %c40 = arith.constant 40 : index
    %c0_43 = arith.constant 0 : index
    %83 = vector.load %arg13[%c40, %c0_43] : memref<53x233xf32, #tpu.memory_space<vmem>>, vector<1x233xf32>
    tpu.vector_store %arg13[%c40, %c0_43], %82 {strides = array<i32>} : memref<53x233xf32, #tpu.memory_space<vmem>>, vector<1x233xf32>,
    %84 = vector.extract_strided_slice %1 {offsets = [1, 10], sizes = [1, 233], strides = [1, 1]} : vector<4x246xf32> to vector<1x233xf32>
    %c41 = arith.constant 41 : index
    %c0_44 = arith.constant 0 : index
    %85 = vector.load %arg13[%c41, %c0_44] : memref<53x233xf32, #tpu.memory_space<vmem>>, vector<1x233xf32>
    tpu.vector_store %arg13[%c41, %c0_44], %84 {strides = array<i32>} : memref<53x233xf32, #tpu.memory_space<vmem>>, vector<1x233xf32>,
    %86 = vector.extract_strided_slice %1 {offsets = [2, 10], sizes = [1, 233], strides = [1, 1]} : vector<4x246xf32> to vector<1x233xf32>
    %c42 = arith.constant 42 : index
    %c0_45 = arith.constant 0 : index
    %87 = vector.load %arg13[%c42, %c0_45] : memref<53x233xf32, #tpu.memory_space<vmem>>, vector<1x233xf32>
    tpu.vector_store %arg13[%c42, %c0_45], %86 {strides = array<i32>} : memref<53x233xf32, #tpu.memory_space<vmem>>, vector<1x233xf32>,
    %88 = vector.extract_strided_slice %1 {offsets = [3, 10], sizes = [1, 233], strides = [1, 1]} : vector<4x246xf32> to vector<1x233xf32>
    %c43 = arith.constant 43 : index
    %c0_46 = arith.constant 0 : index
    %89 = vector.load %arg13[%c43, %c0_46] : memref<53x233xf32, #tpu.memory_space<vmem>>, vector<1x233xf32>
    tpu.vector_store %arg13[%c43, %c0_46], %88 {strides = array<i32>} : memref<53x233xf32, #tpu.memory_space<vmem>>, vector<1x233xf32>,
    %90 = vector.extract_strided_slice %1 {offsets = [0, 11], sizes = [1, 233], strides = [1, 1]} : vector<4x246xf32> to vector<1x233xf32>
    %c44 = arith.constant 44 : index
    %c0_47 = arith.constant 0 : index
    %91 = vector.load %arg13[%c44, %c0_47] : memref<53x233xf32, #tpu.memory_space<vmem>>, vector<1x233xf32>
    tpu.vector_store %arg13[%c44, %c0_47], %90 {strides = array<i32>} : memref<53x233xf32, #tpu.memory_space<vmem>>, vector<1x233xf32>,
    %92 = vector.extract_strided_slice %1 {offsets = [1, 11], sizes = [1, 233], strides = [1, 1]} : vector<4x246xf32> to vector<1x233xf32>
    %c45 = arith.constant 45 : index
    %c0_48 = arith.constant 0 : index
    %93 = vector.load %arg13[%c45, %c0_48] : memref<53x233xf32, #tpu.memory_space<vmem>>, vector<1x233xf32>
    tpu.vector_store %arg13[%c45, %c0_48], %92 {strides = array<i32>} : memref<53x233xf32, #tpu.memory_space<vmem>>, vector<1x233xf32>,
    %94 = vector.extract_strided_slice %1 {offsets = [2, 11], sizes = [1, 233], strides = [1, 1]} : vector<4x246xf32> to vector<1x233xf32>
    %c46 = arith.constant 46 : index
    %c0_49 = arith.constant 0 : index
    %95 = vector.load %arg13[%c46, %c0_49] : memref<53x233xf32, #tpu.memory_space<vmem>>, vector<1x233xf32>
    tpu.vector_store %arg13[%c46, %c0_49], %94 {strides = array<i32>} : memref<53x233xf32, #tpu.memory_space<vmem>>, vector<1x233xf32>,
    %96 = vector.extract_strided_slice %1 {offsets = [3, 11], sizes = [1, 233], strides = [1, 1]} : vector<4x246xf32> to vector<1x233xf32>
    %c47 = arith.constant 47 : index
    %c0_50 = arith.constant 0 : index
    %97 = vector.load %arg13[%c47, %c0_50] : memref<53x233xf32, #tpu.memory_space<vmem>>, vector<1x233xf32>
    tpu.vector_store %arg13[%c47, %c0_50], %96 {strides = array<i32>} : memref<53x233xf32, #tpu.memory_space<vmem>>, vector<1x233xf32>,
    %98 = vector.extract_strided_slice %1 {offsets = [0, 12], sizes = [1, 233], strides = [1, 1]} : vector<4x246xf32> to vector<1x233xf32>
    %c48 = arith.constant 48 : index
    %c0_51 = arith.constant 0 : index
    %99 = vector.load %arg13[%c48, %c0_51] : memref<53x233xf32, #tpu.memory_space<vmem>>, vector<1x233xf32>
    tpu.vector_store %arg13[%c48, %c0_51], %98 {strides = array<i32>} : memref<53x233xf32, #tpu.memory_space<vmem>>, vector<1x233xf32>,
    %100 = vector.extract_strided_slice %1 {offsets = [1, 12], sizes = [1, 233], strides = [1, 1]} : vector<4x246xf32> to vector<1x233xf32>
    %c49 = arith.constant 49 : index
    %c0_52 = arith.constant 0 : index
    %101 = vector.load %arg13[%c49, %c0_52] : memref<53x233xf32, #tpu.memory_space<vmem>>, vector<1x233xf32>
    tpu.vector_store %arg13[%c49, %c0_52], %100 {strides = array<i32>} : memref<53x233xf32, #tpu.memory_space<vmem>>, vector<1x233xf32>,
    %102 = vector.extract_strided_slice %1 {offsets = [2, 12], sizes = [1, 233], strides = [1, 1]} : vector<4x246xf32> to vector<1x233xf32>
    %c50 = arith.constant 50 : index
    %c0_53 = arith.constant 0 : index
    %103 = vector.load %arg13[%c50, %c0_53] : memref<53x233xf32, #tpu.memory_space<vmem>>, vector<1x233xf32>
    tpu.vector_store %arg13[%c50, %c0_53], %102 {strides = array<i32>} : memref<53x233xf32, #tpu.memory_space<vmem>>, vector<1x233xf32>,
    %104 = vector.extract_strided_slice %1 {offsets = [3, 12], sizes = [1, 233], strides = [1, 1]} : vector<4x246xf32> to vector<1x233xf32>
    %c51 = arith.constant 51 : index
    %c0_54 = arith.constant 0 : index
    %105 = vector.load %arg13[%c51, %c0_54] : memref<53x233xf32, #tpu.memory_space<vmem>>, vector<1x233xf32>
    tpu.vector_store %arg13[%c51, %c0_54], %104 {strides = array<i32>} : memref<53x233xf32, #tpu.memory_space<vmem>>, vector<1x233xf32>,
    %106 = vector.extract_strided_slice %1 {offsets = [0, 13], sizes = [1, 233], strides = [1, 1]} : vector<4x246xf32> to vector<1x233xf32>
    %c52 = arith.constant 52 : index
    %c0_55 = arith.constant 0 : index
    %107 = vector.load %arg13[%c52, %c0_55] : memref<53x233xf32, #tpu.memory_space<vmem>>, vector<1x233xf32>
    tpu.vector_store %arg13[%c52, %c0_55], %106 {strides = array<i32>} : memref<53x233xf32, #tpu.memory_space<vmem>>, vector<1x233xf32>,
    %c0_56 = arith.constant 0 : index
    %c0_57 = arith.constant 0 : index
    %108 = vector.load %arg2[%c0_56, %c0_57] : memref<6x50xbf16, #tpu.memory_space<vmem>>, vector<6x50xbf16>
    %c0_58 = arith.constant 0 : index
    %c0_59 = arith.constant 0 : index
    %109 = vector.load %arg3[%c0_58, %c0_59] : memref<6x1xf32, #tpu.memory_space<vmem>>, vector<6x1xf32>
    %c0_60 = arith.constant 0 : index
    %c0_61 = arith.constant 0 : index
    %110 = vector.load %arg13[%c0_60, %c0_61] : memref<53x233xf32, #tpu.memory_space<vmem>>, vector<50x233xf32>
    %111 = arith.truncf %110 : vector<50x233xf32> to vector<50x233xbf16>
    %cst = arith.constant dense<0.000000e+00> : vector<6x233xf32>
    %112 = tpu.matmul %108, %111, %cst {dimension_numbers = #tpu.dot_dimension_numbers<[1], [0], [0], [1], [0, 0, 1, 1], [], []>} : vector<6x50xbf16>, vector<50x233xbf16>, vector<6x233xf32> -> vector<6x233xf32>
    %c1_62 = arith.constant 1 : index
    %c0_63 = arith.constant 0 : index
    %113 = vector.load %arg13[%c1_62, %c0_63] : memref<53x233xf32, #tpu.memory_space<vmem>>, vector<50x233xf32>
    %114 = arith.truncf %113 : vector<50x233xf32> to vector<50x233xbf16>
    %cst_64 = arith.constant dense<0.000000e+00> : vector<6x233xf32>
    %115 = tpu.matmul %108, %114, %cst_64 {dimension_numbers = #tpu.dot_dimension_numbers<[1], [0], [0], [1], [0, 0, 1, 1], [], []>} : vector<6x50xbf16>, vector<50x233xbf16>, vector<6x233xf32> -> vector<6x233xf32>
    %c2_65 = arith.constant 2 : index
    %c0_66 = arith.constant 0 : index
    %116 = vector.load %arg13[%c2_65, %c0_66] : memref<53x233xf32, #tpu.memory_space<vmem>>, vector<50x233xf32>
    %117 = arith.truncf %116 : vector<50x233xf32> to vector<50x233xbf16>
    %cst_67 = arith.constant dense<0.000000e+00> : vector<6x233xf32>
    %118 = tpu.matmul %108, %117, %cst_67 {dimension_numbers = #tpu.dot_dimension_numbers<[1], [0], [0], [1], [0, 0, 1, 1], [], []>} : vector<6x50xbf16>, vector<50x233xbf16>, vector<6x233xf32> -> vector<6x233xf32>
    %c3_68 = arith.constant 3 : index
    %c0_69 = arith.constant 0 : index
    %119 = vector.load %arg13[%c3_68, %c0_69] : memref<53x233xf32, #tpu.memory_space<vmem>>, vector<50x233xf32>
    %120 = arith.truncf %119 : vector<50x233xf32> to vector<50x233xbf16>
    %cst_70 = arith.constant dense<0.000000e+00> : vector<6x233xf32>
    %121 = tpu.matmul %108, %120, %cst_70 {dimension_numbers = #tpu.dot_dimension_numbers<[1], [0], [0], [1], [0, 0, 1, 1], [], []>} : vector<6x50xbf16>, vector<50x233xbf16>, vector<6x233xf32> -> vector<6x233xf32>
    %122 = arith.maximumf %112, %115 : vector<6x233xf32>
    %123 = vector.broadcast %109 : vector<6x1xf32> to vector<6x233xf32>
    %124 = arith.addf %122, %123 : vector<6x233xf32>
    %cst_71 = arith.constant 0.000000e+00 : f32
    %125 = vector.broadcast %cst_71 : f32 to vector<6x233xf32>
    %126 = arith.maximumf %124, %125 : vector<6x233xf32>
    %127 = arith.maximumf %118, %121 : vector<6x233xf32>
    %128 = vector.broadcast %109 : vector<6x1xf32> to vector<6x233xf32>
    %129 = arith.addf %127, %128 : vector<6x233xf32>
    %cst_72 = arith.constant 0.000000e+00 : f32
    %130 = vector.broadcast %cst_72 : f32 to vector<6x233xf32>
    %131 = arith.maximumf %129, %130 : vector<6x233xf32>
    %132 = vector.extract_strided_slice %126 {offsets = [0, 0], sizes = [6, 231], strides = [1, 1]} : vector<6x233xf32> to vector<6x231xf32>
    %c0_73 = arith.constant 0 : index
    %c0_74 = arith.constant 0 : index
    %133 = vector.load %arg14[%c0_73, %c0_74] : memref<36x231xf32, #tpu.memory_space<vmem>>, vector<6x231xf32>
    tpu.vector_store %arg14[%c0_73, %c0_74], %132 {strides = array<i32>} : memref<36x231xf32, #tpu.memory_space<vmem>>, vector<6x231xf32>,
    %134 = vector.extract_strided_slice %131 {offsets = [0, 0], sizes = [6, 231], strides = [1, 1]} : vector<6x233xf32> to vector<6x231xf32>
    %c6_75 = arith.constant 6 : index
    %c0_76 = arith.constant 0 : index
    %135 = vector.load %arg14[%c6_75, %c0_76] : memref<36x231xf32, #tpu.memory_space<vmem>>, vector<6x231xf32>
    tpu.vector_store %arg14[%c6_75, %c0_76], %134 {strides = array<i32>} : memref<36x231xf32, #tpu.memory_space<vmem>>, vector<6x231xf32>,
    %136 = vector.extract_strided_slice %126 {offsets = [0, 1], sizes = [6, 231], strides = [1, 1]} : vector<6x233xf32> to vector<6x231xf32>
    %c12_77 = arith.constant 12 : index
    %c0_78 = arith.constant 0 : index
    %137 = vector.load %arg14[%c12_77, %c0_78] : memref<36x231xf32, #tpu.memory_space<vmem>>, vector<6x231xf32>
    tpu.vector_store %arg14[%c12_77, %c0_78], %136 {strides = array<i32>} : memref<36x231xf32, #tpu.memory_space<vmem>>, vector<6x231xf32>,
    %138 = vector.extract_strided_slice %131 {offsets = [0, 1], sizes = [6, 231], strides = [1, 1]} : vector<6x233xf32> to vector<6x231xf32>
    %c18_79 = arith.constant 18 : index
    %c0_80 = arith.constant 0 : index
    %139 = vector.load %arg14[%c18_79, %c0_80] : memref<36x231xf32, #tpu.memory_space<vmem>>, vector<6x231xf32>
    tpu.vector_store %arg14[%c18_79, %c0_80], %138 {strides = array<i32>} : memref<36x231xf32, #tpu.memory_space<vmem>>, vector<6x231xf32>,
    %140 = vector.extract_strided_slice %126 {offsets = [0, 2], sizes = [6, 231], strides = [1, 1]} : vector<6x233xf32> to vector<6x231xf32>
    %c24_81 = arith.constant 24 : index
    %c0_82 = arith.constant 0 : index
    %141 = vector.load %arg14[%c24_81, %c0_82] : memref<36x231xf32, #tpu.memory_space<vmem>>, vector<6x231xf32>
    tpu.vector_store %arg14[%c24_81, %c0_82], %140 {strides = array<i32>} : memref<36x231xf32, #tpu.memory_space<vmem>>, vector<6x231xf32>,
    %142 = vector.extract_strided_slice %131 {offsets = [0, 2], sizes = [6, 231], strides = [1, 1]} : vector<6x233xf32> to vector<6x231xf32>
    %c30_83 = arith.constant 30 : index
    %c0_84 = arith.constant 0 : index
    %143 = vector.load %arg14[%c30_83, %c0_84] : memref<36x231xf32, #tpu.memory_space<vmem>>, vector<6x231xf32>
    tpu.vector_store %arg14[%c30_83, %c0_84], %142 {strides = array<i32>} : memref<36x231xf32, #tpu.memory_space<vmem>>, vector<6x231xf32>,
    %c0_85 = arith.constant 0 : index
    %c0_86 = arith.constant 0 : index
    %144 = vector.load %arg4[%c0_85, %c0_86] : memref<16x30xbf16, #tpu.memory_space<vmem>>, vector<16x30xbf16>
    %c0_87 = arith.constant 0 : index
    %c0_88 = arith.constant 0 : index
    %145 = vector.load %arg5[%c0_87, %c0_88] : memref<16x1xf32, #tpu.memory_space<vmem>>, vector<16x1xf32>
    %c0_89 = arith.constant 0 : index
    %c0_90 = arith.constant 0 : index
    %146 = vector.load %arg14[%c0_89, %c0_90] : memref<36x231xf32, #tpu.memory_space<vmem>>, vector<30x231xf32>
    %147 = arith.truncf %146 : vector<30x231xf32> to vector<30x231xbf16>
    %cst_91 = arith.constant dense<0.000000e+00> : vector<16x231xf32>
    %148 = tpu.matmul %144, %147, %cst_91 {dimension_numbers = #tpu.dot_dimension_numbers<[1], [0], [0], [1], [0, 0, 1, 1], [], []>} : vector<16x30xbf16>, vector<30x231xbf16>, vector<16x231xf32> -> vector<16x231xf32>
    %c6_92 = arith.constant 6 : index
    %c0_93 = arith.constant 0 : index
    %149 = vector.load %arg14[%c6_92, %c0_93] : memref<36x231xf32, #tpu.memory_space<vmem>>, vector<30x231xf32>
    %150 = arith.truncf %149 : vector<30x231xf32> to vector<30x231xbf16>
    %cst_94 = arith.constant dense<0.000000e+00> : vector<16x231xf32>
    %151 = tpu.matmul %144, %150, %cst_94 {dimension_numbers = #tpu.dot_dimension_numbers<[1], [0], [0], [1], [0, 0, 1, 1], [], []>} : vector<16x30xbf16>, vector<30x231xbf16>, vector<16x231xf32> -> vector<16x231xf32>
    %152 = arith.maximumf %148, %151 : vector<16x231xf32>
    %153 = vector.broadcast %145 : vector<16x1xf32> to vector<16x231xf32>
    %154 = arith.addf %152, %153 : vector<16x231xf32>
    %cst_95 = arith.constant 0.000000e+00 : f32
    %155 = vector.broadcast %cst_95 : f32 to vector<16x231xf32>
    %156 = arith.maximumf %154, %155 : vector<16x231xf32>
    %c0_96 = arith.constant 0 : index
    %c0_97 = arith.constant 0 : index
    %157 = vector.load %arg7[%c0_96, %c0_97] : memref<1x120xf32, #tpu.memory_space<vmem>>, vector<1x120xf32>
    %158 = vector.extract_strided_slice %156 {offsets = [0, 0], sizes = [1, 231], strides = [1, 1]} : vector<16x231xf32> to vector<1x231xf32>
    %159 = arith.truncf %158 : vector<1x231xf32> to vector<1x231xbf16>
    %c0_98 = arith.constant 0 : index
    %c0_99 = arith.constant 0 : index
    %c0_100 = arith.constant 0 : index
    %160 = vector.load %arg6[%c0_98, %c0_99, %c0_100] : memref<16x231x120xbf16, #tpu.memory_space<vmem>>, vector<1x231x120xbf16>
    %161 = vector.shape_cast %160 : vector<1x231x120xbf16> to vector<231x120xbf16>
    %cst_101 = arith.constant dense<0.000000e+00> : vector<1x120xf32>
    %162 = tpu.matmul %159, %161, %cst_101 {dimension_numbers = #tpu.dot_dimension_numbers<[1], [0], [0], [1], [0, 0, 1, 1], [], []>} : vector<1x231xbf16>, vector<231x120xbf16>, vector<1x120xf32> -> vector<1x120xf32>
    %163 = arith.addf %157, %162 : vector<1x120xf32>
    %164 = vector.extract_strided_slice %156 {offsets = [1, 0], sizes = [1, 231], strides = [1, 1]} : vector<16x231xf32> to vector<1x231xf32>
    %165 = arith.truncf %164 : vector<1x231xf32> to vector<1x231xbf16>
    %c1_102 = arith.constant 1 : index
    %c0_103 = arith.constant 0 : index
    %c0_104 = arith.constant 0 : index
    %166 = vector.load %arg6[%c1_102, %c0_103, %c0_104] : memref<16x231x120xbf16, #tpu.memory_space<vmem>>, vector<1x231x120xbf16>
    %167 = vector.shape_cast %166 : vector<1x231x120xbf16> to vector<231x120xbf16>
    %cst_105 = arith.constant dense<0.000000e+00> : vector<1x120xf32>
    %168 = tpu.matmul %165, %167, %cst_105 {dimension_numbers = #tpu.dot_dimension_numbers<[1], [0], [0], [1], [0, 0, 1, 1], [], []>} : vector<1x231xbf16>, vector<231x120xbf16>, vector<1x120xf32> -> vector<1x120xf32>
    %169 = arith.addf %163, %168 : vector<1x120xf32>
    %170 = vector.extract_strided_slice %156 {offsets = [2, 0], sizes = [1, 231], strides = [1, 1]} : vector<16x231xf32> to vector<1x231xf32>
    %171 = arith.truncf %170 : vector<1x231xf32> to vector<1x231xbf16>
    %c2_106 = arith.constant 2 : index
    %c0_107 = arith.constant 0 : index
    %c0_108 = arith.constant 0 : index
    %172 = vector.load %arg6[%c2_106, %c0_107, %c0_108] : memref<16x231x120xbf16, #tpu.memory_space<vmem>>, vector<1x231x120xbf16>
    %173 = vector.shape_cast %172 : vector<1x231x120xbf16> to vector<231x120xbf16>
    %cst_109 = arith.constant dense<0.000000e+00> : vector<1x120xf32>
    %174 = tpu.matmul %171, %173, %cst_109 {dimension_numbers = #tpu.dot_dimension_numbers<[1], [0], [0], [1], [0, 0, 1, 1], [], []>} : vector<1x231xbf16>, vector<231x120xbf16>, vector<1x120xf32> -> vector<1x120xf32>
    %175 = arith.addf %169, %174 : vector<1x120xf32>
    %176 = vector.extract_strided_slice %156 {offsets = [3, 0], sizes = [1, 231], strides = [1, 1]} : vector<16x231xf32> to vector<1x231xf32>
    %177 = arith.truncf %176 : vector<1x231xf32> to vector<1x231xbf16>
    %c3_110 = arith.constant 3 : index
    %c0_111 = arith.constant 0 : index
    %c0_112 = arith.constant 0 : index
    %178 = vector.load %arg6[%c3_110, %c0_111, %c0_112] : memref<16x231x120xbf16, #tpu.memory_space<vmem>>, vector<1x231x120xbf16>
    %179 = vector.shape_cast %178 : vector<1x231x120xbf16> to vector<231x120xbf16>
    %cst_113 = arith.constant dense<0.000000e+00> : vector<1x120xf32>
    %180 = tpu.matmul %177, %179, %cst_113 {dimension_numbers = #tpu.dot_dimension_numbers<[1], [0], [0], [1], [0, 0, 1, 1], [], []>} : vector<1x231xbf16>, vector<231x120xbf16>, vector<1x120xf32> -> vector<1x120xf32>
    %181 = arith.addf %175, %180 : vector<1x120xf32>
    %182 = vector.extract_strided_slice %156 {offsets = [4, 0], sizes = [1, 231], strides = [1, 1]} : vector<16x231xf32> to vector<1x231xf32>
    %183 = arith.truncf %182 : vector<1x231xf32> to vector<1x231xbf16>
    %c4_114 = arith.constant 4 : index
    %c0_115 = arith.constant 0 : index
    %c0_116 = arith.constant 0 : index
    %184 = vector.load %arg6[%c4_114, %c0_115, %c0_116] : memref<16x231x120xbf16, #tpu.memory_space<vmem>>, vector<1x231x120xbf16>
    %185 = vector.shape_cast %184 : vector<1x231x120xbf16> to vector<231x120xbf16>
    %cst_117 = arith.constant dense<0.000000e+00> : vector<1x120xf32>
    %186 = tpu.matmul %183, %185, %cst_117 {dimension_numbers = #tpu.dot_dimension_numbers<[1], [0], [0], [1], [0, 0, 1, 1], [], []>} : vector<1x231xbf16>, vector<231x120xbf16>, vector<1x120xf32> -> vector<1x120xf32>
    %187 = arith.addf %181, %186 : vector<1x120xf32>
    %188 = vector.extract_strided_slice %156 {offsets = [5, 0], sizes = [1, 231], strides = [1, 1]} : vector<16x231xf32> to vector<1x231xf32>
    %189 = arith.truncf %188 : vector<1x231xf32> to vector<1x231xbf16>
    %c5_118 = arith.constant 5 : index
    %c0_119 = arith.constant 0 : index
    %c0_120 = arith.constant 0 : index
    %190 = vector.load %arg6[%c5_118, %c0_119, %c0_120] : memref<16x231x120xbf16, #tpu.memory_space<vmem>>, vector<1x231x120xbf16>
    %191 = vector.shape_cast %190 : vector<1x231x120xbf16> to vector<231x120xbf16>
    %cst_121 = arith.constant dense<0.000000e+00> : vector<1x120xf32>
    %192 = tpu.matmul %189, %191, %cst_121 {dimension_numbers = #tpu.dot_dimension_numbers<[1], [0], [0], [1], [0, 0, 1, 1], [], []>} : vector<1x231xbf16>, vector<231x120xbf16>, vector<1x120xf32> -> vector<1x120xf32>
    %193 = arith.addf %187, %192 : vector<1x120xf32>
    %194 = vector.extract_strided_slice %156 {offsets = [6, 0], sizes = [1, 231], strides = [1, 1]} : vector<16x231xf32> to vector<1x231xf32>
    %195 = arith.truncf %194 : vector<1x231xf32> to vector<1x231xbf16>
    %c6_122 = arith.constant 6 : index
    %c0_123 = arith.constant 0 : index
    %c0_124 = arith.constant 0 : index
    %196 = vector.load %arg6[%c6_122, %c0_123, %c0_124] : memref<16x231x120xbf16, #tpu.memory_space<vmem>>, vector<1x231x120xbf16>
    %197 = vector.shape_cast %196 : vector<1x231x120xbf16> to vector<231x120xbf16>
    %cst_125 = arith.constant dense<0.000000e+00> : vector<1x120xf32>
    %198 = tpu.matmul %195, %197, %cst_125 {dimension_numbers = #tpu.dot_dimension_numbers<[1], [0], [0], [1], [0, 0, 1, 1], [], []>} : vector<1x231xbf16>, vector<231x120xbf16>, vector<1x120xf32> -> vector<1x120xf32>
    %199 = arith.addf %193, %198 : vector<1x120xf32>
    %200 = vector.extract_strided_slice %156 {offsets = [7, 0], sizes = [1, 231], strides = [1, 1]} : vector<16x231xf32> to vector<1x231xf32>
    %201 = arith.truncf %200 : vector<1x231xf32> to vector<1x231xbf16>
    %c7_126 = arith.constant 7 : index
    %c0_127 = arith.constant 0 : index
    %c0_128 = arith.constant 0 : index
    %202 = vector.load %arg6[%c7_126, %c0_127, %c0_128] : memref<16x231x120xbf16, #tpu.memory_space<vmem>>, vector<1x231x120xbf16>
    %203 = vector.shape_cast %202 : vector<1x231x120xbf16> to vector<231x120xbf16>
    %cst_129 = arith.constant dense<0.000000e+00> : vector<1x120xf32>
    %204 = tpu.matmul %201, %203, %cst_129 {dimension_numbers = #tpu.dot_dimension_numbers<[1], [0], [0], [1], [0, 0, 1, 1], [], []>} : vector<1x231xbf16>, vector<231x120xbf16>, vector<1x120xf32> -> vector<1x120xf32>
    %205 = arith.addf %199, %204 : vector<1x120xf32>
    %206 = vector.extract_strided_slice %156 {offsets = [8, 0], sizes = [1, 231], strides = [1, 1]} : vector<16x231xf32> to vector<1x231xf32>
    %207 = arith.truncf %206 : vector<1x231xf32> to vector<1x231xbf16>
    %c8_130 = arith.constant 8 : index
    %c0_131 = arith.constant 0 : index
    %c0_132 = arith.constant 0 : index
    %208 = vector.load %arg6[%c8_130, %c0_131, %c0_132] : memref<16x231x120xbf16, #tpu.memory_space<vmem>>, vector<1x231x120xbf16>
    %209 = vector.shape_cast %208 : vector<1x231x120xbf16> to vector<231x120xbf16>
    %cst_133 = arith.constant dense<0.000000e+00> : vector<1x120xf32>
    %210 = tpu.matmul %207, %209, %cst_133 {dimension_numbers = #tpu.dot_dimension_numbers<[1], [0], [0], [1], [0, 0, 1, 1], [], []>} : vector<1x231xbf16>, vector<231x120xbf16>, vector<1x120xf32> -> vector<1x120xf32>
    %211 = arith.addf %205, %210 : vector<1x120xf32>
    %212 = vector.extract_strided_slice %156 {offsets = [9, 0], sizes = [1, 231], strides = [1, 1]} : vector<16x231xf32> to vector<1x231xf32>
    %213 = arith.truncf %212 : vector<1x231xf32> to vector<1x231xbf16>
    %c9_134 = arith.constant 9 : index
    %c0_135 = arith.constant 0 : index
    %c0_136 = arith.constant 0 : index
    %214 = vector.load %arg6[%c9_134, %c0_135, %c0_136] : memref<16x231x120xbf16, #tpu.memory_space<vmem>>, vector<1x231x120xbf16>
    %215 = vector.shape_cast %214 : vector<1x231x120xbf16> to vector<231x120xbf16>
    %cst_137 = arith.constant dense<0.000000e+00> : vector<1x120xf32>
    %216 = tpu.matmul %213, %215, %cst_137 {dimension_numbers = #tpu.dot_dimension_numbers<[1], [0], [0], [1], [0, 0, 1, 1], [], []>} : vector<1x231xbf16>, vector<231x120xbf16>, vector<1x120xf32> -> vector<1x120xf32>
    %217 = arith.addf %211, %216 : vector<1x120xf32>
    %218 = vector.extract_strided_slice %156 {offsets = [10, 0], sizes = [1, 231], strides = [1, 1]} : vector<16x231xf32> to vector<1x231xf32>
    %219 = arith.truncf %218 : vector<1x231xf32> to vector<1x231xbf16>
    %c10_138 = arith.constant 10 : index
    %c0_139 = arith.constant 0 : index
    %c0_140 = arith.constant 0 : index
    %220 = vector.load %arg6[%c10_138, %c0_139, %c0_140] : memref<16x231x120xbf16, #tpu.memory_space<vmem>>, vector<1x231x120xbf16>
    %221 = vector.shape_cast %220 : vector<1x231x120xbf16> to vector<231x120xbf16>
    %cst_141 = arith.constant dense<0.000000e+00> : vector<1x120xf32>
    %222 = tpu.matmul %219, %221, %cst_141 {dimension_numbers = #tpu.dot_dimension_numbers<[1], [0], [0], [1], [0, 0, 1, 1], [], []>} : vector<1x231xbf16>, vector<231x120xbf16>, vector<1x120xf32> -> vector<1x120xf32>
    %223 = arith.addf %217, %222 : vector<1x120xf32>
    %224 = vector.extract_strided_slice %156 {offsets = [11, 0], sizes = [1, 231], strides = [1, 1]} : vector<16x231xf32> to vector<1x231xf32>
    %225 = arith.truncf %224 : vector<1x231xf32> to vector<1x231xbf16>
    %c11_142 = arith.constant 11 : index
    %c0_143 = arith.constant 0 : index
    %c0_144 = arith.constant 0 : index
    %226 = vector.load %arg6[%c11_142, %c0_143, %c0_144] : memref<16x231x120xbf16, #tpu.memory_space<vmem>>, vector<1x231x120xbf16>
    %227 = vector.shape_cast %226 : vector<1x231x120xbf16> to vector<231x120xbf16>
    %cst_145 = arith.constant dense<0.000000e+00> : vector<1x120xf32>
    %228 = tpu.matmul %225, %227, %cst_145 {dimension_numbers = #tpu.dot_dimension_numbers<[1], [0], [0], [1], [0, 0, 1, 1], [], []>} : vector<1x231xbf16>, vector<231x120xbf16>, vector<1x120xf32> -> vector<1x120xf32>
    %229 = arith.addf %223, %228 : vector<1x120xf32>
    %230 = vector.extract_strided_slice %156 {offsets = [12, 0], sizes = [1, 231], strides = [1, 1]} : vector<16x231xf32> to vector<1x231xf32>
    %231 = arith.truncf %230 : vector<1x231xf32> to vector<1x231xbf16>
    %c12_146 = arith.constant 12 : index
    %c0_147 = arith.constant 0 : index
    %c0_148 = arith.constant 0 : index
    %232 = vector.load %arg6[%c12_146, %c0_147, %c0_148] : memref<16x231x120xbf16, #tpu.memory_space<vmem>>, vector<1x231x120xbf16>
    %233 = vector.shape_cast %232 : vector<1x231x120xbf16> to vector<231x120xbf16>
    %cst_149 = arith.constant dense<0.000000e+00> : vector<1x120xf32>
    %234 = tpu.matmul %231, %233, %cst_149 {dimension_numbers = #tpu.dot_dimension_numbers<[1], [0], [0], [1], [0, 0, 1, 1], [], []>} : vector<1x231xbf16>, vector<231x120xbf16>, vector<1x120xf32> -> vector<1x120xf32>
    %235 = arith.addf %229, %234 : vector<1x120xf32>
    %236 = vector.extract_strided_slice %156 {offsets = [13, 0], sizes = [1, 231], strides = [1, 1]} : vector<16x231xf32> to vector<1x231xf32>
    %237 = arith.truncf %236 : vector<1x231xf32> to vector<1x231xbf16>
    %c13_150 = arith.constant 13 : index
    %c0_151 = arith.constant 0 : index
    %c0_152 = arith.constant 0 : index
    %238 = vector.load %arg6[%c13_150, %c0_151, %c0_152] : memref<16x231x120xbf16, #tpu.memory_space<vmem>>, vector<1x231x120xbf16>
    %239 = vector.shape_cast %238 : vector<1x231x120xbf16> to vector<231x120xbf16>
    %cst_153 = arith.constant dense<0.000000e+00> : vector<1x120xf32>
    %240 = tpu.matmul %237, %239, %cst_153 {dimension_numbers = #tpu.dot_dimension_numbers<[1], [0], [0], [1], [0, 0, 1, 1], [], []>} : vector<1x231xbf16>, vector<231x120xbf16>, vector<1x120xf32> -> vector<1x120xf32>
    %241 = arith.addf %235, %240 : vector<1x120xf32>
    %242 = vector.extract_strided_slice %156 {offsets = [14, 0], sizes = [1, 231], strides = [1, 1]} : vector<16x231xf32> to vector<1x231xf32>
    %243 = arith.truncf %242 : vector<1x231xf32> to vector<1x231xbf16>
    %c14_154 = arith.constant 14 : index
    %c0_155 = arith.constant 0 : index
    %c0_156 = arith.constant 0 : index
    %244 = vector.load %arg6[%c14_154, %c0_155, %c0_156] : memref<16x231x120xbf16, #tpu.memory_space<vmem>>, vector<1x231x120xbf16>
    %245 = vector.shape_cast %244 : vector<1x231x120xbf16> to vector<231x120xbf16>
    %cst_157 = arith.constant dense<0.000000e+00> : vector<1x120xf32>
    %246 = tpu.matmul %243, %245, %cst_157 {dimension_numbers = #tpu.dot_dimension_numbers<[1], [0], [0], [1], [0, 0, 1, 1], [], []>} : vector<1x231xbf16>, vector<231x120xbf16>, vector<1x120xf32> -> vector<1x120xf32>
    %247 = arith.addf %241, %246 : vector<1x120xf32>
    %248 = vector.extract_strided_slice %156 {offsets = [15, 0], sizes = [1, 231], strides = [1, 1]} : vector<16x231xf32> to vector<1x231xf32>
    %249 = arith.truncf %248 : vector<1x231xf32> to vector<1x231xbf16>
    %c15_158 = arith.constant 15 : index
    %c0_159 = arith.constant 0 : index
    %c0_160 = arith.constant 0 : index
    %250 = vector.load %arg6[%c15_158, %c0_159, %c0_160] : memref<16x231x120xbf16, #tpu.memory_space<vmem>>, vector<1x231x120xbf16>
    %251 = vector.shape_cast %250 : vector<1x231x120xbf16> to vector<231x120xbf16>
    %cst_161 = arith.constant dense<0.000000e+00> : vector<1x120xf32>
    %252 = tpu.matmul %249, %251, %cst_161 {dimension_numbers = #tpu.dot_dimension_numbers<[1], [0], [0], [1], [0, 0, 1, 1], [], []>} : vector<1x231xbf16>, vector<231x120xbf16>, vector<1x120xf32> -> vector<1x120xf32>
    %253 = arith.addf %247, %252 : vector<1x120xf32>
    %cst_162 = arith.constant 0.000000e+00 : f32
    %254 = vector.broadcast %cst_162 : f32 to vector<1x120xf32>
    %255 = arith.maximumf %253, %254 : vector<1x120xf32>
    %256 = arith.truncf %255 : vector<1x120xf32> to vector<1x120xbf16>
    %c0_163 = arith.constant 0 : index
    %c0_164 = arith.constant 0 : index
    %257 = vector.load %arg8[%c0_163, %c0_164] : memref<120x84xbf16, #tpu.memory_space<vmem>>, vector<120x84xbf16>
    %cst_165 = arith.constant dense<0.000000e+00> : vector<1x84xf32>
    %258 = tpu.matmul %256, %257, %cst_165 {dimension_numbers = #tpu.dot_dimension_numbers<[1], [0], [0], [1], [0, 0, 1, 1], [], []>} : vector<1x120xbf16>, vector<120x84xbf16>, vector<1x84xf32> -> vector<1x84xf32>
    %c0_166 = arith.constant 0 : index
    %c0_167 = arith.constant 0 : index
    %259 = vector.load %arg9[%c0_166, %c0_167] : memref<1x84xf32, #tpu.memory_space<vmem>>, vector<1x84xf32>
    %260 = arith.addf %258, %259 : vector<1x84xf32>
    %cst_168 = arith.constant 0.000000e+00 : f32
    %261 = vector.broadcast %cst_168 : f32 to vector<1x84xf32>
    %262 = arith.maximumf %260, %261 : vector<1x84xf32>
    %263 = arith.truncf %262 : vector<1x84xf32> to vector<1x84xbf16>
    %c0_169 = arith.constant 0 : index
    %c0_170 = arith.constant 0 : index
    %264 = vector.load %arg10[%c0_169, %c0_170] : memref<84x10xbf16, #tpu.memory_space<vmem>>, vector<84x10xbf16>
    %cst_171 = arith.constant dense<0.000000e+00> : vector<1x10xf32>
    %265 = tpu.matmul %263, %264, %cst_171 {dimension_numbers = #tpu.dot_dimension_numbers<[1], [0], [0], [1], [0, 0, 1, 1], [], []>} : vector<1x84xbf16>, vector<84x10xbf16>, vector<1x10xf32> -> vector<1x10xf32>
    %c0_172 = arith.constant 0 : index
    %c0_173 = arith.constant 0 : index
    %266 = vector.load %arg11[%c0_172, %c0_173] : memref<1x10xf32, #tpu.memory_space<vmem>>, vector<1x10xf32>
    %267 = arith.addf %265, %266 : vector<1x10xf32>
    %c0_174 = arith.constant 0 : index
    %c0_175 = arith.constant 0 : index
    %c0_176 = arith.constant 0 : index
    %268 = vector.load %arg12[%c0_174, %c0_175, %c0_176] : memref<1x1x10xf32, #tpu.memory_space<vmem>>, vector<1x1x10xf32>
    %269 = vector.shape_cast %268 : vector<1x1x10xf32> to vector<1x10xf32>
    %270 = vector.shape_cast %267 : vector<1x10xf32> to vector<1x1x10xf32>
    tpu.vector_store %arg12[%c0_174, %c0_175, %c0_176], %270 {strides = array<i32>} : memref<1x1x10xf32, #tpu.memory_space<vmem>>, vector<1x1x10xf32>,
    return
  }
  func.func @transform_0(%arg0: i32) -> (i32, i32, i32) {
    %c0_i32 = arith.constant 0 : i32
    %c0_i32_0 = arith.constant 0 : i32
    %c0_i32_1 = arith.constant 0 : i32
    return %arg0, %c0_i32, %c0_i32_0 : i32, i32, i32
  }
  func.func @transform_1(%arg0: i32) -> (i32, i32) {
    %c0_i32 = arith.constant 0 : i32
    %c0_i32_0 = arith.constant 0 : i32
    %c0_i32_1 = arith.constant 0 : i32
    return %c0_i32, %c0_i32_0 : i32, i32
  }
  func.func @transform_2(%arg0: i32) -> (i32, i32) {
    %c0_i32 = arith.constant 0 : i32
    %c0_i32_0 = arith.constant 0 : i32
    %c0_i32_1 = arith.constant 0 : i32
    return %c0_i32, %c0_i32_0 : i32, i32
  }
  func.func @transform_3(%arg0: i32) -> (i32, i32) {
    %c0_i32 = arith.constant 0 : i32
    %c0_i32_0 = arith.constant 0 : i32
    %c0_i32_1 = arith.constant 0 : i32
    return %c0_i32, %c0_i32_0 : i32, i32
  }
  func.func @transform_4(%arg0: i32) -> (i32, i32) {
    %c0_i32 = arith.constant 0 : i32
    %c0_i32_0 = arith.constant 0 : i32
    %c0_i32_1 = arith.constant 0 : i32
    return %c0_i32, %c0_i32_0 : i32, i32
  }
  func.func @transform_5(%arg0: i32) -> (i32, i32, i32) {
    %c0_i32 = arith.constant 0 : i32
    %c0_i32_0 = arith.constant 0 : i32
    %c0_i32_1 = arith.constant 0 : i32
    %c0_i32_2 = arith.constant 0 : i32
    return %c0_i32, %c0_i32_0, %c0_i32_1 : i32, i32, i32
  }
  func.func @transform_6(%arg0: i32) -> (i32, i32) {
    %c0_i32 = arith.constant 0 : i32
    %c0_i32_0 = arith.constant 0 : i32
    %c0_i32_1 = arith.constant 0 : i32
    return %c0_i32, %c0_i32_0 : i32, i32
  }
  func.func @transform_7(%arg0: i32) -> (i32, i32) {
    %c0_i32 = arith.constant 0 : i32
    %c0_i32_0 = arith.constant 0 : i32
    %c0_i32_1 = arith.constant 0 : i32
    return %c0_i32, %c0_i32_0 : i32, i32
  }
  func.func @transform_8(%arg0: i32) -> (i32, i32) {
    %c0_i32 = arith.constant 0 : i32
    %c0_i32_0 = arith.constant 0 : i32
    %c0_i32_1 = arith.constant 0 : i32
    return %c0_i32, %c0_i32_0 : i32, i32
  }
  func.func @transform_9(%arg0: i32) -> (i32, i32) {
    %c0_i32 = arith.constant 0 : i32
    %c0_i32_0 = arith.constant 0 : i32
    %c0_i32_1 = arith.constant 0 : i32
    return %c0_i32, %c0_i32_0 : i32, i32
  }
  func.func @transform_10(%arg0: i32) -> (i32, i32) {
    %c0_i32 = arith.constant 0 : i32
    %c0_i32_0 = arith.constant 0 : i32
    %c0_i32_1 = arith.constant 0 : i32
    return %c0_i32, %c0_i32_0 : i32, i32
  }
  func.func @transform_11(%arg0: i32) -> (i32, i32, i32) {
    %c0_i32 = arith.constant 0 : i32
    %c0_i32_0 = arith.constant 0 : i32
    %c0_i32_1 = arith.constant 0 : i32
    return %arg0, %c0_i32, %c0_i32_0 : i32, i32, i32
  }
}

</mosaic_0001>

<bundles_post_ra>
// kernel: lenet5_forward.1
= control target key start
LH: loop header
LB: loop body
LE: loop exit
PB: predicated region body
PF: predicated region fallthrough
CT: control target
= control target key end

     0   :  { %16 = vsyncpa [#allocation5], 0  ;;  %s7320_s0 = inlined_call_operand.vmem [shape: f32[2,4,246], index: 0, kind: input, shape index: {}]   ;;  %s7321_s1 = inlined_call_operand.vmem [shape: bf16[6,50], index: 1, kind: input, shape index: {}]   ;;  %s7322_s2 = inlined_call_operand.vmem [shape: f32[6,1], index: 2, kind: input, shape index: {}]   ;;  %s7323_s3 = inlined_call_operand.vmem [shape: bf16[16,30], index: 3, kind: input, shape index: {}]   ;;  %s7324_s4 = inlined_call_operand.vmem [shape: f32[16,1], index: 4, kind: input, shape index: {}]   ;;  %s7325_s5 = inlined_call_operand.vmem [shape: bf16[16,231,120], index: 5, kind: input, shape index: {}]   ;;  %s7326_s6 = inlined_call_operand.vmem [shape: f32[1,120], index: 6, kind: input, shape index: {}]   ;;  %s7327_s7 = inlined_call_operand.vmem [shape: bf16[120,84], index: 7, kind: input, shape index: {}]   ;;  %s7328_s8 = inlined_call_operand.vmem [shape: f32[1,84], index: 8, kind: input, shape index: {}]   ;;  %s7329_s9 = inlined_call_operand.vmem [shape: bf16[84,10], index: 9, kind: input, shape index: {}]   ;;  %s7330_s10 = inlined_call_operand.vmem [shape: f32[1,10], index: 10, kind: input, shape index: {}]   ;;  %s7331_s11 = inlined_call_operand.hbm [shape: f32[2,1,10], index: 11, kind: output, shape index: {}]  }
   0x1   :  { %18 = vsyncpa [#allocation5 + $0x1], 0  ;;  %s5750_s17 = smov 0   ;;  %s5752_s18 = smov 0  }
   0x2   :  { %s5754_s19 = smov 0   ;;  %s5756_s20 = smov 0  }
   0x3 LB: > { %s5771_s21 = sadd.s32 4294967295, %s5669_s20   ;;  %s4452_s22 = sadd.s32 4294967294, %s5669_s20   ;;  %s5669_s20 = sphi %s5756_s20, %s7339_s20   ;;  %s5665_s19 = sphi %s5754_s19, %s7338_s19   ;;  %s5661_s18 = sphi %s5752_s18, %s7337_s18   ;;  %s5657_s17 = sphi %s5750_s17, %s7336_s17  }
   0x4   : > { %s5775_s23 = sadd.s32 1, %s5669_s20   ;;  %s267_s24 = sadd.s32 1, %s5665_s19 }
   0x5   : > { %s264_s25 = ssub.s32 %s5669_s20, %s5775_s23  ;;  %p277_p0 = scmp.ne.s32.totalorder %s5665_s19, %s5661_s18 }
   0x6   : > { %p265_p1 = scmp.eq.s32.totalorder %s264_s25, 0  ;;  %p278_p2 = scmp.eq.s32.totalorder %s5771_s21, 1 }
   0x7   : > { %p283_p3 = scmp.ne.s32.totalorder %s5661_s18, %s5657_s17  ;;  %p284_p4 = scmp.eq.s32.totalorder %s4452_s22, 1 }
   0x8   : > { %s5786_s26 = scalar_select %p265_p1, %s5665_s19, %s267_s24  }
   0x9   : > { %p5788_p5 = por %p278_p2, %p277_p0  ;;  %p5792_p6 = por %p284_p4, %p283_p3 }
   0xa   : > { %p4455_p7 = scmp.ge.s32.totalorder %s5669_s20, 1  ;;  %p340_p8 = scmp.lt.s32.totalorder %s5669_s20, 3 }
   0xc   : > { %p341_p9 = pnand %p4455_p7, %p340_p8 }
   0xd   : > { %p379_p10 = scmp.lt.s32.totalorder (!%p341_p9), %s5771_s21, 1  ;;  %v397_v0 = vlaneseq (!%p341_p9)  ;;  %v5671_v1 = vmov (!%p341_p9), 1966171168   ;;  %s5672_s15 = smov (!%p341_p9), 127   ;;  %v5684_v13 = vmov (!%p341_p9), 0   ;;  %vm433_vm1 = vcmask (!%p341_p9), 1039360  }
   0xe   : > { %344 = sbr.rel (%p341_p9) target bundleno = 2030 (0x7ee), region = 64  ;;  %v395_v2 = vunpack.c.l.s4 (!%p341_p9), %v5671_v1  ;;  %s5673_s16 = smov (!%p341_p9), 126   ;;  %902 = vmatprep.mubr.bf16.mxu1 (!%p341_p9), %v5684_v13  ;;  %5350 = vset.pattern.permute.xlu1 (!%p341_p9), %v5684_v13  ;;  %vm466_vm2 = vcmask (!%p341_p9), 1031168   ;;  %vm499_vm3 = vcmask (!%p341_p9), 1022976   ;;  %vm532_vm4 = vcmask (!%p341_p9), 1014784  }
   0xf   : > { %v398_v3 = vshrl.u32 (!%p341_p9), %v397_v0, 7  ;;  %vm5805_vm0 = vcmp.lt.s32.totalorder (!%p341_p9), %v397_v0, 233  ;;  %s5674_s22 = smov (!%p341_p9), 125   ;;  %s5675_s24 = smov (!%p341_p9), 124   ;;  %1376 = vmatprep.mubr.bf16.mxu0 (!%p341_p9), %v5684_v13  ;;  %5351 = vset.pattern.permute.xlu0 (!%p341_p9), %v5684_v13  ;;  %v836_v56 = vld [vmem:[%s7322_s2] sm:$0x3f] (!%p341_p9) }
  0x10   : > { %v396_v4 = vunpack.c.0.s8 (!%p341_p9), %v395_v2  ;;  %s5676_s25 = smov (!%p341_p9), 123   ;;  %s5679_s12 = smov (!%p341_p9), 120   ;;  %vm565_vm5 = vcmask (!%p341_p9), 1006592   ;;  %vm598_vm6 = vcmask (!%p341_p9), 998400   ;;  %vm631_vm7 = vcmask (!%p341_p9), 990208  }
  0x11   : > { %s5680_s13 = smov (!%p341_p9), 119   ;;  %vm664_vm8 = vcmask (!%p341_p9), 982016   ;;  %vm697_vm9 = vcmask (!%p341_p9), 973824   ;;  %vm730_vm10 = vcmask (!%p341_p9), 965632   ;;  %vm763_vm11 = vcmask (!%p341_p9), 957440  }
  0x12   : > { %v399_v5 = vsub.s32 (!%p341_p9), %v396_v4, %v398_v3  ;;  %vm796_vm12 = vcmask (!%p341_p9), 949248   ;;  %vm829_vm13 = vcmask (!%p341_p9), 941056   ;;  %vm863_vm14 = vcmask (!%p341_p9), 1040384  }
  0x13   : > { %vm919_vm15 = vsmask.f32 (!%p341_p9), 7424 }
  0x15   : > { %s380_s29 = scalar_select %p379_p10, %s5771_s21, 1 }
  0x17   : > { %s5182_s30 = sshll.u32 %s380_s29, 3  ;;  %s5677_s29 = smov 122  }
  0x18   : > { %s383_s14 = scalar_lea.vmem %s7320_s0, %s5182_s30  ;;  %s5678_s30 = smov 121  }
  0x19   : > { %v4458_v6 = vld.sshfl [vmem:[%s383_s14] sm:$0xff pattern:$0x75316420]  ;;  %s5681_s14 = smov 118  }
  0x1a   : > { %v5803_v7 = vrot.slane %v4458_v6, %v399_v5  ;;  %v408_v8 = vcombine.high %v4458_v6, %v4458_v6 }
  0x1c   : > { %430 = vrot.lane.b32.xlu0 %v5803_v7, %s5672_s15  ;;  %406 = vst.msk [vmem:[#allocation2] ss:$8 sm:$0x3] %vm5805_vm0, %v5803_v7  ;;  %v420_v10 = vcombine.high %v5803_v7, %v5803_v7  ;;  %v415_v11 = vrot.slane %v408_v8, %v399_v5 }
  0x1e   : > { %447 = vrot.lane.b32.xlu1 %v420_v10, %s5672_s15  ;;  %423 = vst.msk [vmem:[#allocation2 + $0x2] ss:$8 sm:$0x3] %vm5805_vm0, %v420_v10  ;;  %418 = vst.msk [vmem:[#allocation2 + $0x1] ss:$8 sm:$0x3] %vm5805_vm0, %v415_v11  ;;  %v425_v12 = vcombine.high %v415_v11, %v415_v11 }
  0x20   : > { %463 = vrot.lane.b32.xlu0 %v5803_v7, %s5673_s16  ;;  %428 = vst.msk [vmem:[#allocation2 + $0x3] ss:$8 sm:$0x3] %vm5805_vm0, %v425_v12 }
  0x22   : > { %472 = vrot.lane.b32.xlu1 %v415_v11, %s5673_s16 }
  0x24   : > { %439 = vrot.lane.b32.xlu0 %v415_v11, %s5672_s15 }
  0x26   : > { %455 = vrot.lane.b32.xlu1 %v425_v12, %s5672_s15 }
  0x28   : > { %480 = vrot.lane.b32.xlu0 %v420_v10, %s5673_s16 }
  0x2a   : > { %488 = vrot.lane.b32.xlu1 %v425_v12, %s5673_s16 }
  0x2c   : > { %496 = vrot.lane.b32.xlu0 %v5803_v7, %s5674_s22 }
  0x2e   : > { %505 = vrot.lane.b32.xlu1 %v415_v11, %s5674_s22 }
  0x30   : > { %513 = vrot.lane.b32.xlu0 %v420_v10, %s5674_s22 }
  0x32   : > { %521 = vrot.lane.b32.xlu1 %v425_v12, %s5674_s22  ;;  %s5682_s22 = smov 117  }
  0x34   : > { %529 = vrot.lane.b32.xlu0 %v5803_v7, %s5675_s24 }
  0x36   : > { %538 = vrot.lane.b32.xlu1 %v415_v11, %s5675_s24 }
  0x38   : > { %546 = vrot.lane.b32.xlu0 %v420_v10, %s5675_s24 }
  0x3a   : > { %554 = vrot.lane.b32.xlu1 %v425_v12, %s5675_s24  ;;  %s5683_s24 = smov 116  }
  0x3c   : > { %562 = vrot.lane.b32.xlu0 %v5803_v7, %s5676_s25 }
  0x3e   : > { %571 = vrot.lane.b32.xlu1 %v415_v11, %s5676_s25 }
  0x40   : > { %579 = vrot.lane.b32.xlu0 %v420_v10, %s5676_s25 }
  0x42   : > { %587 = vrot.lane.b32.xlu1 %v425_v12, %s5676_s25  ;;  %s5685_s25 = smov 115  }
  0x44   : > { %595 = vrot.lane.b32.xlu0 %v5803_v7, %s5677_s29 }
  0x46   : > { %604 = vrot.lane.b32.xlu1 %v415_v11, %s5677_s29 }
  0x48   : > { %612 = vrot.lane.b32.xlu0 %v420_v10, %s5677_s29 }
  0x4a   : > { %620 = vrot.lane.b32.xlu1 %v425_v12, %s5677_s29 }
  0x4c   : > { %628 = vrot.lane.b32.xlu0 %v5803_v7, %s5678_s30 }
  0x4e   : > { %637 = vrot.lane.b32.xlu1 %v415_v11, %s5678_s30 }
  0x50   : > { %645 = vrot.lane.b32.xlu0 %v420_v10, %s5678_s30 }
  0x52   : > { %653 = vrot.lane.b32.xlu1 %v425_v12, %s5678_s30 }
  0x54   : > { %661 = vrot.lane.b32.xlu0 %v5803_v7, %s5679_s12 }
  0x56   : > { %670 = vrot.lane.b32.xlu1 %v415_v11, %s5679_s12 }
  0x58   : > { %678 = vrot.lane.b32.xlu0 %v420_v10, %s5679_s12 }
  0x5a   : > { %686 = vrot.lane.b32.xlu1 %v425_v12, %s5679_s12  ;;  %s377_s12 = sand.u32 1, %s5661_s18  }
  0x5c   : > { %694 = vrot.lane.b32.xlu0 %v5803_v7, %s5680_s13 }
  0x5e   : > { %703 = vrot.lane.b32.xlu1 %v415_v11, %s5680_s13 }
  0x60   : > { %711 = vrot.lane.b32.xlu0 %v420_v10, %s5680_s13 }
  0x62   : > { %719 = vrot.lane.b32.xlu1 %v425_v12, %s5680_s13  ;;  %s5689_s13 = smov [#allocation4]  }
  0x64   : > { %727 = vrot.lane.b32.xlu0 %v5803_v7, %s5681_s14 }
  0x66   : > { %736 = vrot.lane.b32.xlu1 %v415_v11, %s5681_s14 }
  0x68   : > { %744 = vrot.lane.b32.xlu0 %v420_v10, %s5681_s14 }
  0x6a   : > { %752 = vrot.lane.b32.xlu1 %v425_v12, %s5681_s14  ;;  %s5611_s14 = sshll.u32 %s5689_s13, 4  ;;  %s5612_s14 = int_to_ptr.vmem [resolvable:$false] %s5611_s14 }
  0x6c   : > { %760 = vrot.lane.b32.xlu0 %v5803_v7, %s5682_s22 }
  0x6e   : > { %769 = vrot.lane.b32.xlu1 %v415_v11, %s5682_s22 }
  0x70   : > { %777 = vrot.lane.b32.xlu0 %v420_v10, %s5682_s22 }
  0x72   : > { %785 = vrot.lane.b32.xlu1 %v425_v12, %s5682_s22  ;;  %s5179_s22 = sshll.u32 %s5771_s21, 4  ;;  %s4385_s21 = scalar_lea.sflag [#allocation5], %s377_s12 }
  0x73   : > { %s7278_s29 = scalar_lea.hbm %s7331_s11, %s5179_s22 }
  0x74   : > { %793 = vrot.lane.b32.xlu0 %v5803_v7, %s5683_s24 }
  0x76   : > { %802 = vrot.lane.b32.xlu1 %v415_v11, %s5683_s24 }
  0x78   : > { %810 = vrot.lane.b32.xlu0 %v420_v10, %s5683_s24 }
  0x7a   : > { %818 = vrot.lane.b32.xlu1 %v425_v12, %s5683_s24  ;;  %s378_s24 = scalar_lea.vmem [#allocation4], %s377_s12 }
  0x7c   : > { %826 = vrot.lane.b32.xlu0 %v5803_v7, %s5685_s25  ;;  %s4397_s25 = sshll.u32 %s378_s24, 4  ;;  %s7280_s25 = int_to_ptr.vmem [resolvable:$true] %s4397_s25 }
  0x7d   : > { %s5607_s30 = scalar_lea.vmem %s7280_s25, 16  ;;  %p5614_p0 = scmp.lt.s32.totalorder %s7280_s25, %s5612_s14 }
  0x7e   : > { %1235 = vperm.xlu1 %5350, %v836_v56   ;;  %p5608_p11 = scmp.ne.s32.totalorder %s7280_s25, %s5607_s30 }
  0x80   : > { %p5609_p12 = pnand %p5608_p11, %p5788_p5 }
  0x82   : > { %p5610_p13 = pneg %p5609_p12 }
  0x8e   : > { %v431_v14 = vpop.permute.xlu0 %430 }
  0x8f   : > { %v432_v15 = vrot.slane %v431_v14, 1 }
  0x90   : > { %v448_v16 = vpop.permute.xlu1 %447 }
  0x91   : > { %v434_v17 = vsel %vm433_vm1, %v431_v14, %v432_v15  ;;  %v449_v18 = vrot.slane %v448_v16, 1 }
  0x92   : > { %437 = vst.msk [vmem:[#allocation2 + $0x4] ss:$8 sm:$0x3] %vm5805_vm0, %v434_v17  ;;  %v464_v19 = vpop.permute.xlu0 %463 }
  0x93   : > { %v450_v20 = vsel %vm433_vm1, %v448_v16, %v449_v18  ;;  %v465_v21 = vrot.slane %v464_v19, 1 }
  0x94   : > { %453 = vst.msk [vmem:[#allocation2 + $0x6] ss:$8 sm:$0x3] %vm5805_vm0, %v450_v20  ;;  %v473_v22 = vpop.permute.xlu1 %472 }
  0x95   : > { %v467_v23 = vsel %vm466_vm2, %v464_v19, %v465_v21  ;;  %v474_v24 = vrot.slane %v473_v22, 1 }
  0x96   : > { %470 = vst.msk [vmem:[#allocation2 + $0x10] ss:$8 sm:$0x3] %vm5805_vm0, %v467_v23  ;;  %v440_v25 = vpop.permute.xlu0 %439 }
  0x97   : > { %v475_v26 = vsel %vm466_vm2, %v473_v22, %v474_v24  ;;  %v441_v27 = vrot.slane %v440_v25, 1 }
  0x98   : > { %478 = vst.msk [vmem:[#allocation2 + $0x11] ss:$8 sm:$0x3] %vm5805_vm0, %v475_v26  ;;  %v456_v28 = vpop.permute.xlu1 %455 }
  0x99   : > { %v442_v29 = vsel %vm433_vm1, %v440_v25, %v441_v27  ;;  %v457_v30 = vrot.slane %v456_v28, 1 }
  0x9a   : > { %445 = vst.msk [vmem:[#allocation2 + $0x5] ss:$8 sm:$0x3] %vm5805_vm0, %v442_v29  ;;  %v481_v31 = vpop.permute.xlu0 %480 }
  0x9b   : > { %v458_v32 = vsel %vm433_vm1, %v456_v28, %v457_v30  ;;  %v482_v33 = vrot.slane %v481_v31, 1 }
  0x9c   : > { %461 = vst.msk [vmem:[#allocation2 + $0x7] ss:$8 sm:$0x3] %vm5805_vm0, %v458_v32  ;;  %v489_v34 = vpop.permute.xlu1 %488 }
  0x9d   : > { %v483_v35 = vsel %vm466_vm2, %v481_v31, %v482_v33  ;;  %v490_v36 = vrot.slane %v489_v34, 1 }
  0x9e   : > { %486 = vst.msk [vmem:[#allocation2 + $0x12] ss:$8 sm:$0x3] %vm5805_vm0, %v483_v35  ;;  %v497_v37 = vpop.permute.xlu0 %496 }
  0x9f   : > { %v491_v38 = vsel %vm466_vm2, %v489_v34, %v490_v36  ;;  %v498_v39 = vrot.slane %v497_v37, 1 }
  0xa0   : > { %494 = vst.msk [vmem:[#allocation2 + $0x13] ss:$8 sm:$0x3] %vm5805_vm0, %v491_v38  ;;  %v506_v40 = vpop.permute.xlu1 %505 }
  0xa1   : > { %v500_v41 = vsel %vm499_vm3, %v497_v37, %v498_v39  ;;  %v507_v42 = vrot.slane %v506_v40, 1 }
  0xa2   : > { %503 = vst.msk [vmem:[#allocation2 + $0x14] ss:$8 sm:$0x3] %vm5805_vm0, %v500_v41  ;;  %v514_v43 = vpop.permute.xlu0 %513 }
  0xa3   : > { %v508_v44 = vsel %vm499_vm3, %v506_v40, %v507_v42  ;;  %v515_v45 = vrot.slane %v514_v43, 1  ;;  %v838_v62 = vld [vmem:[#allocation2 + $0x8] sm:$0xff]  ;;  %v837_v63 = vld [vmem:[#allocation2] sm:$0xff] }
  0xa4   : > { %511 = vst.msk [vmem:[#allocation2 + $0x15] ss:$8 sm:$0x3] %vm5805_vm0, %v508_v44  ;;  %v522_v46 = vpop.permute.xlu1 %521 }
  0xa5   : > { %v516_v47 = vsel %vm499_vm3, %v514_v43, %v515_v45  ;;  %v523_v48 = vrot.slane %v522_v46, 1 }
  0xa6   : > { %519 = vst.msk [vmem:[#allocation2 + $0x16] ss:$8 sm:$0x3] %vm5805_vm0, %v516_v47  ;;  %v530_v49 = vpop.permute.xlu0 %529 }
  0xa7   : > { %v524_v50 = vsel %vm499_vm3, %v522_v46, %v523_v48  ;;  %v531_v51 = vrot.slane %v530_v49, 1  ;;  %vm1051_vm3 = vcmask 1046528  }
  0xa8   : > { %527 = vst.msk [vmem:[#allocation2 + $0x17] ss:$8 sm:$0x3] %vm5805_vm0, %v524_v50  ;;  %v539_v52 = vpop.permute.xlu1 %538 }
  0xa9   : > { %v533_v53 = vsel %vm532_vm4, %v530_v49, %v531_v51  ;;  %v540_v54 = vrot.slane %v539_v52, 1 }
  0xaa   : > { %536 = vst.msk [vmem:[#allocation2 + $0x20] ss:$8 sm:$0x3] %vm5805_vm0, %v533_v53  ;;  %v547_v55 = vpop.permute.xlu0 %546 }
  0xab   : > { %v541_v57 = vsel %vm532_vm4, %v539_v52, %v540_v54  ;;  %v548_v58 = vrot.slane %v547_v55, 1 }
  0xac   : > { %544 = vst.msk [vmem:[#allocation2 + $0x21] ss:$8 sm:$0x3] %vm5805_vm0, %v541_v57  ;;  %v555_v59 = vpop.permute.xlu1 %554 }
  0xad   : > { %v549_v60 = vsel %vm532_vm4, %v547_v55, %v548_v58  ;;  %v556_v61 = vrot.slane %v555_v59, 1 }
  0xae   : > { %552 = vst.msk [vmem:[#allocation2 + $0x22] ss:$8 sm:$0x3] %vm5805_vm0, %v549_v60  ;;  %v563_v0 = vpop.permute.xlu0 %562 }
  0xaf   : > { %v557_v1 = vsel %vm532_vm4, %v555_v59, %v556_v61  ;;  %v564_v2 = vrot.slane %v563_v0, 1  ;;  %v5894_v3 = vld [vmem:[#allocation2 + $0x18] sm:$0xff]  ;;  %v5896_v4 = vld [vmem:[#allocation2 + $0x10] sm:$0xff]  ;;  %vm1127_vm4 = vsmask.f32 6400 }
  0xb0   : > { %560 = vst.msk [vmem:[#allocation2 + $0x23] ss:$8 sm:$0x3] %vm5805_vm0, %v557_v1  ;;  %v572_v5 = vpop.permute.xlu1 %571  ;;  %v852_v6 = vpack.c.bf16 %v5894_v3, %v838_v62  ;;  %v851_v7 = vpack.c.bf16 %v5896_v4, %v837_v63 }
  0xb1   : > { %v566_v8 = vsel %vm565_vm5, %v563_v0, %v564_v2  ;;  %v573_v10 = vrot.slane %v572_v5, 1 }
  0xb2   : > { %569 = vst.msk [vmem:[#allocation2 + $0x24] ss:$8 sm:$0x3] %vm5805_vm0, %v566_v8  ;;  %v580_v11 = vpop.permute.xlu0 %579  ;;  %870 = vmatprep.subr.bf16.mxu1 %v852_v6 }
  0xb3   : > { %v574_v12 = vsel %vm565_vm5, %v572_v5, %v573_v10  ;;  %v581_v14 = vrot.slane %v580_v11, 1  ;;  %871 = vmatpush1.bf16.msra.mxu1 %v851_v7 }
  0xb4   : > { %577 = vst.msk [vmem:[#allocation2 + $0x25] ss:$8 sm:$0x3] %vm5805_vm0, %v574_v12  ;;  %v588_v15 = vpop.permute.xlu1 %587 }
  0xb5   : > { %v582_v16 = vsel %vm565_vm5, %v580_v11, %v581_v14  ;;  %v589_v17 = vrot.slane %v588_v15, 1 }
  0xb6   : > { %585 = vst.msk [vmem:[#allocation2 + $0x26] ss:$8 sm:$0x3] %vm5805_vm0, %v582_v16  ;;  %v596_v18 = vpop.permute.xlu0 %595 }
  0xb7   : > { %v590_v19 = vsel %vm565_vm5, %v588_v15, %v589_v17  ;;  %v597_v20 = vrot.slane %v596_v18, 1  ;;  %vm1249_vm5 = vcmask 840704  }
  0xb8   : > { %593 = vst.msk [vmem:[#allocation2 + $0x27] ss:$8 sm:$0x3] %vm5805_vm0, %v590_v19  ;;  %v605_v21 = vpop.permute.xlu1 %604 }
  0xb9   : > { %v599_v22 = vsel %vm598_vm6, %v596_v18, %v597_v20  ;;  %v606_v23 = vrot.slane %v605_v21, 1 }
  0xba   : > { %602 = vst.msk [vmem:[#allocation2 + $0x30] ss:$8 sm:$0x3] %vm5805_vm0, %v599_v22  ;;  %v613_v24 = vpop.permute.xlu0 %612 }
  0xbb   : > { %v607_v25 = vsel %vm598_vm6, %v605_v21, %v606_v23  ;;  %v614_v26 = vrot.slane %v613_v24, 1 }
  0xbc   : > { %610 = vst.msk [vmem:[#allocation2 + $0x31] ss:$8 sm:$0x3] %vm5805_vm0, %v607_v25  ;;  %v621_v27 = vpop.permute.xlu1 %620 }
  0xbd   : > { %v615_v28 = vsel %vm598_vm6, %v613_v24, %v614_v26  ;;  %v622_v29 = vrot.slane %v621_v27, 1 }
  0xbe   : > { %618 = vst.msk [vmem:[#allocation2 + $0x32] ss:$8 sm:$0x3] %vm5805_vm0, %v615_v28  ;;  %v629_v30 = vpop.permute.xlu0 %628 }
  0xbf   : > { %v623_v31 = vsel %vm598_vm6, %v621_v27, %v622_v29  ;;  %v630_v32 = vrot.slane %v629_v30, 1  ;;  %v842_v54 = vld [vmem:[#allocation2 + $0x28] sm:$0xff]  ;;  %v841_v55 = vld [vmem:[#allocation2 + $0x20] sm:$0xff]  ;;  %vm1258_vm6 = vcmask 842758  }
  0xc0   : > { %626 = vst.msk [vmem:[#allocation2 + $0x33] ss:$8 sm:$0x3] %vm5805_vm0, %v623_v31  ;;  %v638_v33 = vpop.permute.xlu1 %637 }
  0xc1   : > { %v632_v34 = vsel %vm631_vm7, %v629_v30, %v630_v32  ;;  %v639_v35 = vrot.slane %v638_v33, 1 }
  0xc2   : > { %635 = vst.msk [vmem:[#allocation2 + $0x34] ss:$8 sm:$0x3] %vm5805_vm0, %v632_v34  ;;  %v646_v36 = vpop.permute.xlu0 %645 }
  0xc3   : > { %v640_v37 = vsel %vm631_vm7, %v638_v33, %v639_v35  ;;  %v647_v38 = vrot.slane %v646_v36, 1 }
  0xc4   : > { %643 = vst.msk [vmem:[#allocation2 + $0x35] ss:$8 sm:$0x3] %vm5805_vm0, %v640_v37  ;;  %v654_v39 = vpop.permute.xlu1 %653 }
  0xc5   : > { %v648_v40 = vsel %vm631_vm7, %v646_v36, %v647_v38  ;;  %v655_v41 = vrot.slane %v654_v39, 1 }
  0xc6   : > { %651 = vst.msk [vmem:[#allocation2 + $0x36] ss:$8 sm:$0x3] %vm5805_vm0, %v648_v40  ;;  %v662_v42 = vpop.permute.xlu0 %661 }
  0xc7   : > { %v656_v43 = vsel %vm631_vm7, %v654_v39, %v655_v41  ;;  %v663_v44 = vrot.slane %v662_v42, 1  ;;  %v912_v39 = vld [vmem:[#allocation2 + $0x8] sm:$0xfe]  ;;  %vm1261_vm7 = vcmask 838656  }
  0xc8   : > { %659 = vst.msk [vmem:[#allocation2 + $0x37] ss:$8 sm:$0x3] %vm5805_vm0, %v656_v43  ;;  %v671_v45 = vpop.permute.xlu1 %670  ;;  %v916_v41 = vpack.c.bf16 %v5894_v3, %v912_v39 }
  0xc9   : > { %v665_v46 = vsel %vm664_vm8, %v662_v42, %v663_v44  ;;  %v672_v47 = vrot.slane %v671_v45, 1 }
  0xca   : > { %668 = vst.msk [vmem:[#allocation2 + $0x40] ss:$8 sm:$0x3] %vm5805_vm0, %v665_v46  ;;  %v679_v48 = vpop.permute.xlu0 %678 }
  0xcb   : > { %v673_v49 = vsel %vm664_vm8, %v671_v45, %v672_v47  ;;  %v680_v50 = vrot.slane %v679_v48, 1  ;;  %v911_v45 = vld [vmem:[#allocation2] sm:$0xfe] }
  0xcc   : > { %676 = vst.msk [vmem:[#allocation2 + $0x41] ss:$8 sm:$0x3] %vm5805_vm0, %v673_v49  ;;  %v687_v51 = vpop.permute.xlu1 %686 }
  0xcd   : > { %v681_v52 = vsel %vm664_vm8, %v679_v48, %v680_v50  ;;  %v688_v53 = vrot.slane %v687_v51, 1  ;;  %v915_v48 = vpack.c.bf16 %v5896_v4, %v911_v45 }
  0xce   : > { %684 = vst.msk [vmem:[#allocation2 + $0x42] ss:$8 sm:$0x3] %vm5805_vm0, %v681_v52  ;;  %v695_v56 = vpop.permute.xlu0 %694  ;;  %v935_v52 = vshll.u32 %v916_v41, 16 }
  0xcf   : > { %v689_v57 = vsel %vm664_vm8, %v687_v51, %v688_v53  ;;  %v696_v58 = vrot.slane %v695_v56, 1  ;;  %v844_v59 = vld [vmem:[#allocation2 + $0x38] sm:$0xff]  ;;  %v843_v60 = vld [vmem:[#allocation2 + $0x30] sm:$0xff] }
  0xd0   : > { %692 = vst.msk [vmem:[#allocation2 + $0x43] ss:$8 sm:$0x3] %vm5805_vm0, %v689_v57  ;;  %v704_v61 = vpop.permute.xlu1 %703  ;;  %v5950_v62 = vpack.c.bf16 %v844_v59, %v842_v54  ;;  %v5952_v63 = vpack.c.bf16 %v843_v60, %v841_v55 }
  0xd1   : > { %v698_v0 = vsel %vm697_vm9, %v695_v56, %v696_v58  ;;  %v705_v1 = vrot.slane %v704_v61, 1 }
  0xd2   : > { %701 = vst.msk [vmem:[#allocation2 + $0x44] ss:$8 sm:$0x3] %vm5805_vm0, %v698_v0  ;;  %v712_v2 = vpop.permute.xlu0 %711  ;;  %872 = vmatprep.subr.bf16.mxu1 %v5950_v62  ;;  %v940_v60 = vshll.u32 %v5950_v62, 16 }
  0xd3   : > { %v706_v5 = vsel %vm697_vm9, %v704_v61, %v705_v1  ;;  %v713_v6 = vrot.slane %v712_v2, 1  ;;  %873 = vmatpush1.bf16.msra.mxu1 %v5952_v63  ;;  %v923_v1 = vshll.u32 %v915_v48, 16 }
  0xd4   : > { %709 = vst.msk [vmem:[#allocation2 + $0x45] ss:$8 sm:$0x3] %vm5805_vm0, %v706_v5  ;;  %v720_v7 = vpop.permute.xlu1 %719  ;;  %v937_v5 = vrot.slane %v935_v52, 1 }
  0xd5   : > { %v714_v8 = vsel %vm697_vm9, %v712_v2, %v713_v6  ;;  %v721_v10 = vrot.slane %v720_v7, 1  ;;  %v933_v6 = vshrl.u32 %v916_v41, 16  ;;  %v925_v9 = vrot.slane %v923_v1, 1 }
  0xd6   : > { %717 = vst.msk [vmem:[#allocation2 + $0x46] ss:$8 sm:$0x3] %vm5805_vm0, %v714_v8  ;;  %v728_v11 = vpop.permute.xlu0 %727 }
  0xd7   : > { %v722_v12 = vsel %vm697_vm9, %v720_v7, %v721_v10  ;;  %v729_v14 = vrot.slane %v728_v11, 1  ;;  %v928_v7 = vshll.u32 %v5952_v63, 16  ;;  %vm1275_vm9 = vcmask 842756  }
  0xd8   : > { %725 = vst.msk [vmem:[#allocation2 + $0x47] ss:$8 sm:$0x3] %vm5805_vm0, %v722_v12  ;;  %v737_v15 = vpop.permute.xlu1 %736 }
  0xd9   : > { %v731_v16 = vsel %vm730_vm10, %v728_v11, %v729_v14  ;;  %v738_v17 = vrot.slane %v737_v15, 1  ;;  %v942_v11 = vrot.slane %v940_v60, 1 }
  0xda   : > { %734 = vst.msk [vmem:[#allocation2 + $0x50] ss:$8 sm:$0x3] %vm5805_vm0, %v731_v16  ;;  %v745_v18 = vpop.permute.xlu0 %744  ;;  %v938_v16 = vor.u32 %v937_v5, %v933_v6 }
  0xdb   : > { %v739_v19 = vsel %vm730_vm10, %v737_v15, %v738_v17  ;;  %v746_v20 = vrot.slane %v745_v18, 1  ;;  %v921_v17 = vshrl.u32 %v915_v48, 16  ;;  %v1036_v48 = vld [vmem:[#allocation2 + $0x8] sm:$0xfc] }
  0xdc   : > { %742 = vst.msk [vmem:[#allocation2 + $0x51] ss:$8 sm:$0x3] %vm5805_vm0, %v739_v19  ;;  %v753_v21 = vpop.permute.xlu1 %752 }
  0xdd   : > { %v747_v22 = vsel %vm730_vm10, %v745_v18, %v746_v20  ;;  %v754_v23 = vrot.slane %v753_v21, 1 }
  0xde   : > { %750 = vst.msk [vmem:[#allocation2 + $0x52] ss:$8 sm:$0x3] %vm5805_vm0, %v747_v22  ;;  %v761_v24 = vpop.permute.xlu0 %760 }
  0xdf   : > { %v755_v25 = vsel %vm730_vm10, %v753_v21, %v754_v23  ;;  %v762_v26 = vrot.slane %v761_v24, 1  ;;  %v846_v54 = vld [vmem:[#allocation2 + $0x48] sm:$0xff]  ;;  %v845_v58 = vld [vmem:[#allocation2 + $0x40] sm:$0xff]  ;;  %v930_v21 = vrot.slane %v928_v7, 1  ;;  %vm1278_vm10 = vcmask 836608  }
  0xe0   : > { %758 = vst.msk [vmem:[#allocation2 + $0x53] ss:$8 sm:$0x3] %vm5805_vm0, %v755_v25  ;;  %v770_v27 = vpop.permute.xlu1 %769  ;;  %v6028_v25 = vld [vmem:[%s7321_s1] sm:$0x7] }
  0xe1   : > { %v764_v28 = vsel %vm763_vm11, %v761_v24, %v762_v26  ;;  %v771_v29 = vrot.slane %v770_v27, 1  ;;  %v943_v24 = vsel %vm919_vm15, %v938_v16, %v942_v11  ;;  %v952_v26 = vshrl.u32 %v5950_v62, 16  ;;  %v1119_v16 = vld [vmem:[#allocation2] sm:$0xf8] }
  0xe2   : > { %767 = vst.msk [vmem:[#allocation2 + $0x54] ss:$8 sm:$0x3] %vm5805_vm0, %v764_v28  ;;  %v778_v30 = vpop.permute.xlu0 %777 }
  0xe3   : > { %v772_v31 = vsel %vm763_vm11, %v770_v27, %v771_v29  ;;  %v779_v32 = vrot.slane %v778_v30, 1  ;;  %v926_v29 = vor.u32 %v925_v9, %v921_v17 }
  0xe4   : > { %775 = vst.msk [vmem:[#allocation2 + $0x55] ss:$8 sm:$0x3] %vm5805_vm0, %v772_v31  ;;  %v786_v33 = vpop.permute.xlu1 %785  ;;  %v954_v31 = vor.u32 %v952_v26, %v942_v11 }
  0xe5   : > { %v780_v34 = vsel %vm763_vm11, %v778_v30, %v779_v32  ;;  %v787_v35 = vrot.slane %v786_v33, 1  ;;  %v931_v32 = vsel %vm919_vm15, %v926_v29, %v930_v21 }
  0xe6   : > { %783 = vst.msk [vmem:[#allocation2 + $0x56] ss:$8 sm:$0x3] %vm5805_vm0, %v780_v34  ;;  %v794_v36 = vpop.permute.xlu0 %793 }
  0xe7   : > { %v788_v37 = vsel %vm763_vm11, %v786_v33, %v787_v35  ;;  %v795_v38 = vrot.slane %v794_v36, 1  ;;  %v944_v33 = vshrl.u32 %v5952_v63, 16  ;;  %vm1290_vm11 = vcmask 842754  }
  0xe8   : > { %791 = vst.msk [vmem:[#allocation2 + $0x57] ss:$8 sm:$0x3] %vm5805_vm0, %v788_v37  ;;  %v803_v40 = vpop.permute.xlu1 %802 }
  0xe9   : > { %v797_v42 = vsel %vm796_vm12, %v794_v36, %v795_v38  ;;  %v804_v43 = vrot.slane %v803_v40, 1  ;;  %v946_v39 = vor.u32 %v944_v33, %v930_v21 }
  0xea   : > { %800 = vst.msk [vmem:[#allocation2 + $0x60] ss:$8 sm:$0x3] %vm5805_vm0, %v797_v42  ;;  %v811_v44 = vpop.permute.xlu0 %810 }
  0xeb   : > { %v805_v46 = vsel %vm796_vm12, %v803_v40, %v804_v43  ;;  %v812_v47 = vrot.slane %v811_v44, 1 }
  0xec   : > { %808 = vst.msk [vmem:[#allocation2 + $0x61] ss:$8 sm:$0x3] %vm5805_vm0, %v805_v46  ;;  %v819_v49 = vpop.permute.xlu1 %818 }
  0xed   : > { %v813_v50 = vsel %vm796_vm12, %v811_v44, %v812_v47  ;;  %v820_v51 = vrot.slane %v819_v49, 1 }
  0xee   : > { %816 = vst.msk [vmem:[#allocation2 + $0x62] ss:$8 sm:$0x3] %vm5805_vm0, %v813_v50  ;;  %v827_v53 = vpop.permute.xlu0 %826 }
  0xef   : > { %v821_v55 = vsel %vm796_vm12, %v819_v49, %v820_v51  ;;  %v828_v56 = vrot.slane %v827_v53, 1  ;;  %v848_v57 = vld [vmem:[#allocation2 + $0x58] sm:$0xff]  ;;  %v847_v59 = vld [vmem:[#allocation2 + $0x50] sm:$0xff]  ;;  %v1040_v49 = vpack.c.bf16 %v5894_v3, %v1036_v48  ;;  %vm1616_vm12 = vcmask 1042432  }
  0xf0   : > { %824 = vst.msk [vmem:[#allocation2 + $0x63] ss:$8 sm:$0x3] %vm5805_vm0, %v821_v55  ;;  %v6007_v61 = vpack.c.bf16 %v848_v57, %v846_v54  ;;  %v6009_v0 = vpack.c.bf16 %v847_v59, %v845_v58  ;;  %v1035_v54 = vld [vmem:[#allocation2] sm:$0xfc]  ;;  %v1053_v59 = vrot.slane %v5952_v63, 1 }
  0xf1   : > { %v830_v2 = vsel %vm829_vm13, %v827_v53, %v828_v56  ;;  %v1056_v53 = vrot.slane %v5950_v62, 1  ;;  %v1039_v55 = vpack.c.bf16 %v5896_v4, %v1035_v54  ;;  %v1055_v57 = vrot.slane %v1040_v49, 1 }
  0xf2   : > { %833 = vst.msk [vmem:[#allocation2 + $0x64] ss:$8 sm:$0x3] %vm5805_vm0, %v830_v2  ;;  %874 = vmatprep.subr.bf16.mxu1 %v6007_v61  ;;  %v956_v12 = vshll.u32 %v6007_v61, 16  ;;  %vm859_vm0 = vcmask 408576   ;;  %v948_v22 = vshll.u32 %v6009_v0, 16 }
  0xf3   : > { %875 = vmatpush1.bf16.msra.mxu1 %v6009_v0  ;;  %v850_v8 = vld [vmem:[#allocation2 + $0x68] sm:$0x3]  ;;  %v849_v10 = vld [vmem:[#allocation2 + $0x60] sm:$0x3]  ;;  %v968_v37 = vshrl.u32 %v6007_v61, 16  ;;  %v960_v42 = vshrl.u32 %v6009_v0, 16  ;;  %v1057_v1 = vsel %vm1051_vm3, %v1055_v57, %v1056_v53 }
  0xf4   : > { %v858_v14 = vpack.c.bf16 %v850_v8, %v850_v8  ;;  %v857_v15 = vpack.c.bf16 %v849_v10, %v849_v10  ;;  %v958_v27 = vrot.slane %v956_v12, 1  ;;  %v950_v34 = vrot.slane %v948_v22, 1  ;;  %v1120_v8 = vld [vmem:[#allocation2 + $0x8] sm:$0xf8] }
  0xf5   : > { %v914_v18 = vld [vmem:[#allocation2 + $0x68] sm:$0x7]  ;;  %v913_v19 = vld [vmem:[#allocation2 + $0x60] sm:$0x7]  ;;  %v1060_v2 = vrot.slane %v6007_v61, 1  ;;  %v1052_v10 = vrot.slane %v1039_v55, 1  ;;  %v1124_v11 = vpack.c.bf16 %v5894_v3, %v1120_v8 }
  0xf6   : > { %4459 = vmatprep.subr.msk.bf16.mxu1 %vm863_vm14, %v858_v14  ;;  %v865_v20 = vsel %vm863_vm14, %v857_v15, 0  ;;  %v918_v23 = vpack.c.bf16 %v914_v18, %v914_v18  ;;  %v917_v28 = vpack.c.bf16 %v913_v19, %v913_v19  ;;  %v959_v36 = vsel %vm919_vm15, %v954_v31, %v958_v27 }
  0xf7   : > { %877 = vmatpush1.bf16.msra.mxu1 %v865_v20  ;;  %v970_v40 = vor.u32 %v968_v37, %v958_v27  ;;  %v951_v41 = vsel %vm919_vm15, %v946_v39, %v950_v34  ;;  %v962_v45 = vor.u32 %v960_v42, %v950_v34  ;;  %v1038_v56 = vld [vmem:[#allocation2 + $0x68] sm:$0xf]  ;;  %v1037_v6 = vld [vmem:[#allocation2 + $0x60] sm:$0xf]  ;;  %v1054_v14 = vsel %vm1051_vm3, %v1052_v10, %v1053_v59 }
  0xf8   : > { %994 = vmatprep.subr.bf16.mxu1 %v943_v24  ;;  %v972_v30 = vshll.u32 %v918_v23, 16  ;;  %v964_v35 = vshll.u32 %v917_v28, 16  ;;  %v979_v46 = vshrl.u32 %v918_v23, 16  ;;  %v976_v47 = vshrl.u32 %v917_v28, 16 }
  0xf9   : > { %v1042_v5 = vpack.c.bf16 %v1038_v56, %v1038_v56  ;;  %v1058_v15 = vrot.slane %v6009_v0, 1  ;;  %v1041_v9 = vpack.c.bf16 %v1037_v6, %v1037_v6  ;;  %v1061_v17 = vsel %vm1051_vm3, %v1056_v53, %v1060_v2  ;;  %v1122_v20 = vld [vmem:[#allocation2 + $0x68] sm:$0x1f]  ;;  %v1121_v31 = vld [vmem:[#allocation2 + $0x60] sm:$0x1f] }
  0xfa   : > { %4460 = vmatmul.mubr.msk.bf16.vlgmr.msra.gmra.mrb[0].mxu1 %vm859_vm0, %v6028_v25  ;;  %v974_v38 = vrot.slane %v972_v30, 1  ;;  %v966_v43 = vrot.slane %v964_v35, 1  ;;  %v1123_v19 = vpack.c.bf16 %v5896_v4, %v1119_v16  ;;  %v1141_v3 = vshrl.u32 %v1124_v11, 16 }
  0xfb   : > { %995 = vmatpush1.bf16.msra.mxu1 %v931_v32  ;;  %1026 = vmatprep.mubr.bf16.mxu1 %v5684_v13  ;;  %v1064_v18 = vrot.slane %v1042_v5, 1  ;;  %v1144_v21 = vshll.u32 %v1124_v11, 16  ;;  %v1059_v23 = vsel %vm1051_vm3, %v1053_v59, %v1058_v15  ;;  %v1062_v24 = vrot.slane %v1041_v9, 1 }
  0xfc   : > { %996 = vmatprep.subr.bf16.mxu1 %v959_v36  ;;  %v975_v44 = vsel %vm919_vm15, %v970_v40, %v974_v38  ;;  %v967_v50 = vsel %vm919_vm15, %v962_v45, %v966_v43  ;;  %v981_v51 = vor.u32 %v979_v46, %v974_v38  ;;  %v978_v52 = vor.u32 %v976_v47, %v966_v43 }
  0xfd   : > { %v1148_v27 = vrot.slane %v952_v26, 1  ;;  %v1149_v28 = vrot.slane %v940_v60, 2  ;;  %v1065_v29 = vsel %vm1051_vm3, %v1060_v2, %v1064_v18  ;;  %v1126_v30 = vpack.c.bf16 %v1122_v20, %v1122_v20  ;;  %v1236_v10 = vpop.permute.xlu1 %1235 }
  0xfe   : > { %v989_v58 = vsel %vm863_vm14, %v978_v52, 0  ;;  %v1129_v4 = vshrl.u32 %v1123_v19, 16  ;;  %v1132_v32 = vshll.u32 %v1123_v19, 16  ;;  %v1143_v34 = vrot.slane %v1141_v3, 1 }
  0xff   : > { %997 = vmatpush1.bf16.msra.mxu1 %v951_v41  ;;  %v1146_v35 = vrot.slane %v1144_v21, 2  ;;  %v1136_v36 = vrot.slane %v944_v33, 1  ;;  %v1137_v38 = vrot.slane %v928_v7, 2  ;;  %v1063_v26 = vsel %vm1051_vm3, %v1058_v15, %v1062_v24 }
 0x100   : > { %998 = vmatprep.subr.bf16.mxu1 %v975_v44  ;;  %v1150_v62 = vor.u32 %v1149_v28, %v1148_v27  ;;  %v1125_v60 = vpack.c.bf16 %v1121_v31, %v1121_v31  ;;  %v1156_v39 = vrot.slane %v968_v37, 1  ;;  %v1157_v40 = vrot.slane %v956_v12, 2 }
 0x101   : > { %v1170_v41 = vshrl.u32 %v1126_v30, 16  ;;  %v1173_v43 = vshll.u32 %v1126_v30, 16  ;;  %v1131_v33 = vrot.slane %v1129_v4, 1  ;;  %v1134_v44 = vrot.slane %v1132_v32, 2 }
 0x102   : > { %v1147_v63 = vor.u32 %v1146_v35, %v1143_v34  ;;  %v1138_v7 = vor.u32 %v1137_v38, %v1136_v36  ;;  %v1152_v45 = vrot.slane %v960_v42, 1  ;;  %v1073_v46 = vsel %vm863_vm14, %v1062_v24, 0 }
 0x103   : > { %999 = vmatpush1.bf16.msra.mxu1 %v967_v50  ;;  %v1153_v37 = vrot.slane %v948_v22, 2  ;;  %v1161_v47 = vshrl.u32 %v1125_v60, 16  ;;  %v1164_v61 = vshll.u32 %v1125_v60, 16  ;;  %v1158_v48 = vor.u32 %v1157_v40, %v1156_v39  ;;  %v1315_v40 = vld [vmem:[%s7324_s4 + $0x8] sm:$0xff] }
 0x104   : > { %4461 = vmatprep.subr.msk.bf16.mxu1 %vm863_vm14, %v981_v51  ;;  %v1151_v12 = vsel %vm1127_vm4, %v1147_v63, %v1150_v62  ;;  %v1172_v49 = vrot.slane %v1170_v41, 1  ;;  %v1175_v50 = vrot.slane %v1173_v43, 2  ;;  %v1135_v51 = vor.u32 %v1134_v44, %v1131_v33  ;;  %v1314_v41 = vld [vmem:[%s7324_s4] sm:$0xff] }
 0x105   : > { %v1154_v52 = vor.u32 %v1153_v37, %v1152_v45  ;;  %v1163_v53 = vrot.slane %v1161_v47, 1  ;;  %v1166_v54 = vrot.slane %v1164_v61, 2  ;;  %v1159_v0 = vsel %vm1127_vm4, %v1150_v62, %v1158_v48 }
 0x106   : > { %v1139_v42 = vsel %vm1127_vm4, %v1135_v51, %v1138_v7  ;;  %v1176_v22 = vor.u32 %v1175_v50, %v1172_v49  ;;  %vm1617_vm13 = vcmask 1043456   ;;  %vm5688_vm15 = vmmov 0  }
 0x107   : > { %1001 = vmatpush1.bf16.msra.mxu1 %v989_v58  ;;  %v1155_v55 = vsel %vm1127_vm4, %v1138_v7, %v1154_v52  ;;  %v1167_v56 = vor.u32 %v1166_v54, %v1163_v53 }
 0x108   : > { %1078 = vmatprep.subr.bf16.mxu1 %v1057_v1  ;;  %v1177_v57 = vsel %vm1127_vm4, %v1158_v48, %v1176_v22 }
 0x109   : > { %v1168_v58 = vsel %vm1127_vm4, %v1154_v52, %v1167_v56  ;;  %v1185_v59 = vsel %vm863_vm14, %v1167_v56, 0 }
 0x10a   : > { %4462 = vmatmul.mubr.msk.bf16.vlgmr.msra.gmra.mrb[4].mxu1 %vm859_vm0, %v6028_v25 }
 0x10b   : > { %1079 = vmatpush1.bf16.msra.mxu1 %v1054_v14  ;;  %1110 = vmatprep.mubr.bf16.mxu1 %v5684_v13 }
 0x10c   : > { %1080 = vmatprep.subr.bf16.mxu1 %v1061_v17 }
 0x10f   : > { %1081 = vmatpush1.bf16.msra.mxu1 %v1059_v23 }
 0x110   : > { %1082 = vmatprep.subr.bf16.mxu1 %v1065_v29 }
 0x113   : > { %1083 = vmatpush1.bf16.msra.mxu1 %v1063_v26 }
 0x114   : > { %4463 = vmatprep.subr.msk.bf16.mxu1 %vm863_vm14, %v1064_v18 }
 0x117   : > { %1085 = vmatpush1.bf16.msra.mxu1 %v1073_v46 }
 0x118   : > { %1190 = vmatprep.subr.bf16.mxu1 %v1151_v12 }
 0x11a   : > { %4464 = vmatmul.mubr.msk.bf16.vlgmr.msra.gmra.mrb[8].mxu1 %vm859_vm0, %v6028_v25 }
 0x11b   : > { %1191 = vmatpush1.bf16.msra.mxu1 %v1139_v42  ;;  %1222 = vmatprep.mubr.bf16.mxu1 %v5684_v13 }
 0x11c   : > { %1192 = vmatprep.subr.bf16.mxu1 %v1159_v0 }
 0x11f   : > { %1193 = vmatpush1.bf16.msra.mxu1 %v1155_v55 }
 0x120   : > { %1194 = vmatprep.subr.bf16.mxu1 %v1177_v57 }
 0x123   : > { %1195 = vmatpush1.bf16.msra.mxu1 %v1168_v58 }
 0x124   : > { %4465 = vmatprep.subr.msk.bf16.mxu1 %vm863_vm14, %v1176_v22  ;;  %vm1612_vm14 = vcmask 842752  }
 0x127   : > { %1197 = vmatpush1.bf16.msra.mxu1 %v1185_v59 }
 0x12a   : > { %4466 = vmatmul.mubr.msk.bf16.vlgmr.msra.gmra.mrb[12].mxu1 %vm859_vm0, %v6028_v25  ;;  %vm4334_vm0 = vcmask 687104  }
 0x12b   : > { %1460 = vmatprep.mubr.bf16.mxu1 %v5684_v13 }
 0x1cd   : > { %v904_v1 = vpop.f32.mrb[0].mxu1 }
 0x1ce   : > { %v906_v2 = vpop.f32.mrb[1].mxu1 }
 0x1cf   : > { %v908_v5 = vpop.f32.mrb[2].mxu1 }
 0x1d0   : > { %v909_v6 = vpop.f32.mrb[3].mxu1 }
 0x1dd   : > { %v1028_v8 = vpop.f32.mrb[4].mxu1 }
 0x1de   : > { %v1231_v11 = vmax.f32 %v904_v1, %v1028_v8  ;;  %v1030_v14 = vpop.f32.mrb[5].mxu1 }
 0x1df   : > { %v1232_v15 = vmax.f32 %v906_v2, %v1030_v14  ;;  %v1032_v9 = vpop.f32.mrb[6].mxu1 }
 0x1e0   : > { %v1033_v16 = vpop.f32.mrb[7].mxu1  ;;  %v1238_v17 = vadd.f32 %v1236_v10, %v1231_v11 }
 0x1e1   : > { %v1239_v18 = vadd.f32 %v1236_v10, %v1232_v15  ;;  %v5355_v16 = vld [vmem:[%s7325_s5 + $0x32c] sm:$0xff]  }
 0x1e2   : > { %v1240_v19 = vmax.f32 %v1238_v17, 0.0 }
 0x1e3   : > { %v1241_v20 = vmax.f32 %v1239_v18, 0.0 }
 0x1e4   : > { %1292 = vrot.lane.b32.xlu0 %v1240_v19, %s5673_s16  ;;  %1248 = vst [vmem:[#allocation3] sm:$0x3f] %v1240_v19  ;;  %v1265_v25 = vrot.slane %v1240_v19, 4 }
 0x1e5   : > { %1294 = vrot.lane.b32.xlu1 %v1241_v20, %s5673_s16  ;;  %1250 = vst.msk [vmem:[#allocation3 + $0x8] sm:$0x3f] %vm1249_vm5, %v1241_v20  ;;  %v1266_v3 = vrot.slane %v1241_v20, 4 }
 0x1e8   : > { %1267 = vrot.lane.b32.xlu0 %v1265_v25, %s5672_s15 }
 0x1e9   : > { %1269 = vrot.lane.b32.xlu1 %v1266_v3, %s5672_s15 }
 0x1ed   : > { %v1112_v21 = vpop.f32.mrb[8].mxu1 }
 0x1ee   : > { %v1114_v23 = vpop.f32.mrb[9].mxu1 }
 0x1ef   : > { %v1116_v24 = vpop.f32.mrb[10].mxu1 }
 0x1f0   : > { %v1117_v27 = vpop.f32.mrb[11].mxu1 }
 0x1f1   : > { %v5357_v27 = vld [vmem:[%s7325_s5 + $0x334] sm:$0xff]  }
 0x1fd   : > { %v1224_v28 = vpop.f32.mrb[12].mxu1 }
 0x1fe   : > { %v1242_v29 = vmax.f32 %v1112_v21, %v1224_v28  ;;  %v1226_v30 = vpop.f32.mrb[13].mxu1 }
 0x1ff   : > { %v1243_v31 = vmax.f32 %v1114_v23, %v1226_v30  ;;  %v1228_v4 = vpop.f32.mrb[14].mxu1 }
 0x200   : > { %v1244_v32 = vadd.f32 %v1242_v29, %v1236_v10  ;;  %v1229_v34 = vpop.f32.mrb[15].mxu1 }
 0x201   : > { %v1245_v35 = vadd.f32 %v1243_v31, %v1236_v10  ;;  %v5352_v10 = vld [vmem:[%s7323_s3] sm:$0xff]  }
 0x202   : > { %v1246_v36 = vmax.f32 %v1244_v32, 0.0  ;;  %v5359_v31 = vld [vmem:[%s7325_s5 + $0x33c] sm:$0xff]   ;;  %v5361_v34 = vld [vmem:[%s7325_s5 + $0x344] sm:$0xff]  }
 0x203   : > { %v1247_v38 = vmax.f32 %v1245_v35, 0.0  ;;  %v5353_v32 = vld [vmem:[%s7325_s5] sm:$0xff]   ;;  %v5354_v35 = vld [vmem:[%s7325_s5 + $0x8] sm:$0xff]  }
 0x204   : > { %v1280_v26 = vrot.slane %v1246_v36, 6  ;;  %v1253_v62 = vrot.slane %v1246_v36, 2  ;;  %v5363_v36 = vld [vmem:[%s7325_s5 + $0x34c] sm:$0xff]  }
 0x205   : > { %v1281_v60 = vrot.slane %v1247_v38, 6  ;;  %v1254_v39 = vrot.slane %v1247_v38, 2  ;;  %v5356_v38 = vld [vmem:[%s7325_s5 + $0x10] sm:$0xff]  }
 0x206   : > { %1282 = vrot.lane.b32.xlu0 %v1280_v26, %s5672_s15  ;;  %1257 = vst [vmem:[#allocation3 + $0x10] ss:$-12 sps:$4 sm:$0xcf] %v1253_v62   ;;  %v5365_v26 = vld [vmem:[%s7325_s5 + $0x354] sm:$0xff]  }
 0x207   : > { %1284 = vrot.lane.b32.xlu1 %v1281_v60, %s5672_s15  ;;  %1259 = vst.msk [vmem:[#allocation3 + $0x8] sm:$0xc0] %vm1258_vm6, %v1254_v39  ;;  %v5367_v60 = vld [vmem:[%s7325_s5 + $0x35c] sm:$0xff]   ;;  %s5613_s15 = scalar_lea.vmem %s5612_s14, 32 }
 0x208   : > { %1262 = vst.msk [vmem:[#allocation3 + $0x18] sm:$0xf] %vm1261_vm7, %v1254_v39  ;;  %p5615_p1 = scmp.lt.s32.totalorder %s5613_s15, %s5607_s30 }
 0x20a   : > { %1301 = vrot.lane.b32.xlu0 %v1253_v62, %s5673_s16  ;;  %v5358_v62 = vld [vmem:[%s7325_s5 + $0x18] sm:$0xff]   ;;  %p5616_p2 = por %p5615_p1, %p5614_p0 }
 0x20b   : > { %1303 = vrot.lane.b32.xlu1 %v1254_v39, %s5673_s16  ;;  %v5360_v39 = vld [vmem:[%s7325_s5 + $0x20] sm:$0xff]  }
 0x20c   : > { %p5617_p3 = pnand %p5616_p2, %p5610_p13 }
 0x20d   : > { %v1316_v61 = vld [vmem:[#allocation3] sm:$0xff] }
 0x20e   : > { %1477 = vperm.xlu0 %5351, %v1314_v41   ;;  %v1317_v46 = vld [vmem:[#allocation3 + $0x8] sm:$0xff]  ;;  %v1387_v1 = vld [vmem:[#allocation3] sm:$0xc0]  ;;  %v5362_v41 = vld [vmem:[%s7325_s5 + $0x28] sm:$0xff]  }
 0x20f   : > { %1482 = vperm.xlu1 %5350, %v1315_v40   ;;  %v1388_v58 = vld [vmem:[#allocation3 + $0x8] sm:$0xc0]  ;;  %v5369_v40 = vld [vmem:[%s7325_s5 + $0x364] sm:$0xff]  }
 0x256   : > { %v1293_v43 = vpop.permute.xlu0 %1292 }
 0x257   : > { %v1295_v33 = vpop.permute.xlu1 %1294 }
 0x258   : > { %v1296_v44 = vsel %vm466_vm2, %v1293_v43, %v1295_v33  ;;  %1300 = vst.msk [vmem:[#allocation3 + $0x38] sm:$0x3f] %vm1249_vm5, %v1295_v33  ;;  %v5371_v43 = vld [vmem:[%s7325_s5 + $0x36c] sm:$0xff]  }
 0x259   : > { %1299 = vst [vmem:[#allocation3 + $0x30] sm:$0x3f] %v1296_v44  ;;  %v5364_v33 = vld [vmem:[%s7325_s5 + $0x30] sm:$0xff]  }
 0x25a   : > { %v1268_v63 = vpop.permute.xlu0 %1267  ;;  %v5373_v44 = vld [vmem:[%s7325_s5 + $0x374] sm:$0xff]  }
 0x25b   : > { %v1270_v7 = vpop.permute.xlu1 %1269 }
 0x25c   : > { %v1271_v45 = vsel %vm433_vm1, %v1268_v63, %v1270_v7  ;;  %1276 = vst.msk [vmem:[#allocation3 + $0x18] sm:$0xf0] %vm1275_vm9, %v1270_v7  ;;  %v5366_v63 = vld [vmem:[%s7325_s5 + $0x38] sm:$0xff]  }
 0x25d   : > { %1279 = vst.msk [vmem:[#allocation3 + $0x28] sm:$0x3] %vm1278_vm10, %v1270_v7  ;;  %1274 = vst [vmem:[#allocation3 + $0x20] ss:$-12 sps:$4 sm:$0xf3] %v1271_v45   ;;  %v5375_v7 = vld [vmem:[%s7325_s5 + $0x37c] sm:$0xff]  }
 0x25e   : > { %v5368_v45 = vld [vmem:[%s7325_s5 + $0x40] sm:$0xff]  }
 0x25f   : > { %v1323_v0 = vld [vmem:[#allocation3 + $0x38] sm:$0x3f] }
 0x260   : > { %v1322_v56 = vld [vmem:[#allocation3 + $0x30] sm:$0x3f] }
 0x263   : > { %v1319_v37 = vld [vmem:[#allocation3 + $0x18] sm:$0xff] }
 0x264   : > { %v1325_v47 = vpack.c.bf16 %v1319_v37, %v1317_v46  ;;  %v1318_v12 = vld [vmem:[#allocation3 + $0x10] sm:$0xff]  ;;  %v1398_v59 = vpack.c.bf16 %v1319_v37, %v1388_v58  ;;  %v5370_v46 = vld [vmem:[%s7325_s5 + $0x48] sm:$0xff]   ;;  %v5372_v37 = vld [vmem:[%s7325_s5 + $0x50] sm:$0xff]  }
 0x265   : > { %v1324_v48 = vpack.c.bf16 %v1318_v12, %v1316_v61  ;;  %v1397_v6 = vpack.c.bf16 %v1318_v12, %v1387_v1  ;;  %v5376_v61 = vld [vmem:[%s7325_s5 + $0x60] sm:$0xff]  }
 0x266   : > { %1344 = vmatprep.subr.bf16.mxu0 %v1325_v47  ;;  %v1413_v19 = vrot.slane %v1398_v59, 3  ;;  %v5374_v47 = vld [vmem:[%s7325_s5 + $0x58] sm:$0xff]   ;;  %v5377_v12 = vld [vmem:[%s7325_s5 + $0x384] sm:$0xff]  }
 0x267   : > { %1345 = vmatpush1.bf16.msra.mxu0 %v1324_v48  ;;  %v1410_v3 = vrot.slane %v1397_v6, 3  ;;  %v5378_v48 = vld [vmem:[%s7325_s5 + $0x68] sm:$0xff]  }
 0x278   : > { %v1283_v49 = vpop.permute.xlu0 %1282 }
 0x279   : > { %v1285_v50 = vpop.permute.xlu1 %1284 }
 0x27a   : > { %v1286_v51 = vsel %vm433_vm1, %v1283_v49, %v1285_v50  ;;  %1291 = vst.msk [vmem:[#allocation3 + $0x28] sm:$0xfc] %vm1290_vm11, %v1285_v50  ;;  %vm1333_vm1 = vcmask 244736   ;;  %v5379_v49 = vld [vmem:[%s7325_s5 + $0x38c] sm:$0xff]  }
 0x27b   : > { %1289 = vst [vmem:[#allocation3 + $0x20] sm:$0xfc] %v1286_v51  ;;  %v5380_v50 = vld [vmem:[%s7325_s5 + $0x70] ss:$0 sps:$4 sm:$0xff]   ;;  %v5686_v51 = vmov 65535  }
 0x27c   : > { %v1302_v42 = vpop.permute.xlu0 %1301 }
 0x27d   : > { %v1304_v52 = vpop.permute.xlu1 %1303 }
 0x27e   : > { %v1305_v53 = vsel %vm466_vm2, %v1302_v42, %v1304_v52  ;;  %1309 = vst.msk [vmem:[#allocation3 + $0x38] sm:$0xc0] %vm1258_vm6, %v1304_v52  ;;  %vm1409_vm2 = vcmask 1044480   ;;  %v1618_v42 = vsel %vm1616_vm12, 4294967295, %v5686_v51  ;;  %v5411_v51 = vld [vmem:[%s7325_s5 + $0x408] sm:$0xff]  }
 0x27f   : > { %1311 = vst.msk [vmem:[#allocation3 + $0x48] sm:$0xf] %vm1261_vm7, %v1304_v52  ;;  %1308 = vst [vmem:[#allocation3 + $0x40] ss:$-12 sps:$4 sm:$0xcf] %v1305_v53   ;;  %v5381_v52 = vld [vmem:[%s7325_s5 + $0x394] sm:$0xff]  }
 0x280   : > { %v6259_v53 = vsel %vm1617_vm13, %v1618_v42, 0  ;;  %v5413_v42 = vld [vmem:[%s7325_s5 + $0x410] ss:$0 sps:$4 sm:$0xff]  }
 0x281   : > { %v1321_v54 = vld [vmem:[#allocation3 + $0x28] sm:$0xff] }
 0x282   : > { %v1327_v22 = vpack.c.bf16 %v1323_v0, %v1321_v54  ;;  %v1320_v55 = vld [vmem:[#allocation3 + $0x20] sm:$0xff]  ;;  %v5383_v0 = vld [vmem:[%s7325_s5 + $0x39c] ss:$0 sps:$4 sm:$0xff]  }
 0x283   : > { %v1326_v57 = vpack.c.bf16 %v1322_v56, %v1320_v55 }
 0x284   : > { %4468 = vmatprep.subr.msk.bf16.mxu0 %vm1051_vm3, %v1327_v22  ;;  %v2795_v22 = vand.u32 %v5383_v0, %v6259_v53  ;;  %v2961_v0 = vand.u32 %v5413_v42, %v6259_v53  ;;  %v5457_v42 = vld [vmem:[%s7325_s5 + $0x4b8] sm:$0xff]  }
 0x285   : > { %v1339_v2 = vsel %vm1051_vm3, %v1326_v57, 0  ;;  %v1394_v5 = vld [vmem:[#allocation3 + $0x38] sm:$0xff] }
 0x286   : > { %v1396_v8 = vld [vmem:[#allocation3 + $0x48] sm:$0xf]  ;;  %1347 = vmatpush1.bf16.msra.mxu0 %v1339_v2  ;;  %v1400_v11 = vpack.c.bf16 %v1394_v5, %v1321_v54  ;;  %v1393_v14 = vld [vmem:[#allocation3 + $0x30] sm:$0xff]  ;;  %v1395_v9 = vld [vmem:[#allocation3 + $0x40] sm:$0xf]  ;;  %v1621_v54 = vand.u32 %v5380_v50, %v6259_v53 }
 0x287   : > { %v1402_v15 = vpack.c.bf16 %v1396_v8, %v1396_v8  ;;  %v1399_v17 = vpack.c.bf16 %v1393_v14, %v1320_v55  ;;  %v1401_v18 = vpack.c.bf16 %v1395_v9, %v1395_v9  ;;  %2797 = vmatprep.subr.bf16.mxu0 %v5684_v13 }
 0x288   : > { %v1414_v20 = vrot.slane %v1400_v11, 3 }
 0x289   : > { %v1418_v25 = vrot.slane %v1402_v15, 3  ;;  %v1411_v21 = vrot.slane %v1399_v17, 3  ;;  %v1416_v23 = vrot.slane %v1401_v18, 3  ;;  %4469 = vmatmul.mubr.msk.bf16.vlgmr.msra.gmra.mrb[0].mxu0 %vm1333_vm1, %v5352_v10 }
 0x28a   : > { %v1415_v24 = vsel %vm1409_vm2, %v1413_v19, %v1414_v20  ;;  %2798 = vmatpush1.bf16.msra.mxu0 %v5355_v16 }
 0x28b   : > { %1428 = vmatprep.subr.bf16.mxu1 %v1415_v24  ;;  %v1412_v28 = vsel %vm1409_vm2, %v1410_v3, %v1411_v21  ;;  %2799 = vmatprep.subr.bf16.mxu0 %v5684_v13  ;;  %v1419_v29 = vsel %vm1409_vm2, %v1414_v20, %v1418_v25  ;;  %v1417_v30 = vsel %vm1409_vm2, %v1411_v21, %v1416_v23  ;;  %v5382_v3 = vld [vmem:[%s7325_s5 + $0x74] sm:$0xff]  }
 0x28c   : > { %1429 = vmatpush1.bf16.msra.mxu1 %v1412_v28  ;;  %v1423_v4 = vsel %vm1051_vm3, %v1417_v30, 0  ;;  %v5384_v28 = vld [vmem:[%s7325_s5 + $0x7c] sm:$0xff]  }
 0x28d   : > { %4470 = vmatprep.subr.msk.bf16.mxu1 %vm1051_vm3, %v1419_v29  ;;  %v1478_v1 = vpop.permute.xlu0 %1477  ;;  %v5385_v29 = vld [vmem:[%s7325_s5 + $0x3a0] sm:$0xff]   ;;  %vm4382_vm3 = vcmask 73728  }
 0x28e   : > { %2800 = vmatpush1.bf16.msra.mxu0 %v5357_v27  ;;  %v6275_v17 = vpop.permute.xlu1 %1482 }
 0x28f   : > { %2801 = vmatprep.subr.bf16.mxu0 %v5684_v13 }
 0x290   : > { %1431 = vmatpush1.bf16.msra.mxu1 %v1423_v4  ;;  %v5386_v4 = vld [vmem:[%s7325_s5 + $0x84] sm:$0xff]  }
 0x291   : > { %1623 = vmatprep.subr.bf16.mxu1 %v5684_v13 }
 0x292   : > { %2802 = vmatpush1.bf16.msra.mxu0 %v5359_v31 }
 0x293   : > { %4471 = vmatmul.mubr.msk.bf16.vlgmr.msra.gmra.mrb[16].mxu1 %vm1333_vm1, %v5352_v10  ;;  %2803 = vmatprep.subr.bf16.mxu0 %v5684_v13 }
 0x294   : > { %1624 = vmatpush1.bf16.msra.mxu1 %v5353_v32  ;;  %v5387_v32 = vld [vmem:[%s7325_s5 + $0x3a8] sm:$0xff]  }
 0x295   : > { %1625 = vmatprep.subr.bf16.mxu1 %v5684_v13 }
 0x296   : > { %2804 = vmatpush1.bf16.msra.mxu0 %v5361_v34  ;;  %v5388_v34 = vld [vmem:[%s7325_s5 + $0x8c] sm:$0xff]  }
 0x297   : > { %2805 = vmatprep.subr.bf16.mxu0 %v5684_v13 }
 0x298   : > { %1626 = vmatpush1.bf16.msra.mxu1 %v5354_v35  ;;  %v5389_v35 = vld [vmem:[%s7325_s5 + $0x3b0] sm:$0xff]  }
 0x299   : > { %1627 = vmatprep.subr.bf16.mxu1 %v5684_v13 }
 0x29a   : > { %2806 = vmatpush1.bf16.msra.mxu0 %v5363_v36  ;;  %v5390_v36 = vld [vmem:[%s7325_s5 + $0x94] sm:$0xff]  }
 0x29b   : > { %2807 = vmatprep.subr.bf16.mxu0 %v5684_v13 }
 0x29c   : > { %1628 = vmatpush1.bf16.msra.mxu1 %v5356_v38  ;;  %v5391_v38 = vld [vmem:[%s7325_s5 + $0x3b8] sm:$0xff]  }
 0x29d   : > { %1629 = vmatprep.subr.bf16.mxu1 %v5684_v13 }
 0x29e   : > { %2808 = vmatpush1.bf16.msra.mxu0 %v5365_v26  ;;  %v5392_v26 = vld [vmem:[%s7325_s5 + $0x9c] sm:$0xff]  }
 0x29f   : > { %2809 = vmatprep.subr.bf16.mxu0 %v5684_v13 }
 0x2a0   : > { %1630 = vmatpush1.bf16.msra.mxu1 %v5358_v62  ;;  %v5393_v62 = vld [vmem:[%s7325_s5 + $0x3c0] sm:$0xff]  }
 0x2a1   : > { %1631 = vmatprep.subr.bf16.mxu1 %v5684_v13 }
 0x2a2   : > { %2810 = vmatpush1.bf16.msra.mxu0 %v5367_v60  ;;  %v5394_v60 = vld [vmem:[%s7325_s5 + $0xa4] sm:$0xff]  }
 0x2a3   : > { %2811 = vmatprep.subr.bf16.mxu0 %v5684_v13 }
 0x2a4   : > { %1632 = vmatpush1.bf16.msra.mxu1 %v5360_v39  ;;  %v5395_v39 = vld [vmem:[%s7325_s5 + $0x3c8] sm:$0xff]  }
 0x2a5   : > { %1633 = vmatprep.subr.bf16.mxu1 %v5684_v13 }
 0x2a6   : > { %2812 = vmatpush1.bf16.msra.mxu0 %v5369_v40  ;;  %v5396_v40 = vld [vmem:[%s7325_s5 + $0xac] sm:$0xff]  }
 0x2a7   : > { %2813 = vmatprep.subr.bf16.mxu0 %v5684_v13 }
 0x2a8   : > { %1634 = vmatpush1.bf16.msra.mxu1 %v5362_v41  ;;  %v5397_v41 = vld [vmem:[%s7325_s5 + $0x3d0] sm:$0xff]  }
 0x2a9   : > { %1635 = vmatprep.subr.bf16.mxu1 %v5684_v13 }
 0x2aa   : > { %2814 = vmatpush1.bf16.msra.mxu0 %v5371_v43  ;;  %v5398_v43 = vld [vmem:[%s7325_s5 + $0xb4] sm:$0xff]  }
 0x2ab   : > { %2815 = vmatprep.subr.bf16.mxu0 %v5684_v13 }
 0x2ac   : > { %1636 = vmatpush1.bf16.msra.mxu1 %v5364_v33  ;;  %v5399_v33 = vld [vmem:[%s7325_s5 + $0x3d8] sm:$0xff]  }
 0x2ad   : > { %1637 = vmatprep.subr.bf16.mxu1 %v5684_v13 }
 0x2ae   : > { %2816 = vmatpush1.bf16.msra.mxu0 %v5373_v44  ;;  %v5400_v44 = vld [vmem:[%s7325_s5 + $0xbc] sm:$0xff]  }
 0x2af   : > { %2817 = vmatprep.subr.bf16.mxu0 %v5684_v13 }
 0x2b0   : > { %1638 = vmatpush1.bf16.msra.mxu1 %v5366_v63  ;;  %v5401_v63 = vld [vmem:[%s7325_s5 + $0x3e0] sm:$0xff]  }
 0x2b1   : > { %1639 = vmatprep.subr.bf16.mxu1 %v5684_v13 }
 0x2b2   : > { %2818 = vmatpush1.bf16.msra.mxu0 %v5375_v7  ;;  %v5402_v7 = vld [vmem:[%s7325_s5 + $0xc4] sm:$0xff]  }
 0x2b3   : > { %2819 = vmatprep.subr.bf16.mxu0 %v5684_v13 }
 0x2b4   : > { %1640 = vmatpush1.bf16.msra.mxu1 %v5368_v45  ;;  %v5403_v45 = vld [vmem:[%s7325_s5 + $0x3e8] sm:$0xff]  }
 0x2b5   : > { %1641 = vmatprep.subr.bf16.mxu1 %v5684_v13 }
 0x2b6   : > { %2820 = vmatpush1.bf16.msra.mxu0 %v5377_v12  ;;  %v5408_v12 = vld [vmem:[%s7325_s5 + $0xdc] sm:$0xff]  }
 0x2b7   : > { %2821 = vmatprep.subr.bf16.mxu0 %v5684_v13 }
 0x2b8   : > { %1642 = vmatpush1.bf16.msra.mxu1 %v5370_v46  ;;  %v5404_v46 = vld [vmem:[%s7325_s5 + $0xcc] sm:$0xff]  }
 0x2b9   : > { %1643 = vmatprep.subr.bf16.mxu1 %v5684_v13 }
 0x2ba   : > { %2822 = vmatpush1.bf16.msra.mxu0 %v5379_v49  ;;  %v5410_v49 = vld [vmem:[%s7325_s5 + $0xe4] ss:$0 sps:$4 sm:$0xff]  }
 0x2bb   : > { %2823 = vmatprep.subr.bf16.mxu0 %v5684_v13  ;;  %v1791_v50 = vand.u32 %v5410_v49, %v6259_v53  ;;  %v5454_v49 = vld [vmem:[%s7325_s5 + $0x18c] sm:$0xff]  }
 0x2bc   : > { %1644 = vmatpush1.bf16.msra.mxu1 %v5372_v37  ;;  %v5405_v37 = vld [vmem:[%s7325_s5 + $0x3f0] sm:$0xff]  }
 0x2bd   : > { %1645 = vmatprep.subr.bf16.mxu1 %v5684_v13 }
 0x2be   : > { %2824 = vmatpush1.bf16.msra.mxu0 %v5381_v52 }
 0x2bf   : > { %2825 = vmatprep.subr.bf16.mxu0 %v5684_v13 }
 0x2c0   : > { %1646 = vmatpush1.bf16.msra.mxu1 %v5374_v47  ;;  %v5406_v47 = vld [vmem:[%s7325_s5 + $0xd4] sm:$0xff]  }
 0x2c1   : > { %1647 = vmatprep.subr.bf16.mxu1 %v5684_v13 }
 0x2c2   : > { %2826 = vmatpush1.bf16.msra.mxu0 %v2795_v22 }
 0x2c3   : > { %2963 = vmatprep.subr.bf16.mxu0 %v5684_v13 }
 0x2c4   : > { %1648 = vmatpush1.bf16.msra.mxu1 %v5376_v61  ;;  %v5407_v61 = vld [vmem:[%s7325_s5 + $0x3f8] sm:$0xff]  }
 0x2c5   : > { %1649 = vmatprep.subr.bf16.mxu1 %v5684_v13 }
 0x2c8   : > { %1650 = vmatpush1.bf16.msra.mxu1 %v5378_v48  ;;  %v5409_v48 = vld [vmem:[%s7325_s5 + $0x400] sm:$0xff]  }
 0x2c9   : > { %1651 = vmatprep.subr.bf16.mxu1 %v5684_v13 }
 0x2cc   : > { %1652 = vmatpush1.bf16.msra.mxu1 %v1621_v54  ;;  %v5412_v54 = vld [vmem:[%s7325_s5 + $0xe8] sm:$0xff]  }
 0x2cd   : > { %1793 = vmatprep.subr.bf16.mxu1 %v5684_v13 }
 0x35c   : > { %v1378_v55 = vpop.f32.mrb[0].mxu0 }
 0x35d   : > { %v1380_v56 = vpop.f32.mrb[1].mxu0 }
 0x35e   : > { %v6269_v57 = vpop.f32.mrb[2].mxu0 }
 0x35f   : > { %v1384_v58 = vpop.f32.mrb[3].mxu0 }
 0x366   : > { %v1462_v59 = vpop.f32.mrb[16].mxu1 }
 0x367   : > { %v1471_v2 = vmax.f32 %v1378_v55, %v1462_v59  ;;  %v1464_v5 = vpop.f32.mrb[17].mxu1 }
 0x368   : > { %v1472_v6 = vmax.f32 %v1380_v56, %v1464_v5  ;;  %v6271_v8 = vpop.f32.mrb[18].mxu1  ;;  %v5414_v56 = vld [vmem:[%s7325_s5 + $0xf0] sm:$0xff]   ;;  %v5418_v5 = vld [vmem:[%s7325_s5 + $0x100] sm:$0xff]  }
 0x369   : > { %v1473_v10 = vmax.f32 %v6269_v57, %v6271_v8  ;;  %v1485_v11 = vadd.f32 %v1478_v1, %v1471_v2  ;;  %v1468_v14 = vpop.f32.mrb[19].mxu1  ;;  %v5415_v57 = vld [vmem:[%s7325_s5 + $0x414] sm:$0xff]   ;;  %v5417_v2 = vld [vmem:[%s7325_s5 + $0x41c] sm:$0xff]   ;;  %v5420_v8 = vld [vmem:[%s7325_s5 + $0x108] sm:$0xff]  }
 0x36a   : > { %v1486_v15 = vadd.f32 %v1478_v1, %v1472_v6  ;;  %v1474_v9 = vmax.f32 %v1384_v58, %v1468_v14  ;;  %v5416_v1 = vld [vmem:[%s7325_s5 + $0xf8] sm:$0xff]   ;;  %v5419_v6 = vld [vmem:[%s7325_s5 + $0x424] sm:$0xff]  }
 0x36b   : > { %v1489_v16 = vmax.f32 %v1485_v11, 0.0  ;;  %v1487_v52 = vadd.f32 %v6275_v17, %v1473_v10  ;;  %v5421_v10 = vld [vmem:[%s7325_s5 + $0x42c] sm:$0xff]   ;;  %v5423_v14 = vld [vmem:[%s7325_s5 + $0x434] sm:$0xff]  }
 0x36c   : > { %v1490_v18 = vmax.f32 %v1486_v15, 0.0  ;;  %v1488_v20 = vadd.f32 %v6275_v17, %v1474_v9  ;;  %v5422_v11 = vld [vmem:[%s7325_s5 + $0x110] sm:$0xff]   ;;  %v5424_v15 = vld [vmem:[%s7325_s5 + $0x118] sm:$0xff]   ;;  %v5427_v17 = vld [vmem:[%s7325_s5 + $0x444] sm:$0xff]  }
 0x36d   : > { %v6277_v19 = vpack.c.bf16 %v1489_v16, %v1489_v16  ;;  %v1491_v22 = vmax.f32 %v1487_v52, 0.0  ;;  %v5425_v9 = vld [vmem:[%s7325_s5 + $0x43c] sm:$0xff]  }
 0x36e   : > { %v6280_v25 = vpack.c.bf16 %v1490_v18, %v1490_v18  ;;  %v1492_v24 = vmax.f32 %v1488_v20, 0.0  ;;  %v5426_v16 = vld [vmem:[%s7325_s5 + $0x120] sm:$0xff]   ;;  %v5428_v18 = vld [vmem:[%s7325_s5 + $0x128] sm:$0xff]  }
 0x36f   : > { %v6286_v21 = vshrl.u32 %v6277_v19, 16  ;;  %v6438_v58 = vpack.c.bf16 %v1491_v22, %v1491_v22  ;;  %v5429_v20 = vld [vmem:[%s7325_s5 + $0x44c] sm:$0xff]   ;;  %v5458_v52 = vld [vmem:[%s7325_s5 + $0x19c] sm:$0xff]  }
 0x370   : > { %4487 = vmatprep.mubr.msk.bf16.mxu1 %vm1612_vm14, %v6280_v25  ;;  %v6291_v23 = vshrl.u32 %v6280_v25, 16  ;;  %v6306_v31 = vpack.c.bf16 %v1492_v24, %v1492_v24  ;;  %v1867_v55 = vrot.slane %v6280_v25, 1  ;;  %v5431_v24 = vld [vmem:[%s7325_s5 + $0x454] sm:$0xff]   ;;  %v5461_v22 = vld [vmem:[%s7325_s5 + $0x4c8] sm:$0xff]  }
 0x371   : > { %1656 = vmatmul.mubr.bf16.vlgmr.msra.gmra.mrb[20].mxu1 %v6277_v19  ;;  %v2701_v30 = vrot.slane %v6286_v21, 3 }
 0x372   : > { %1794 = vmatpush1.bf16.msra.mxu1 %v5382_v3  ;;  %4532 = vmatprep.mubr.msk.bf16.mxu1 %vm1612_vm14, %v6291_v23  ;;  %v2702_v27 = vrot.slane %v6291_v23, 3  ;;  %v6442_v59 = vshrl.u32 %v6306_v31, 16  ;;  %v5430_v3 = vld [vmem:[%s7325_s5 + $0x130] sm:$0xff]  }
 0x373   : > { %1795 = vmatprep.subr.bf16.mxu1 %v5684_v13 }
 0x374   : > { %4802 = vmatprep.mubr.msk.bf16.mxu0 %vm1612_vm14, %v2702_v27  ;;  %v5432_v27 = vld [vmem:[%s7325_s5 + $0x138] sm:$0xff]  }
 0x375   : > { %2830 = vmatmul.mubr.bf16.vlgmr.msra.gmra.mrb[4].mxu0 %v2701_v30  ;;  %v5435_v30 = vld [vmem:[%s7325_s5 + $0x464] sm:$0xff]  }
 0x376   : > { %1796 = vmatpush1.bf16.msra.mxu1 %v5384_v28  ;;  %2964 = vmatpush1.bf16.msra.mxu0 %v5385_v29  ;;  %v5433_v28 = vld [vmem:[%s7325_s5 + $0x45c] sm:$0xff]  }
 0x377   : > { %4847 = vmatprep.mubr.msk.bf16.mxu0 %vm1612_vm14, %v6306_v31  ;;  %1797 = vmatprep.subr.bf16.mxu1 %v5684_v13  ;;  %v5434_v29 = vld [vmem:[%s7325_s5 + $0x140] sm:$0xff]  }
 0x378   : > { %2965 = vmatprep.subr.bf16.mxu0 %v5684_v13 }
 0x37a   : > { %1798 = vmatpush1.bf16.msra.mxu1 %v5386_v4  ;;  %2966 = vmatpush1.bf16.msra.mxu0 %v5387_v32  ;;  %v5436_v4 = vld [vmem:[%s7325_s5 + $0x148] sm:$0xff]  }
 0x37b   : > { %1799 = vmatprep.subr.bf16.mxu1 %v5684_v13  ;;  %2967 = vmatprep.subr.bf16.mxu0 %v5684_v13  ;;  %v5437_v32 = vld [vmem:[%s7325_s5 + $0x46c] sm:$0xff]  }
 0x37e   : > { %1800 = vmatpush1.bf16.msra.mxu1 %v5388_v34  ;;  %2968 = vmatpush1.bf16.msra.mxu0 %v5389_v35  ;;  %v5438_v34 = vld [vmem:[%s7325_s5 + $0x150] sm:$0xff]   ;;  %v5440_v35 = vld [vmem:[%s7325_s5 + $0x158] ss:$0 sps:$4 sm:$0xff]  }
 0x37f   : > { %1801 = vmatprep.subr.bf16.mxu1 %v5684_v13  ;;  %2969 = vmatprep.subr.bf16.mxu0 %v5684_v13 }
 0x382   : > { %1802 = vmatpush1.bf16.msra.mxu1 %v5390_v36  ;;  %2970 = vmatpush1.bf16.msra.mxu0 %v5391_v38  ;;  %v5439_v36 = vld [vmem:[%s7325_s5 + $0x474] sm:$0xff]   ;;  %v1960_v38 = vand.u32 %v5440_v35, %v6259_v53 }
 0x383   : > { %1803 = vmatprep.subr.bf16.mxu1 %v5684_v13  ;;  %2971 = vmatprep.subr.bf16.mxu0 %v5684_v13  ;;  %v5482_v35 = vld [vmem:[%s7325_s5 + $0x1f8] sm:$0xff]  }
 0x386   : > { %1804 = vmatpush1.bf16.msra.mxu1 %v5392_v26  ;;  %2972 = vmatpush1.bf16.msra.mxu0 %v5393_v62  ;;  %v5441_v26 = vld [vmem:[%s7325_s5 + $0x47c] sm:$0xff]   ;;  %v5443_v62 = vld [vmem:[%s7325_s5 + $0x484] ss:$0 sps:$4 sm:$0xff]  }
 0x387   : > { %1805 = vmatprep.subr.bf16.mxu1 %v5684_v13  ;;  %2973 = vmatprep.subr.bf16.mxu0 %v5684_v13 }
 0x38a   : > { %1806 = vmatpush1.bf16.msra.mxu1 %v5394_v60  ;;  %2974 = vmatpush1.bf16.msra.mxu0 %v5395_v39  ;;  %v5442_v60 = vld [vmem:[%s7325_s5 + $0x15c] sm:$0xff]   ;;  %v1866_v39 = vrot.slane %v6277_v19, 1 }
 0x38b   : > { %1807 = vmatprep.subr.bf16.mxu1 %v5684_v13  ;;  %2975 = vmatprep.subr.bf16.mxu0 %v5684_v13 }
 0x38e   : > { %1808 = vmatpush1.bf16.msra.mxu1 %v5396_v40  ;;  %2976 = vmatpush1.bf16.msra.mxu0 %v5397_v41  ;;  %v3131_v40 = vand.u32 %v5443_v62, %v6259_v53  ;;  %v2034_v41 = vrot.slane %v6291_v23, 1  ;;  %v5486_v62 = vld [vmem:[%s7325_s5 + $0x208] sm:$0xff]  }
 0x38f   : > { %1809 = vmatprep.subr.bf16.mxu1 %v5684_v13  ;;  %2977 = vmatprep.subr.bf16.mxu0 %v5684_v13 }
 0x392   : > { %1810 = vmatpush1.bf16.msra.mxu1 %v5398_v43  ;;  %2978 = vmatpush1.bf16.msra.mxu0 %v5399_v33  ;;  %v5444_v43 = vld [vmem:[%s7325_s5 + $0x164] sm:$0xff]  }
 0x393   : > { %1811 = vmatprep.subr.bf16.mxu1 %v5684_v13  ;;  %2979 = vmatprep.subr.bf16.mxu0 %v5684_v13  ;;  %v5445_v33 = vld [vmem:[%s7325_s5 + $0x488] sm:$0xff]  }
 0x396   : > { %1812 = vmatpush1.bf16.msra.mxu1 %v5400_v44  ;;  %2980 = vmatpush1.bf16.msra.mxu0 %v5401_v63  ;;  %v6572_v44 = vshrl.u32 %v6438_v58, 16  ;;  %v3207_v63 = vrot.slane %v6306_v31, 1 }
 0x397   : > { %1813 = vmatprep.subr.bf16.mxu1 %v5684_v13  ;;  %2981 = vmatprep.subr.bf16.mxu0 %v5684_v13 }
 0x39a   : > { %1814 = vmatpush1.bf16.msra.mxu1 %v5402_v7  ;;  %2982 = vmatpush1.bf16.msra.mxu0 %v5403_v45  ;;  %v5446_v7 = vld [vmem:[%s7325_s5 + $0x16c] sm:$0xff]  }
 0x39b   : > { %1815 = vmatprep.subr.bf16.mxu1 %v5684_v13  ;;  %2983 = vmatprep.subr.bf16.mxu0 %v5684_v13  ;;  %v5447_v45 = vld [vmem:[%s7325_s5 + $0x490] sm:$0xff]  }
 0x39e   : > { %1816 = vmatpush1.bf16.msra.mxu1 %v5404_v46  ;;  %2984 = vmatpush1.bf16.msra.mxu0 %v5405_v37  ;;  %v5448_v46 = vld [vmem:[%s7325_s5 + $0x174] sm:$0xff]  }
 0x39f   : > { %1817 = vmatprep.subr.bf16.mxu1 %v5684_v13  ;;  %2985 = vmatprep.subr.bf16.mxu0 %v5684_v13  ;;  %v5449_v37 = vld [vmem:[%s7325_s5 + $0x498] sm:$0xff]  }
 0x3a2   : > { %1818 = vmatpush1.bf16.msra.mxu1 %v5406_v47  ;;  %2986 = vmatpush1.bf16.msra.mxu0 %v5407_v61  ;;  %v5450_v47 = vld [vmem:[%s7325_s5 + $0x17c] sm:$0xff]  }
 0x3a3   : > { %1819 = vmatprep.subr.bf16.mxu1 %v5684_v13  ;;  %2987 = vmatprep.subr.bf16.mxu0 %v5684_v13  ;;  %v5451_v61 = vld [vmem:[%s7325_s5 + $0x4a0] sm:$0xff]  }
 0x3a6   : > { %1820 = vmatpush1.bf16.msra.mxu1 %v5408_v12  ;;  %2988 = vmatpush1.bf16.msra.mxu0 %v5409_v48  ;;  %v5452_v12 = vld [vmem:[%s7325_s5 + $0x184] sm:$0xff]  }
 0x3a7   : > { %1821 = vmatprep.subr.bf16.mxu1 %v5684_v13  ;;  %2989 = vmatprep.subr.bf16.mxu0 %v5684_v13  ;;  %v5453_v48 = vld [vmem:[%s7325_s5 + $0x4a8] sm:$0xff]  }
 0x3aa   : > { %1822 = vmatpush1.bf16.msra.mxu1 %v1791_v50  ;;  %2990 = vmatpush1.bf16.msra.mxu0 %v5411_v51  ;;  %v5455_v50 = vld [vmem:[%s7325_s5 + $0x4b0] sm:$0xff]  }
 0x3ab   : > { %1962 = vmatprep.subr.bf16.mxu1 %v5684_v13  ;;  %2991 = vmatprep.subr.bf16.mxu0 %v5684_v13  ;;  %v5456_v51 = vld [vmem:[%s7325_s5 + $0x194] sm:$0xff]  }
 0x3ad   : > { %1826 = vmatmul.mubr.bf16.vlgmr.msra.gmra.mrb[20].mxu1 %v6286_v21 }
 0x3ae   : > { %1963 = vmatpush1.bf16.msra.mxu1 %v5412_v54  ;;  %4577 = vmatprep.mubr.msk.bf16.mxu1 %vm1612_vm14, %v1867_v55  ;;  %v5459_v54 = vld [vmem:[%s7325_s5 + $0x4c0] sm:$0xff]   ;;  %v5462_v55 = vld [vmem:[%s7325_s5 + $0x1ac] sm:$0xff]  }
 0x3af   : > { %2992 = vmatpush1.bf16.msra.mxu0 %v2961_v0  ;;  %1964 = vmatprep.subr.bf16.mxu1 %v5684_v13  ;;  %v5460_v0 = vld [vmem:[%s7325_s5 + $0x1a4] sm:$0xff]  }
 0x3b0   : > { %3133 = vmatprep.subr.bf16.mxu0 %v5684_v13 }
 0x3b2   : > { %2996 = vmatmul.mubr.bf16.vlgmr.msra.gmra.mrb[4].mxu0 %v6438_v58  ;;  %1965 = vmatpush1.bf16.msra.mxu1 %v5414_v56  ;;  %v5463_v56 = vld [vmem:[%s7325_s5 + $0x4d0] sm:$0xff]  }
 0x3b3   : > { %3134 = vmatpush1.bf16.msra.mxu0 %v5415_v57  ;;  %4892 = vmatprep.mubr.msk.bf16.mxu0 %vm1612_vm14, %v6442_v59  ;;  %v5464_v57 = vld [vmem:[%s7325_s5 + $0x1b4] sm:$0xff]  }
 0x3b4   : > { %1966 = vmatprep.subr.bf16.mxu1 %v5684_v13  ;;  %3135 = vmatprep.subr.bf16.mxu0 %v5684_v13 }
 0x3b6   : > { %1967 = vmatpush1.bf16.msra.mxu1 %v5416_v1  ;;  %v5465_v1 = vld [vmem:[%s7325_s5 + $0x4d8] sm:$0xff]  }
 0x3b7   : > { %3136 = vmatpush1.bf16.msra.mxu0 %v5417_v2  ;;  %1968 = vmatprep.subr.bf16.mxu1 %v5684_v13  ;;  %v5466_v2 = vld [vmem:[%s7325_s5 + $0x1bc] sm:$0xff]  }
 0x3b8   : > { %3137 = vmatprep.subr.bf16.mxu0 %v5684_v13 }
 0x3ba   : > { %1969 = vmatpush1.bf16.msra.mxu1 %v5418_v5  ;;  %v5467_v5 = vld [vmem:[%s7325_s5 + $0x4e0] sm:$0xff]  }
 0x3bb   : > { %3138 = vmatpush1.bf16.msra.mxu0 %v5419_v6  ;;  %1970 = vmatprep.subr.bf16.mxu1 %v5684_v13  ;;  %v5468_v6 = vld [vmem:[%s7325_s5 + $0x1c4] sm:$0xff]  }
 0x3bc   : > { %3139 = vmatprep.subr.bf16.mxu0 %v5684_v13 }
 0x3be   : > { %1971 = vmatpush1.bf16.msra.mxu1 %v5420_v8  ;;  %v5470_v8 = vld [vmem:[%s7325_s5 + $0x1cc] ss:$0 sps:$4 sm:$0xff]  }
 0x3bf   : > { %3140 = vmatpush1.bf16.msra.mxu0 %v5421_v10  ;;  %1972 = vmatprep.subr.bf16.mxu1 %v5684_v13  ;;  %v5469_v10 = vld [vmem:[%s7325_s5 + $0x4e8] sm:$0xff]  }
 0x3c0   : > { %3141 = vmatprep.subr.bf16.mxu0 %v5684_v13 }
 0x3c2   : > { %1973 = vmatpush1.bf16.msra.mxu1 %v5422_v11  ;;  %v2127_v11 = vand.u32 %v5470_v8, %v6259_v53  ;;  %v5512_v8 = vld [vmem:[%s7325_s5 + $0x26c] sm:$0xff]  }
 0x3c3   : > { %3142 = vmatpush1.bf16.msra.mxu0 %v5423_v14  ;;  %1974 = vmatprep.subr.bf16.mxu1 %v5684_v13  ;;  %v5471_v14 = vld [vmem:[%s7325_s5 + $0x4f0] sm:$0xff]  }
 0x3c4   : > { %3143 = vmatprep.subr.bf16.mxu0 %v5684_v13 }
 0x3c6   : > { %1975 = vmatpush1.bf16.msra.mxu1 %v5424_v15  ;;  %v5473_v15 = vld [vmem:[%s7325_s5 + $0x4f8] ss:$0 sps:$4 sm:$0xff]  }
 0x3c7   : > { %3144 = vmatpush1.bf16.msra.mxu0 %v5425_v9  ;;  %1976 = vmatprep.subr.bf16.mxu1 %v5684_v13  ;;  %v5472_v9 = vld [vmem:[%s7325_s5 + $0x1d0] sm:$0xff]  }
 0x3c8   : > { %3145 = vmatprep.subr.bf16.mxu0 %v5684_v13 }
 0x3ca   : > { %1977 = vmatpush1.bf16.msra.mxu1 %v5426_v16  ;;  %v2033_v16 = vrot.slane %v6286_v21, 1 }
 0x3cb   : > { %3146 = vmatpush1.bf16.msra.mxu0 %v5427_v17  ;;  %1978 = vmatprep.subr.bf16.mxu1 %v5684_v13  ;;  %v3300_v17 = vand.u32 %v5473_v15, %v6259_v53  ;;  %v5516_v15 = vld [vmem:[%s7325_s5 + $0x27c] sm:$0xff]  }
 0x3cc   : > { %3147 = vmatprep.subr.bf16.mxu0 %v5684_v13 }
 0x3ce   : > { %1979 = vmatpush1.bf16.msra.mxu1 %v5428_v18  ;;  %v2201_v18 = vrot.slane %v6280_v25, 2 }
 0x3cf   : > { %3148 = vmatpush1.bf16.msra.mxu0 %v5429_v20  ;;  %1980 = vmatprep.subr.bf16.mxu1 %v5684_v13  ;;  %v5474_v20 = vld [vmem:[%s7325_s5 + $0x1d8] sm:$0xff]  }
 0x3d0   : > { %3149 = vmatprep.subr.bf16.mxu0 %v5684_v13 }
 0x3d2   : > { %1981 = vmatpush1.bf16.msra.mxu1 %v5430_v3  ;;  %v5475_v3 = vld [vmem:[%s7325_s5 + $0x4fc] sm:$0xff]  }
 0x3d3   : > { %3150 = vmatpush1.bf16.msra.mxu0 %v5431_v24  ;;  %1982 = vmatprep.subr.bf16.mxu1 %v5684_v13  ;;  %v3206_v24 = vrot.slane %v6438_v58, 1 }
 0x3d4   : > { %3151 = vmatprep.subr.bf16.mxu0 %v5684_v13 }
 0x3d6   : > { %1983 = vmatpush1.bf16.msra.mxu1 %v5432_v27  ;;  %v3374_v27 = vrot.slane %v6442_v59, 1 }
 0x3d7   : > { %3152 = vmatpush1.bf16.msra.mxu0 %v5433_v28  ;;  %1984 = vmatprep.subr.bf16.mxu1 %v5684_v13  ;;  %v5476_v28 = vld [vmem:[%s7325_s5 + $0x1e0] sm:$0xff]  }
 0x3d8   : > { %3153 = vmatprep.subr.bf16.mxu0 %v5684_v13 }
 0x3da   : > { %1985 = vmatpush1.bf16.msra.mxu1 %v5434_v29  ;;  %v5477_v29 = vld [vmem:[%s7325_s5 + $0x504] sm:$0xff]  }
 0x3db   : > { %3154 = vmatpush1.bf16.msra.mxu0 %v5435_v30  ;;  %1986 = vmatprep.subr.bf16.mxu1 %v5684_v13  ;;  %v5478_v30 = vld [vmem:[%s7325_s5 + $0x1e8] sm:$0xff]  }
 0x3dc   : > { %3155 = vmatprep.subr.bf16.mxu0 %v5684_v13 }
 0x3de   : > { %1987 = vmatpush1.bf16.msra.mxu1 %v5436_v4  ;;  %v5479_v4 = vld [vmem:[%s7325_s5 + $0x50c] sm:$0xff]  }
 0x3df   : > { %3156 = vmatpush1.bf16.msra.mxu0 %v5437_v32  ;;  %1988 = vmatprep.subr.bf16.mxu1 %v5684_v13  ;;  %v5480_v32 = vld [vmem:[%s7325_s5 + $0x1f0] sm:$0xff]  }
 0x3e0   : > { %3157 = vmatprep.subr.bf16.mxu0 %v5684_v13 }
 0x3e2   : > { %1989 = vmatpush1.bf16.msra.mxu1 %v5438_v34  ;;  %v5481_v34 = vld [vmem:[%s7325_s5 + $0x514] sm:$0xff]  }
 0x3e3   : > { %3158 = vmatpush1.bf16.msra.mxu0 %v5439_v36  ;;  %1990 = vmatprep.subr.bf16.mxu1 %v5684_v13  ;;  %v5483_v36 = vld [vmem:[%s7325_s5 + $0x51c] sm:$0xff]  }
 0x3e4   : > { %3159 = vmatprep.subr.bf16.mxu0 %v5684_v13 }
 0x3e6   : > { %1991 = vmatpush1.bf16.msra.mxu1 %v1960_v38  ;;  %v5484_v38 = vld [vmem:[%s7325_s5 + $0x200] sm:$0xff]  }
 0x3e7   : > { %3160 = vmatpush1.bf16.msra.mxu0 %v5441_v26  ;;  %2129 = vmatprep.subr.bf16.mxu1 %v5684_v13  ;;  %v5485_v26 = vld [vmem:[%s7325_s5 + $0x524] sm:$0xff]  }
 0x3e8   : > { %3161 = vmatprep.subr.bf16.mxu0 %v5684_v13 }
 0x3e9   : > { %1995 = vmatmul.mubr.bf16.vlgmr.msra.gmra.mrb[20].mxu1 %v1866_v39  ;;  %v5488_v39 = vld [vmem:[%s7325_s5 + $0x210] sm:$0xff]  }
 0x3ea   : > { %2130 = vmatpush1.bf16.msra.mxu1 %v5442_v60  ;;  %4622 = vmatprep.mubr.msk.bf16.mxu1 %vm1612_vm14, %v2034_v41  ;;  %v5487_v60 = vld [vmem:[%s7325_s5 + $0x52c] sm:$0xff]   ;;  %v5490_v41 = vld [vmem:[%s7325_s5 + $0x218] sm:$0xff]  }
 0x3eb   : > { %3162 = vmatpush1.bf16.msra.mxu0 %v3131_v40  ;;  %2131 = vmatprep.subr.bf16.mxu1 %v5684_v13  ;;  %v5489_v40 = vld [vmem:[%s7325_s5 + $0x534] sm:$0xff]  }
 0x3ec   : > { %3302 = vmatprep.subr.bf16.mxu0 %v5684_v13 }
 0x3ee   : > { %3166 = vmatmul.mubr.bf16.vlgmr.msra.gmra.mrb[4].mxu0 %v6572_v44  ;;  %2132 = vmatpush1.bf16.msra.mxu1 %v5444_v43  ;;  %v5491_v43 = vld [vmem:[%s7325_s5 + $0x53c] sm:$0xff]  }
 0x3ef   : > { %3303 = vmatpush1.bf16.msra.mxu0 %v5445_v33  ;;  %4937 = vmatprep.mubr.msk.bf16.mxu0 %vm1612_vm14, %v3207_v63  ;;  %v5492_v33 = vld [vmem:[%s7325_s5 + $0x220] sm:$0xff]  }
 0x3f0   : > { %2133 = vmatprep.subr.bf16.mxu1 %v5684_v13  ;;  %3304 = vmatprep.subr.bf16.mxu0 %v5684_v13  ;;  %v5493_v63 = vld [vmem:[%s7325_s5 + $0x544] sm:$0xff]  }
 0x3f2   : > { %2134 = vmatpush1.bf16.msra.mxu1 %v5446_v7  ;;  %v5494_v7 = vld [vmem:[%s7325_s5 + $0x228] sm:$0xff]  }
 0x3f3   : > { %3305 = vmatpush1.bf16.msra.mxu0 %v5447_v45  ;;  %2135 = vmatprep.subr.bf16.mxu1 %v5684_v13  ;;  %v5495_v45 = vld [vmem:[%s7325_s5 + $0x54c] sm:$0xff]  }
 0x3f4   : > { %3306 = vmatprep.subr.bf16.mxu0 %v5684_v13 }
 0x3f6   : > { %2136 = vmatpush1.bf16.msra.mxu1 %v5448_v46  ;;  %v5496_v46 = vld [vmem:[%s7325_s5 + $0x230] sm:$0xff]  }
 0x3f7   : > { %3307 = vmatpush1.bf16.msra.mxu0 %v5449_v37  ;;  %2137 = vmatprep.subr.bf16.mxu1 %v5684_v13  ;;  %v5497_v37 = vld [vmem:[%s7325_s5 + $0x554] sm:$0xff]  }
 0x3f8   : > { %3308 = vmatprep.subr.bf16.mxu0 %v5684_v13 }
 0x3fa   : > { %2138 = vmatpush1.bf16.msra.mxu1 %v5450_v47  ;;  %v5498_v47 = vld [vmem:[%s7325_s5 + $0x238] sm:$0xff]  }
 0x3fb   : > { %3309 = vmatpush1.bf16.msra.mxu0 %v5451_v61  ;;  %2139 = vmatprep.subr.bf16.mxu1 %v5684_v13  ;;  %v5500_v61 = vld [vmem:[%s7325_s5 + $0x240] ss:$0 sps:$4 sm:$0xff]  }
 0x3fc   : > { %3310 = vmatprep.subr.bf16.mxu0 %v5684_v13 }
 0x3fe   : > { %2140 = vmatpush1.bf16.msra.mxu1 %v5452_v12  ;;  %v5499_v12 = vld [vmem:[%s7325_s5 + $0x55c] sm:$0xff]  }
 0x3ff   : > { %3311 = vmatpush1.bf16.msra.mxu0 %v5453_v48  ;;  %2141 = vmatprep.subr.bf16.mxu1 %v5684_v13  ;;  %v2294_v48 = vand.u32 %v5500_v61, %v6259_v53  ;;  %v5544_v61 = vld [vmem:[%s7325_s5 + $0x2e8] sm:$0xff]  }
 0x400   : > { %3312 = vmatprep.subr.bf16.mxu0 %v5684_v13 }
 0x402   : > { %2142 = vmatpush1.bf16.msra.mxu1 %v5454_v49  ;;  %v5501_v49 = vld [vmem:[%s7325_s5 + $0x564] sm:$0xff]  }
 0x403   : > { %3313 = vmatpush1.bf16.msra.mxu0 %v5455_v50  ;;  %2143 = vmatprep.subr.bf16.mxu1 %v5684_v13  ;;  %v5503_v50 = vld [vmem:[%s7325_s5 + $0x56c] ss:$0 sps:$4 sm:$0xff]  }
 0x404   : > { %3314 = vmatprep.subr.bf16.mxu0 %v5684_v13 }
 0x406   : > { %2144 = vmatpush1.bf16.msra.mxu1 %v5456_v51  ;;  %v5502_v51 = vld [vmem:[%s7325_s5 + $0x244] sm:$0xff]  }
 0x407   : > { %3315 = vmatpush1.bf16.msra.mxu0 %v5457_v42  ;;  %2145 = vmatprep.subr.bf16.mxu1 %v5684_v13  ;;  %v2200_v42 = vrot.slane %v6277_v19, 2 }
 0x408   : > { %3316 = vmatprep.subr.bf16.mxu0 %v5684_v13 }
 0x40a   : > { %2146 = vmatpush1.bf16.msra.mxu1 %v5458_v52  ;;  %v3467_v52 = vand.u32 %v5503_v50, %v6259_v53  ;;  %v5548_v50 = vld [vmem:[%s7325_s5 + $0x2f8] sm:$0xff]  }
 0x40b   : > { %3317 = vmatpush1.bf16.msra.mxu0 %v5459_v54  ;;  %2147 = vmatprep.subr.bf16.mxu1 %v5684_v13  ;;  %v2368_v54 = vrot.slane %v6291_v23, 2  ;;  %v3541_v23 = vrot.slane %v6306_v31, 2 }
 0x40c   : > { %3318 = vmatprep.subr.bf16.mxu0 %v5684_v13 }
 0x40e   : > { %2148 = vmatpush1.bf16.msra.mxu1 %v5460_v0  ;;  %v5504_v0 = vld [vmem:[%s7325_s5 + $0x24c] sm:$0xff]  }
 0x40f   : > { %3319 = vmatpush1.bf16.msra.mxu0 %v5461_v22  ;;  %2149 = vmatprep.subr.bf16.mxu1 %v5684_v13  ;;  %v5505_v22 = vld [vmem:[%s7325_s5 + $0x570] sm:$0xff]  }
 0x410   : > { %3320 = vmatprep.subr.bf16.mxu0 %v5684_v13 }
 0x412   : > { %2150 = vmatpush1.bf16.msra.mxu1 %v5462_v55  ;;  %v3373_v55 = vrot.slane %v6572_v44, 1 }
 0x413   : > { %3321 = vmatpush1.bf16.msra.mxu0 %v5463_v56  ;;  %2151 = vmatprep.subr.bf16.mxu1 %v5684_v13  ;;  %v5506_v56 = vld [vmem:[%s7325_s5 + $0x254] sm:$0xff]  }
 0x414   : > { %3322 = vmatprep.subr.bf16.mxu0 %v5684_v13 }
 0x416   : > { %2152 = vmatpush1.bf16.msra.mxu1 %v5464_v57  ;;  %v5507_v57 = vld [vmem:[%s7325_s5 + $0x578] sm:$0xff]  }
 0x417   : > { %3323 = vmatpush1.bf16.msra.mxu0 %v5465_v1  ;;  %2153 = vmatprep.subr.bf16.mxu1 %v5684_v13  ;;  %v5508_v1 = vld [vmem:[%s7325_s5 + $0x25c] sm:$0xff]  }
 0x418   : > { %3324 = vmatprep.subr.bf16.mxu0 %v5684_v13 }
 0x41a   : > { %2154 = vmatpush1.bf16.msra.mxu1 %v5466_v2  ;;  %v5509_v2 = vld [vmem:[%s7325_s5 + $0x580] sm:$0xff]  }
 0x41b   : > { %3325 = vmatpush1.bf16.msra.mxu0 %v5467_v5  ;;  %2155 = vmatprep.subr.bf16.mxu1 %v5684_v13  ;;  %v5510_v5 = vld [vmem:[%s7325_s5 + $0x264] sm:$0xff]  }
 0x41c   : > { %3326 = vmatprep.subr.bf16.mxu0 %v5684_v13 }
 0x41e   : > { %2156 = vmatpush1.bf16.msra.mxu1 %v5468_v6  ;;  %v5511_v6 = vld [vmem:[%s7325_s5 + $0x588] sm:$0xff]  }
 0x41f   : > { %3327 = vmatpush1.bf16.msra.mxu0 %v5469_v10  ;;  %2157 = vmatprep.subr.bf16.mxu1 %v5684_v13  ;;  %v5513_v10 = vld [vmem:[%s7325_s5 + $0x590] sm:$0xff]  }
 0x420   : > { %3328 = vmatprep.subr.bf16.mxu0 %v5684_v13 }
 0x422   : > { %2158 = vmatpush1.bf16.msra.mxu1 %v2127_v11  ;;  %v5514_v11 = vld [vmem:[%s7325_s5 + $0x274] sm:$0xff]  }
 0x423   : > { %3329 = vmatpush1.bf16.msra.mxu0 %v5471_v14  ;;  %2296 = vmatprep.subr.bf16.mxu1 %v5684_v13  ;;  %v5515_v14 = vld [vmem:[%s7325_s5 + $0x598] sm:$0xff]  }
 0x424   : > { %3330 = vmatprep.subr.bf16.mxu0 %v5684_v13 }
 0x425   : > { %2162 = vmatmul.mubr.bf16.vlgmr.msra.gmra.mrb[20].mxu1 %v2033_v16  ;;  %v5518_v16 = vld [vmem:[%s7325_s5 + $0x284] sm:$0xff]  }
 0x426   : > { %2297 = vmatpush1.bf16.msra.mxu1 %v5472_v9  ;;  %4667 = vmatprep.mubr.msk.bf16.mxu1 %vm1612_vm14, %v2201_v18  ;;  %v5517_v9 = vld [vmem:[%s7325_s5 + $0x5a0] sm:$0xff]   ;;  %v5520_v18 = vld [vmem:[%s7325_s5 + $0x28c] sm:$0xff]  }
 0x427   : > { %3331 = vmatpush1.bf16.msra.mxu0 %v3300_v17  ;;  %2298 = vmatprep.subr.bf16.mxu1 %v5684_v13  ;;  %v5519_v17 = vld [vmem:[%s7325_s5 + $0x5a8] sm:$0xff]  }
 0x428   : > { %3469 = vmatprep.subr.bf16.mxu0 %v5684_v13 }
 0x42a   : > { %3335 = vmatmul.mubr.bf16.vlgmr.msra.gmra.mrb[4].mxu0 %v3206_v24  ;;  %2299 = vmatpush1.bf16.msra.mxu1 %v5474_v20  ;;  %v5521_v20 = vld [vmem:[%s7325_s5 + $0x5b0] sm:$0xff]   ;;  %v5523_v24 = vld [vmem:[%s7325_s5 + $0x5b8] sm:$0xff]  }
 0x42b   : > { %3470 = vmatpush1.bf16.msra.mxu0 %v5475_v3  ;;  %4982 = vmatprep.mubr.msk.bf16.mxu0 %vm1612_vm14, %v3374_v27  ;;  %v5522_v3 = vld [vmem:[%s7325_s5 + $0x294] sm:$0xff]   ;;  %v5524_v27 = vld [vmem:[%s7325_s5 + $0x29c] sm:$0xff]  }
 0x42c   : > { %2300 = vmatprep.subr.bf16.mxu1 %v5684_v13  ;;  %3471 = vmatprep.subr.bf16.mxu0 %v5684_v13 }
 0x42e   : > { %2301 = vmatpush1.bf16.msra.mxu1 %v5476_v28  ;;  %v5525_v28 = vld [vmem:[%s7325_s5 + $0x5c0] sm:$0xff]  }
 0x42f   : > { %3472 = vmatpush1.bf16.msra.mxu0 %v5477_v29  ;;  %2302 = vmatprep.subr.bf16.mxu1 %v5684_v13  ;;  %v5526_v29 = vld [vmem:[%s7325_s5 + $0x2a4] sm:$0xff]  }
 0x430   : > { %3473 = vmatprep.subr.bf16.mxu0 %v5684_v13 }
 0x432   : > { %2303 = vmatpush1.bf16.msra.mxu1 %v5478_v30  ;;  %v5527_v30 = vld [vmem:[%s7325_s5 + $0x5c8] sm:$0xff]  }
 0x433   : > { %3474 = vmatpush1.bf16.msra.mxu0 %v5479_v4  ;;  %2304 = vmatprep.subr.bf16.mxu1 %v5684_v13  ;;  %v5528_v4 = vld [vmem:[%s7325_s5 + $0x2ac] sm:$0xff]  }
 0x434   : > { %3475 = vmatprep.subr.bf16.mxu0 %v5684_v13 }
 0x436   : > { %2305 = vmatpush1.bf16.msra.mxu1 %v5480_v32  ;;  %v5530_v32 = vld [vmem:[%s7325_s5 + $0x2b4] ss:$0 sps:$4 sm:$0xff]  }
 0x437   : > { %3476 = vmatpush1.bf16.msra.mxu0 %v5481_v34  ;;  %2306 = vmatprep.subr.bf16.mxu1 %v5684_v13  ;;  %v5529_v34 = vld [vmem:[%s7325_s5 + $0x5d0] sm:$0xff]  }
 0x438   : > { %3477 = vmatprep.subr.bf16.mxu0 %v5684_v13 }
 0x43a   : > { %2307 = vmatpush1.bf16.msra.mxu1 %v5482_v35  ;;  %v2461_v35 = vand.u32 %v5530_v32, %v6259_v53  ;;  %v5577_v32 = vld [vmem:[%s7325_s5 + $0x6c8] ss:$0 sps:$4 sm:$0xff]  }
 0x43b   : > { %3478 = vmatpush1.bf16.msra.mxu0 %v5483_v36  ;;  %2308 = vmatprep.subr.bf16.mxu1 %v5684_v13  ;;  %v5531_v36 = vld [vmem:[%s7325_s5 + $0x5d8] sm:$0xff]  }
 0x43c   : > { %3479 = vmatprep.subr.bf16.mxu0 %v5684_v13 }
 0x43e   : > { %2309 = vmatpush1.bf16.msra.mxu1 %v5484_v38  ;;  %v5533_v38 = vld [vmem:[%s7325_s5 + $0x5e0] ss:$0 sps:$4 sm:$0xff]  }
 0x43f   : > { %3480 = vmatpush1.bf16.msra.mxu0 %v5485_v26  ;;  %2310 = vmatprep.subr.bf16.mxu1 %v5684_v13  ;;  %v5532_v26 = vld [vmem:[%s7325_s5 + $0x2b8] sm:$0xff]  }
 0x440   : > { %3481 = vmatprep.subr.bf16.mxu0 %v5684_v13 }
 0x442   : > { %2311 = vmatpush1.bf16.msra.mxu1 %v5486_v62  ;;  %v2367_v62 = vrot.slane %v6286_v21, 2  ;;  %v5535_v21 = vld [vmem:[%s7325_s5 + $0x5e4] sm:$0xff]  }
 0x443   : > { %3482 = vmatpush1.bf16.msra.mxu0 %v5487_v60  ;;  %2312 = vmatprep.subr.bf16.mxu1 %v5684_v13  ;;  %v3634_v60 = vand.u32 %v5533_v38, %v6259_v53  ;;  %v4042_v38 = vrot.slane %v6442_v59, 3 }
 0x444   : > { %3483 = vmatprep.subr.bf16.mxu0 %v5684_v13 }
 0x446   : > { %2313 = vmatpush1.bf16.msra.mxu1 %v5488_v39  ;;  %v2535_v39 = vrot.slane %v6280_v25, 3  ;;  %v3708_v25 = vrot.slane %v6442_v59, 2  ;;  %v5582_v59 = vld [vmem:[%s7325_s5 + $0x6ec] sm:$0xff]  }
 0x447   : > { %3484 = vmatpush1.bf16.msra.mxu0 %v5489_v40  ;;  %2314 = vmatprep.subr.bf16.mxu1 %v5684_v13  ;;  %v5534_v40 = vld [vmem:[%s7325_s5 + $0x2c0] sm:$0xff]  }
 0x448   : > { %3485 = vmatprep.subr.bf16.mxu0 %v5684_v13 }
 0x44a   : > { %2315 = vmatpush1.bf16.msra.mxu1 %v5490_v41  ;;  %v3540_v41 = vrot.slane %v6438_v58, 2 }
 0x44b   : > { %3486 = vmatpush1.bf16.msra.mxu0 %v5491_v43  ;;  %2316 = vmatprep.subr.bf16.mxu1 %v5684_v13  ;;  %v5536_v43 = vld [vmem:[%s7325_s5 + $0x2c8] sm:$0xff]  }
 0x44c   : > { %3487 = vmatprep.subr.bf16.mxu0 %v5684_v13 }
 0x44e   : > { %2317 = vmatpush1.bf16.msra.mxu1 %v5492_v33  ;;  %v5537_v33 = vld [vmem:[%s7325_s5 + $0x5ec] sm:$0xff]  }
 0x44f   : > { %3488 = vmatpush1.bf16.msra.mxu0 %v5493_v63  ;;  %2318 = vmatprep.subr.bf16.mxu1 %v5684_v13  ;;  %v5538_v63 = vld [vmem:[%s7325_s5 + $0x2d0] sm:$0xff]  }
 0x450   : > { %3489 = vmatprep.subr.bf16.mxu0 %v5684_v13 }
 0x452   : > { %2319 = vmatpush1.bf16.msra.mxu1 %v5494_v7  ;;  %v5539_v7 = vld [vmem:[%s7325_s5 + $0x5f4] sm:$0xff]  }
 0x453   : > { %3490 = vmatpush1.bf16.msra.mxu0 %v5495_v45  ;;  %2320 = vmatprep.subr.bf16.mxu1 %v5684_v13  ;;  %v5540_v45 = vld [vmem:[%s7325_s5 + $0x2d8] sm:$0xff]  }
 0x454   : > { %3491 = vmatprep.subr.bf16.mxu0 %v5684_v13 }
 0x456   : > { %2321 = vmatpush1.bf16.msra.mxu1 %v5496_v46  ;;  %v5541_v46 = vld [vmem:[%s7325_s5 + $0x5fc] sm:$0xff]  }
 0x457   : > { %3492 = vmatpush1.bf16.msra.mxu0 %v5497_v37  ;;  %2322 = vmatprep.subr.bf16.mxu1 %v5684_v13  ;;  %v5542_v37 = vld [vmem:[%s7325_s5 + $0x2e0] sm:$0xff]  }
 0x458   : > { %3493 = vmatprep.subr.bf16.mxu0 %v5684_v13 }
 0x45a   : > { %2323 = vmatpush1.bf16.msra.mxu1 %v5498_v47  ;;  %v5543_v47 = vld [vmem:[%s7325_s5 + $0x604] sm:$0xff]  }
 0x45b   : > { %3494 = vmatpush1.bf16.msra.mxu0 %v5499_v12  ;;  %2324 = vmatprep.subr.bf16.mxu1 %v5684_v13  ;;  %v5545_v12 = vld [vmem:[%s7325_s5 + $0x60c] sm:$0xff]  }
 0x45c   : > { %3495 = vmatprep.subr.bf16.mxu0 %v5684_v13 }
 0x45e   : > { %2325 = vmatpush1.bf16.msra.mxu1 %v2294_v48  ;;  %v5546_v48 = vld [vmem:[%s7325_s5 + $0x2f0] sm:$0xff]  }
 0x45f   : > { %3496 = vmatpush1.bf16.msra.mxu0 %v5501_v49  ;;  %2463 = vmatprep.subr.bf16.mxu1 %v5684_v13  ;;  %v5547_v49 = vld [vmem:[%s7325_s5 + $0x614] sm:$0xff]  }
 0x460   : > { %3497 = vmatprep.subr.bf16.mxu0 %v5684_v13 }
 0x461   : > { %2329 = vmatmul.mubr.bf16.vlgmr.msra.gmra.mrb[20].mxu1 %v2200_v42  ;;  %v5550_v42 = vld [vmem:[%s7325_s5 + $0x300] sm:$0xff]  }
 0x462   : > { %2464 = vmatpush1.bf16.msra.mxu1 %v5502_v51  ;;  %4712 = vmatprep.mubr.msk.bf16.mxu1 %vm1612_vm14, %v2368_v54  ;;  %v5549_v51 = vld [vmem:[%s7325_s5 + $0x61c] sm:$0xff]   ;;  %v5552_v54 = vld [vmem:[%s7325_s5 + $0x308] sm:$0xff]  }
 0x463   : > { %3498 = vmatpush1.bf16.msra.mxu0 %v3467_v52  ;;  %2465 = vmatprep.subr.bf16.mxu1 %v5684_v13  ;;  %v5551_v52 = vld [vmem:[%s7325_s5 + $0x624] sm:$0xff]  }
 0x464   : > { %3636 = vmatprep.subr.bf16.mxu0 %v5684_v13 }
 0x466   : > { %3502 = vmatmul.mubr.bf16.vlgmr.msra.gmra.mrb[4].mxu0 %v3373_v55  ;;  %2466 = vmatpush1.bf16.msra.mxu1 %v5504_v0  ;;  %v5553_v0 = vld [vmem:[%s7325_s5 + $0x62c] sm:$0xff]   ;;  %v5555_v55 = vld [vmem:[%s7325_s5 + $0x634] sm:$0xff]  }
 0x467   : > { %3637 = vmatpush1.bf16.msra.mxu0 %v5505_v22  ;;  %5027 = vmatprep.mubr.msk.bf16.mxu0 %vm1612_vm14, %v3541_v23  ;;  %v5554_v22 = vld [vmem:[%s7325_s5 + $0x310] sm:$0xff]   ;;  %v5556_v23 = vld [vmem:[%s7325_s5 + $0x318] sm:$0xff]  }
 0x468   : > { %2467 = vmatprep.subr.bf16.mxu1 %v5684_v13  ;;  %3638 = vmatprep.subr.bf16.mxu0 %v5684_v13 }
 0x46a   : > { %2468 = vmatpush1.bf16.msra.mxu1 %v5506_v56  ;;  %v5557_v56 = vld [vmem:[%s7325_s5 + $0x63c] sm:$0xff]  }
 0x46b   : > { %3639 = vmatpush1.bf16.msra.mxu0 %v5507_v57  ;;  %2469 = vmatprep.subr.bf16.mxu1 %v5684_v13  ;;  %v5558_v57 = vld [vmem:[%s7325_s5 + $0x320] sm:$0xff]  }
 0x46c   : > { %3640 = vmatprep.subr.bf16.mxu0 %v5684_v13 }
 0x46e   : > { %2470 = vmatpush1.bf16.msra.mxu1 %v5508_v1  ;;  %v5560_v1 = vld [vmem:[%s7325_s5 + $0x328] ss:$0 sps:$4 sm:$0xff]  }
 0x46f   : > { %3641 = vmatpush1.bf16.msra.mxu0 %v5509_v2  ;;  %2471 = vmatprep.subr.bf16.mxu1 %v5684_v13  ;;  %v5559_v2 = vld [vmem:[%s7325_s5 + $0x644] sm:$0xff]  }
 0x470   : > { %3642 = vmatprep.subr.bf16.mxu0 %v5684_v13 }
 0x472   : > { %2472 = vmatpush1.bf16.msra.mxu1 %v5510_v5  ;;  %v2628_v5 = vand.u32 %v5560_v1, %v6259_v53 }
 0x473   : > { %3643 = vmatpush1.bf16.msra.mxu0 %v5511_v6  ;;  %2473 = vmatprep.subr.bf16.mxu1 %v5684_v13  ;;  %v5561_v6 = vld [vmem:[%s7325_s5 + $0x64c] sm:$0xff]  }
 0x474   : > { %3644 = vmatprep.subr.bf16.mxu0 %v5684_v13 }
 0x476   : > { %2474 = vmatpush1.bf16.msra.mxu1 %v5512_v8  ;;  %v5562_v8 = vld [vmem:[%s7325_s5 + $0x654] ss:$0 sps:$4 sm:$0xff]  }
 0x477   : > { %3645 = vmatpush1.bf16.msra.mxu0 %v5513_v10  ;;  %2475 = vmatprep.subr.bf16.mxu1 %v5684_v13  ;;  %v2534_v10 = vrot.slane %v6277_v19, 3  ;;  %v5564_v19 = vld [vmem:[%s7325_s5 + $0x660] sm:$0xff]  }
 0x478   : > { %3646 = vmatprep.subr.bf16.mxu0 %v5684_v13 }
 0x47a   : > { %2476 = vmatpush1.bf16.msra.mxu1 %v5514_v11  ;;  %v3801_v11 = vand.u32 %v5562_v8, %v6259_v53  ;;  %v5602_v8 = vld [vmem:[%s7329_s9 + $0x8] sm:$0xff]  }
 0x47b   : > { %3647 = vmatpush1.bf16.msra.mxu0 %v5515_v14  ;;  %2477 = vmatprep.subr.bf16.mxu1 %v5684_v13  ;;  %v5563_v14 = vld [vmem:[%s7325_s5 + $0x658] sm:$0xff]  }
 0x47c   : > { %3648 = vmatprep.subr.bf16.mxu0 %v5684_v13 }
 0x47e   : > { %2478 = vmatpush1.bf16.msra.mxu1 %v5516_v15  ;;  %v3707_v15 = vrot.slane %v6572_v44, 2 }
 0x47f   : > { %3649 = vmatpush1.bf16.msra.mxu0 %v5517_v9  ;;  %2479 = vmatprep.subr.bf16.mxu1 %v5684_v13  ;;  %v3875_v9 = vrot.slane %v6306_v31, 3  ;;  %v5566_v31 = vld [vmem:[%s7325_s5 + $0x670] sm:$0xff]  }
 0x480   : > { %3650 = vmatprep.subr.bf16.mxu0 %v5684_v13 }
 0x482   : > { %2480 = vmatpush1.bf16.msra.mxu1 %v5518_v16  ;;  %v5565_v16 = vld [vmem:[%s7325_s5 + $0x668] sm:$0xff]  }
 0x483   : > { %3651 = vmatpush1.bf16.msra.mxu0 %v5519_v17  ;;  %2481 = vmatprep.subr.bf16.mxu1 %v5684_v13  ;;  %v5567_v17 = vld [vmem:[%s7325_s5 + $0x678] sm:$0xff]  }
 0x484   : > { %3652 = vmatprep.subr.bf16.mxu0 %v5684_v13 }
 0x486   : > { %2482 = vmatpush1.bf16.msra.mxu1 %v5520_v18  ;;  %v5568_v18 = vld [vmem:[%s7325_s5 + $0x680] sm:$0xff]  }
 0x487   : > { %3653 = vmatpush1.bf16.msra.mxu0 %v5521_v20  ;;  %2483 = vmatprep.subr.bf16.mxu1 %v5684_v13  ;;  %v5569_v20 = vld [vmem:[%s7325_s5 + $0x688] sm:$0xff]  }
 0x488   : > { %3654 = vmatprep.subr.bf16.mxu0 %v5684_v13 }
 0x48a   : > { %2484 = vmatpush1.bf16.msra.mxu1 %v5522_v3  ;;  %v5570_v3 = vld [vmem:[%s7325_s5 + $0x690] sm:$0xff]  }
 0x48b   : > { %3655 = vmatpush1.bf16.msra.mxu0 %v5523_v24  ;;  %2485 = vmatprep.subr.bf16.mxu1 %v5684_v13  ;;  %v5571_v24 = vld [vmem:[%s7325_s5 + $0x698] sm:$0xff]  }
 0x48c   : > { %3656 = vmatprep.subr.bf16.mxu0 %v5684_v13 }
 0x48e   : > { %2486 = vmatpush1.bf16.msra.mxu1 %v5524_v27  ;;  %v5572_v27 = vld [vmem:[%s7325_s5 + $0x6a0] sm:$0xff]  }
 0x48f   : > { %3657 = vmatpush1.bf16.msra.mxu0 %v5525_v28  ;;  %2487 = vmatprep.subr.bf16.mxu1 %v5684_v13  ;;  %v5573_v28 = vld [vmem:[%s7325_s5 + $0x6a8] sm:$0xff]  }
 0x490   : > { %3658 = vmatprep.subr.bf16.mxu0 %v5684_v13 }
 0x492   : > { %2488 = vmatpush1.bf16.msra.mxu1 %v5526_v29  ;;  %v5574_v29 = vld [vmem:[%s7325_s5 + $0x6b0] sm:$0xff]  }
 0x493   : > { %3659 = vmatpush1.bf16.msra.mxu0 %v5527_v30  ;;  %2489 = vmatprep.subr.bf16.mxu1 %v5684_v13  ;;  %v5575_v30 = vld [vmem:[%s7325_s5 + $0x6b8] sm:$0xff]  }
 0x494   : > { %3660 = vmatprep.subr.bf16.mxu0 %v5684_v13 }
 0x496   : > { %2490 = vmatpush1.bf16.msra.mxu1 %v5528_v4  ;;  %v5576_v4 = vld [vmem:[%s7325_s5 + $0x6c0] sm:$0xff]  }
 0x497   : > { %3661 = vmatpush1.bf16.msra.mxu0 %v5529_v34  ;;  %2491 = vmatprep.subr.bf16.mxu1 %v5684_v13  ;;  %v3968_v34 = vand.u32 %v5577_v32, %v6259_v53 }
 0x498   : > { %3662 = vmatprep.subr.bf16.mxu0 %v5684_v13 }
 0x49a   : > { %2492 = vmatpush1.bf16.msra.mxu1 %v2461_v35  ;;  %v5578_v35 = vld [vmem:[%s7325_s5 + $0x6cc] sm:$0xff]  }
 0x49b   : > { %3663 = vmatpush1.bf16.msra.mxu0 %v5531_v36  ;;  %2630 = vmatprep.subr.bf16.mxu1 %v5684_v13  ;;  %v3874_v36 = vrot.slane %v6438_v58, 3  ;;  %v5581_v58 = vld [vmem:[%s7325_s5 + $0x6e4] sm:$0xff]  }
 0x49c   : > { %3664 = vmatprep.subr.bf16.mxu0 %v5684_v13 }
 0x49d   : > { %2496 = vmatmul.mubr.bf16.vlgmr.msra.gmra.mrb[20].mxu1 %v2367_v62  ;;  %v5580_v62 = vld [vmem:[%s7325_s5 + $0x6dc] sm:$0xff]  }
 0x49e   : > { %2631 = vmatpush1.bf16.msra.mxu1 %v5532_v26  ;;  %4757 = vmatprep.mubr.msk.bf16.mxu1 %vm1612_vm14, %v2535_v39  ;;  %v5579_v26 = vld [vmem:[%s7325_s5 + $0x6d4] sm:$0xff]   ;;  %v5584_v39 = vld [vmem:[%s7325_s5 + $0x6fc] sm:$0xff]  }
 0x49f   : > { %3665 = vmatpush1.bf16.msra.mxu0 %v3634_v60  ;;  %2632 = vmatprep.subr.bf16.mxu1 %v5684_v13  ;;  %v5583_v60 = vld [vmem:[%s7325_s5 + $0x6f4] sm:$0xff]  }
 0x4a0   : > { %3803 = vmatprep.subr.bf16.mxu0 %v5684_v13 }
 0x4a2   : > { %3669 = vmatmul.mubr.bf16.vlgmr.msra.gmra.mrb[4].mxu0 %v3540_v41  ;;  %2633 = vmatpush1.bf16.msra.mxu1 %v5534_v40  ;;  %v5593_v40 = vld [vmem:[%s7327_s7] sm:$0xff]   ;;  %v5594_v41 = vld [vmem:[%s7327_s7 + $0x8] sm:$0xff]  }
 0x4a3   : > { %3804 = vmatpush1.bf16.msra.mxu0 %v5535_v21  ;;  %5072 = vmatprep.mubr.msk.bf16.mxu0 %vm1612_vm14, %v3708_v25  ;;  %v5687_v21 = vmov 0.0   ;;  %v5585_v25 = vld [vmem:[%s7325_s5 + $0x704] sm:$0xff]  }
 0x4a4   : > { %2634 = vmatprep.subr.bf16.mxu1 %v5684_v13  ;;  %3805 = vmatprep.subr.bf16.mxu0 %v5684_v13 }
 0x4a6   : > { %2635 = vmatpush1.bf16.msra.mxu1 %v5536_v43  ;;  %v5595_v43 = vld [vmem:[%s7327_s7 + $0x10] sm:$0xff]  }
 0x4a7   : > { %3806 = vmatpush1.bf16.msra.mxu0 %v5537_v33  ;;  %2636 = vmatprep.subr.bf16.mxu1 %v5684_v13  ;;  %v5586_v33 = vld [vmem:[%s7325_s5 + $0x70c] sm:$0xff]  }
 0x4a8   : > { %3807 = vmatprep.subr.bf16.mxu0 %v5684_v13 }
 0x4aa   : > { %2637 = vmatpush1.bf16.msra.mxu1 %v5538_v63  ;;  %v5596_v63 = vld [vmem:[%s7327_s7 + $0x18] sm:$0xff]  }
 0x4ab   : > { %3808 = vmatpush1.bf16.msra.mxu0 %v5539_v7  ;;  %2638 = vmatprep.subr.bf16.mxu1 %v5684_v13  ;;  %v5587_v7 = vld [vmem:[%s7325_s5 + $0x714] sm:$0xff]  }
 0x4ac   : > { %3809 = vmatprep.subr.bf16.mxu0 %v5684_v13 }
 0x4ae   : > { %2639 = vmatpush1.bf16.msra.mxu1 %v5540_v45  ;;  %v5597_v45 = vld [vmem:[%s7327_s7 + $0x20] sm:$0xff]  }
 0x4af   : > { %3810 = vmatpush1.bf16.msra.mxu0 %v5541_v46  ;;  %2640 = vmatprep.subr.bf16.mxu1 %v5684_v13  ;;  %v5588_v46 = vld [vmem:[%s7325_s5 + $0x71c] sm:$0xff]  }
 0x4b0   : > { %3811 = vmatprep.subr.bf16.mxu0 %v5684_v13 }
 0x4b2   : > { %2641 = vmatpush1.bf16.msra.mxu1 %v5542_v37  ;;  %v5598_v37 = vld [vmem:[%s7327_s7 + $0x28] sm:$0xff]  }
 0x4b3   : > { %3812 = vmatpush1.bf16.msra.mxu0 %v5543_v47  ;;  %2642 = vmatprep.subr.bf16.mxu1 %v5684_v13  ;;  %v5589_v47 = vld [vmem:[%s7325_s5 + $0x724] sm:$0xff]  }
 0x4b4   : > { %3813 = vmatprep.subr.bf16.mxu0 %v5684_v13 }
 0x4b6   : > { %2643 = vmatpush1.bf16.msra.mxu1 %v5544_v61  ;;  %v5590_v61 = vld [vmem:[%s7325_s5 + $0x72c] sm:$0xff]  }
 0x4b7   : > { %3814 = vmatpush1.bf16.msra.mxu0 %v5545_v12  ;;  %2644 = vmatprep.subr.bf16.mxu1 %v5684_v13  ;;  %v5591_v12 = vld [vmem:[%s7325_s5 + $0x734] sm:$0xff]  }
 0x4b8   : > { %3815 = vmatprep.subr.bf16.mxu0 %v5684_v13 }
 0x4ba   : > { %2645 = vmatpush1.bf16.msra.mxu1 %v5546_v48  ;;  %v5592_v48 = vld [vmem:[%s7325_s5 + $0x73c] ss:$0 sps:$4 sm:$0xff]  }
 0x4bb   : > { %3816 = vmatpush1.bf16.msra.mxu0 %v5547_v49  ;;  %2646 = vmatprep.subr.bf16.mxu1 %v5684_v13  ;;  %v4135_v49 = vand.u32 %v5592_v48, %v6259_v53  ;;  %v1493_v53 = vld [vmem:[%s7326_s6] sm:$0x1] }
 0x4bc   : > { %3817 = vmatprep.subr.bf16.mxu0 %v5684_v13 }
 0x4be   : > { %2647 = vmatpush1.bf16.msra.mxu1 %v5548_v50  ;;  %v4041_v50 = vrot.slane %v6572_v44, 3 }
 0x4bf   : > { %3818 = vmatpush1.bf16.msra.mxu0 %v5549_v51  ;;  %2648 = vmatprep.subr.bf16.mxu1 %v5684_v13 }
 0x4c0   : > { %3819 = vmatprep.subr.bf16.mxu0 %v5684_v13 }
 0x4c2   : > { %2649 = vmatpush1.bf16.msra.mxu1 %v5550_v42  ;;  %v5599_v42 = vld [vmem:[%s7327_s7 + $0x30] sm:$0xff]  }
 0x4c3   : > { %3820 = vmatpush1.bf16.msra.mxu0 %v5551_v52  ;;  %2650 = vmatprep.subr.bf16.mxu1 %v5684_v13 }
 0x4c4   : > { %3821 = vmatprep.subr.bf16.mxu0 %v5684_v13 }
 0x4c6   : > { %2651 = vmatpush1.bf16.msra.mxu1 %v5552_v54 }
 0x4c7   : > { %3822 = vmatpush1.bf16.msra.mxu0 %v5553_v0  ;;  %2652 = vmatprep.subr.bf16.mxu1 %v5684_v13  ;;  %v5600_v0 = vld [vmem:[%s7327_s7 + $0x38] ss:$0 sps:$4 sm:$0xff]  }
 0x4c8   : > { %3823 = vmatprep.subr.bf16.mxu0 %v5684_v13 }
 0x4ca   : > { %2653 = vmatpush1.bf16.msra.mxu1 %v5554_v22 }
 0x4cb   : > { %3824 = vmatpush1.bf16.msra.mxu0 %v5555_v55  ;;  %2654 = vmatprep.subr.bf16.mxu1 %v5684_v13 }
 0x4cc   : > { %3825 = vmatprep.subr.bf16.mxu0 %v5684_v13 }
 0x4ce   : > { %2655 = vmatpush1.bf16.msra.mxu1 %v5556_v23 }
 0x4cf   : > { %3826 = vmatpush1.bf16.msra.mxu0 %v5557_v56  ;;  %2656 = vmatprep.subr.bf16.mxu1 %v5684_v13 }
 0x4d0   : > { %3827 = vmatprep.subr.bf16.mxu0 %v5684_v13 }
 0x4d2   : > { %2657 = vmatpush1.bf16.msra.mxu1 %v5558_v57 }
 0x4d3   : > { %3828 = vmatpush1.bf16.msra.mxu0 %v5559_v2  ;;  %2658 = vmatprep.subr.bf16.mxu1 %v5684_v13 }
 0x4d4   : > { %3829 = vmatprep.subr.bf16.mxu0 %v5684_v13 }
 0x4d6   : > { %2659 = vmatpush1.bf16.msra.mxu1 %v2628_v5  ;;  %v5601_v5 = vld [vmem:[%s7329_s9] sm:$0xff]  }
 0x4d7   : > { %3830 = vmatpush1.bf16.msra.mxu0 %v5561_v6  ;;  %5199 = vmatprep.subr.bf16.mxu1 %v5687_v21 }
 0x4d8   : > { %3831 = vmatprep.subr.bf16.mxu0 %v5684_v13 }
 0x4d9   : > { %2663 = vmatmul.mubr.bf16.vlgmr.msra.gmra.mrb[20].mxu1 %v2534_v10  ;;  %v5603_v10 = vld [vmem:[%s7329_s9 + $0x10] sm:$0xff]  }
 0x4da   : > { %5200 = vmatpush3.bf16.msra.mxu1 %v5593_v40  ;;  %5215 = vmatprep.mubr.msk.bf16.mxu1 %vm5688_vm15, %v5687_v21 }
 0x4db   : > { %3832 = vmatpush1.bf16.msra.mxu0 %v3801_v11  ;;  %5201 = vmatprep.subr.bf16.mxu1 %v5687_v21  ;;  %v5604_v11 = vld [vmem:[%s7329_s9 + $0x18] sm:$0xff]  }
 0x4dc   : > { %3970 = vmatprep.subr.bf16.mxu0 %v5684_v13 }
 0x4de   : > { %3836 = vmatmul.mubr.bf16.vlgmr.msra.gmra.mrb[4].mxu0 %v3707_v15  ;;  %5202 = vmatpush3.bf16.msra.mxu1 %v5594_v41  ;;  %v5606_v15 = vld [vmem:[%s7329_s9 + $0x28] ss:$0 sps:$4 sm:$0x33]  }
 0x4df   : > { %3971 = vmatpush1.bf16.msra.mxu0 %v5563_v14  ;;  %5117 = vmatprep.mubr.msk.bf16.mxu0 %vm1612_vm14, %v3875_v9  ;;  %v5605_v14 = vld [vmem:[%s7329_s9 + $0x20] sm:$0xff]  }
 0x4e0   : > { %3972 = vmatprep.subr.bf16.mxu0 %v5684_v13  ;;  %5203 = vmatprep.subr.bf16.mxu1 %v5687_v21 }
 0x4e2   : > { %5204 = vmatpush3.bf16.msra.mxu1 %v5595_v43 }
 0x4e3   : > { %3973 = vmatpush1.bf16.msra.mxu0 %v5564_v19  ;;  %5205 = vmatprep.subr.bf16.mxu1 %v5687_v21  ;;  %v4195_v19 = vld [vmem:[%s7328_s8] sm:$0x1] }
 0x4e4   : > { %3974 = vmatprep.subr.bf16.mxu0 %v5684_v13 }
 0x4e6   : > { %5206 = vmatpush3.bf16.msra.mxu1 %v5596_v63 }
 0x4e7   : > { %3975 = vmatpush1.bf16.msra.mxu0 %v5565_v16  ;;  %5207 = vmatprep.subr.bf16.mxu1 %v5687_v21 }
 0x4e8   : > { %3976 = vmatprep.subr.bf16.mxu0 %v5684_v13 }
 0x4ea   : > { %5208 = vmatpush3.bf16.msra.mxu1 %v5597_v45 }
 0x4eb   : > { %3977 = vmatpush1.bf16.msra.mxu0 %v5566_v31  ;;  %5209 = vmatprep.subr.bf16.mxu1 %v5687_v21 }
 0x4ec   : > { %3978 = vmatprep.subr.bf16.mxu0 %v5684_v13 }
 0x4ee   : > { %5210 = vmatpush3.bf16.msra.mxu1 %v5598_v37 }
 0x4ef   : > { %3979 = vmatpush1.bf16.msra.mxu0 %v5567_v17  ;;  %5211 = vmatprep.subr.bf16.mxu1 %v5687_v21 }
 0x4f0   : > { %3980 = vmatprep.subr.bf16.mxu0 %v5684_v13 }
 0x4f2   : > { %5212 = vmatpush3.bf16.msra.mxu1 %v5599_v42 }
 0x4f3   : > { %3981 = vmatpush1.bf16.msra.mxu0 %v5568_v18  ;;  %5213 = vmatprep.subr.bf16.mxu1 %v5687_v21 }
 0x4f4   : > { %3982 = vmatprep.subr.bf16.mxu0 %v5684_v13 }
 0x4f7   : > { %3983 = vmatpush1.bf16.msra.mxu0 %v5569_v20 }
 0x4f8   : > { %3984 = vmatprep.subr.bf16.mxu0 %v5684_v13 }
 0x4fb   : > { %3985 = vmatpush1.bf16.msra.mxu0 %v5570_v3 }
 0x4fc   : > { %3986 = vmatprep.subr.bf16.mxu0 %v5684_v13 }
 0x4ff   : > { %3987 = vmatpush1.bf16.msra.mxu0 %v5571_v24 }
 0x500   : > { %3988 = vmatprep.subr.bf16.mxu0 %v5684_v13 }
 0x503   : > { %3989 = vmatpush1.bf16.msra.mxu0 %v5572_v27  ;;  %v4300_v27 = vld [vmem:[%s7330_s10] sm:$0x1] }
 0x504   : > { %3990 = vmatprep.subr.bf16.mxu0 %v5684_v13 }
 0x507   : > { %3991 = vmatpush1.bf16.msra.mxu0 %v5573_v28 }
 0x508   : > { %3992 = vmatprep.subr.bf16.mxu0 %v5684_v13 }
 0x50b   : > { %3993 = vmatpush1.bf16.msra.mxu0 %v5574_v29 }
 0x50c   : > { %3994 = vmatprep.subr.bf16.mxu0 %v5684_v13 }
 0x50f   : > { %3995 = vmatpush1.bf16.msra.mxu0 %v5575_v30 }
 0x510   : > { %3996 = vmatprep.subr.bf16.mxu0 %v5684_v13 }
 0x513   : > { %3997 = vmatpush1.bf16.msra.mxu0 %v5576_v4 }
 0x514   : > { %3998 = vmatprep.subr.bf16.mxu0 %v5684_v13 }
 0x517   : > { %3999 = vmatpush1.bf16.msra.mxu0 %v3968_v34 }
 0x518   : > { %4137 = vmatprep.subr.bf16.mxu0 %v5684_v13 }
 0x51a   : > { %4003 = vmatmul.mubr.bf16.vlgmr.msra.gmra.mrb[4].mxu0 %v3874_v36 }
 0x51b   : > { %4138 = vmatpush1.bf16.msra.mxu0 %v5578_v35  ;;  %5162 = vmatprep.mubr.msk.bf16.mxu0 %vm1612_vm14, %v4042_v38 }
 0x51c   : > { %4139 = vmatprep.subr.bf16.mxu0 %v5684_v13 }
 0x51f   : > { %4140 = vmatpush1.bf16.msra.mxu0 %v5579_v26 }
 0x520   : > { %4141 = vmatprep.subr.bf16.mxu0 %v5684_v13 }
 0x523   : > { %4142 = vmatpush1.bf16.msra.mxu0 %v5580_v62 }
 0x524   : > { %4143 = vmatprep.subr.bf16.mxu0 %v5684_v13 }
 0x527   : > { %4144 = vmatpush1.bf16.msra.mxu0 %v5581_v58 }
 0x528   : > { %4145 = vmatprep.subr.bf16.mxu0 %v5684_v13 }
 0x52b   : > { %4146 = vmatpush1.bf16.msra.mxu0 %v5582_v59 }
 0x52c   : > { %4147 = vmatprep.subr.bf16.mxu0 %v5684_v13 }
 0x52f   : > { %4148 = vmatpush1.bf16.msra.mxu0 %v5583_v60 }
 0x530   : > { %4149 = vmatprep.subr.bf16.mxu0 %v5684_v13 }
 0x533   : > { %4150 = vmatpush1.bf16.msra.mxu0 %v5584_v39 }
 0x534   : > { %4151 = vmatprep.subr.bf16.mxu0 %v5684_v13 }
 0x537   : > { %4152 = vmatpush1.bf16.msra.mxu0 %v5585_v25 }
 0x538   : > { %4153 = vmatprep.subr.bf16.mxu0 %v5684_v13 }
 0x53b   : > { %4154 = vmatpush1.bf16.msra.mxu0 %v5586_v33 }
 0x53c   : > { %4155 = vmatprep.subr.bf16.mxu0 %v5684_v13 }
 0x53f   : > { %4156 = vmatpush1.bf16.msra.mxu0 %v5587_v7 }
 0x540   : > { %4157 = vmatprep.subr.bf16.mxu0 %v5684_v13 }
 0x543   : > { %4158 = vmatpush1.bf16.msra.mxu0 %v5588_v46 }
 0x544   : > { %4159 = vmatprep.subr.bf16.mxu0 %v5684_v13 }
 0x547   : > { %4160 = vmatpush1.bf16.msra.mxu0 %v5589_v47 }
 0x548   : > { %4161 = vmatprep.subr.bf16.mxu0 %v5684_v13 }
 0x54b   : > { %4162 = vmatpush1.bf16.msra.mxu0 %v5590_v61 }
 0x54c   : > { %4163 = vmatprep.subr.bf16.mxu0 %v5684_v13 }
 0x54f   : > { %4164 = vmatpush1.bf16.msra.mxu0 %v5591_v12 }
 0x550   : > { %4165 = vmatprep.subr.bf16.mxu0 %v5684_v13  ;;  %v4245_v13 = vsel %vm1617_vm13, %v5600_v0, 0 }
 0x551   : > { %5214 = vmatpush3.bf16.msra.mxu1 %v4245_v13 }
 0x552   : > { %5219 = vmatprep.subr.bf16.mxu1 %v5687_v21 }
 0x553   : > { %4166 = vmatpush1.bf16.msra.mxu0 %v4135_v49 }
 0x556   : > { %4170 = vmatmul.mubr.bf16.vlgmr.msra.gmra.mrb[4].mxu0 %v4041_v50 }
 0x5ac   : > { %v2664_v51 = vpop.f32.mrb[20].mxu1 }
 0x5ad   : > { %v2666_v52 = vpop.f32.mrb[21].mxu1  ;;  %v5235_v44 = vadd.f32 %v2664_v51, %v1493_v53 }
 0x5ae   : > { %v2667_v54 = vpop.f32.mrb[22].mxu1 }
 0x5af   : > { %v2668_v22 = vpop.f32.mrb[23].mxu1 }
 0x629   : > { %v4171_v55 = vpop.f32.mrb[4].mxu0 }
 0x62a   : > { %v5236_v23 = vadd.f32 %v5235_v44, %v4171_v55  ;;  %v4173_v56 = vpop.f32.mrb[5].mxu0 }
 0x62b   : > { %v4174_v57 = vpop.f32.mrb[6].mxu0 }
 0x62c   : > { %v4178_v1 = vmax.f32 %v5236_v23, 0.0  ;;  %v4175_v2 = vpop.f32.mrb[7].mxu0 }
 0x62e   : > { %v4179_v6 = vpack.c.bf16 %v4178_v1, %v4178_v1 }
 0x630   : > { %5216 = vmatmul.mubr.msk.bf16.vlgmr.msra.gmra.mrb[24].mxu1 %vm664_vm8, %v4179_v6  ;;  %vm4338_vm8 = vcmask 1041408  }
 0x631   : > { %5220 = vmatpush3.bf16.msra.mxu1 %v5601_v5  ;;  %5231 = vmatprep.mubr.msk.bf16.mxu1 %vm5688_vm15, %v5687_v21  ;;  %v4340_v9 = vsel %vm4338_vm8, %v5606_v15, 0 }
 0x632   : > { %5221 = vmatprep.subr.bf16.mxu1 %v5687_v21 }
 0x635   : > { %5222 = vmatpush3.bf16.msra.mxu1 %v5602_v8 }
 0x636   : > { %5223 = vmatprep.subr.bf16.mxu1 %v5687_v21 }
 0x639   : > { %5224 = vmatpush3.bf16.msra.mxu1 %v5603_v10 }
 0x63a   : > { %5225 = vmatprep.subr.bf16.mxu1 %v5687_v21 }
 0x63d   : > { %5226 = vmatpush3.bf16.msra.mxu1 %v5604_v11 }
 0x63e   : > { %5227 = vmatprep.subr.bf16.mxu1 %v5687_v21 }
 0x641   : > { %5228 = vmatpush3.bf16.msra.mxu1 %v5605_v14 }
 0x642   : > { %5229 = vmatprep.subr.bf16.mxu1 %v5687_v21 }
 0x645   : > { %5230 = vmatpush3.bf16.msra.mxu1 %v4340_v9 }
 0x703   : > { %v4281_v16 = vpop.f32.mrb[24].mxu1 }
 0x704   : > { %v4282_v31 = vadd.f32 %v4281_v16, %v4195_v19  ;;  %v5217_v17 = vpop.f32.mrb[25].mxu1 }
 0x705   : > { %v4284_v18 = vpop.f32.mrb[26].mxu1 }
 0x706   : > { %v4287_v20 = vmax.f32 %v4282_v31, 0.0  ;;  %v5218_v3 = vpop.f32.mrb[27].mxu1 }
 0x708   : > { %v4288_v24 = vpack.c.bf16 %v4287_v20, %v4287_v20 }
 0x70a   : > { %5232 = vmatmul.mubr.msk.bf16.vlgmr.msra.gmra.mrb[28].mxu1 %vm4334_vm0, %v4288_v24 }
 0x7dd   : > { %v4376_v28 = vpop.f32.mrb[28].mxu1 }
 0x7de   : > { %v4377_v29 = vadd.f32 %v4376_v28, %v4300_v27  ;;  %v5233_v30 = vpop.f32.mrb[29].mxu1 }
 0x7df   : > { %v4379_v4 = vpop.f32.mrb[30].mxu1 }
 0x7e0   : > { %v5234_v32 = vpop.f32.mrb[31].mxu1  ;;  %4383 = vst.msk [vmem:[%s378_s24] sm:$0x1] %vm4382_vm3, %v4377_v29 }
 0x7e1   : > { %5620 = shalt.err (!%p5617_p3)
}
 0x7e2   : > { %s5621_s12 = scalar_lea.hbm %s7278_s29, 16  ;;  %s5625_s16 = scalar_lea.hbm %s7331_s11, 32 }
 0x7e3   : > { %p5622_p4 = scmp.ne.s32.totalorder %s7278_s29, %s5621_s12  ;;  %p5626_p9 = scmp.lt.u32.totalorder %s7278_s29, %s7331_s11 }
 0x7e4   : > { %p5627_p10 = scmp.lt.u32.totalorder %s5625_s16, %s5621_s12  ;;  %p5629_p12 = scmp.lt.u32.totalorder %s5621_s12, %s7278_s29 }
 0x7e5   : > { %p5623_p7 = pnand %p5622_p4, %p5788_p5 }
 0x7e6   : > { %p5628_p11 = por %p5627_p10, %p5626_p9 }
 0x7e7   : > { %p5624_p8 = pneg %p5623_p7 }
 0x7e8   : > { %p5630_p13 = por %p5629_p12, %p5628_p11 }
 0x7ea   : > { %p5631_p0 = pnand %p5630_p13, %p5624_p8 }
 0x7ec   : > { %5634 = shalt.err (!%p5631_p0)
}
 0x7ed   : > { %5293 = dma.vmem_to_hbm [thread:$0]  (%p5788_p5), %s7280_s25, 16, %s7278_s29, %s4385_s21  }
 0x7ee PF: > { %p5299_p1 = scmp.ge.s32.totalorder %s5669_s20, 2  ;;  %s4409_s30 = sand.u32 1, %s5657_s17  }
 0x7ef   : > { %s4410_s15 = scalar_lea.sflag [#allocation5], %s4409_s30 }
 0x7f0   : > { %p5296_p2 = pnand %p5299_p1, %p5792_p6 }
 0x7f2   : > { %5652 = dma.done.wait (!%p5296_p2), %s4410_s15, 16  }
 0x7f3   : > { %5654 = vsyncadd (!%p5296_p2), %s4410_s15, 4294967280  ;;  %p21_p3 = scmp.ge.s32.totalorder %s5775_s23, 4   ;;  %s7336_s17 = smov %s5661_s18 }
 0x7f4   : > { %s7337_s18 = smov %s5665_s19  ;;  %s7338_s19 = smov %s5786_s26 }
 0x7f5   : > { %s7339_s20 = smov %s5775_s23  ;;  %23 = sbr.rel (!%p21_p3) target bundleno = 3 (0x3), region = 166 }
 0x7fc   :  { %4414 = vsyncpa [#allocation5], 1 }
 0x7fd   :  { %4416 = vsyncpa [#allocation5 + $0x1], 1 }

</bundles_post_ra>
